<compile_context>
chip_gen: v6e
topology: v6e:2x2x1
jax: 0.10.0
libtpu: 0.0.40
codegen_flags: <defaults>
</compile_context>

<pallas_src>
import functools

import numpy as np

import jax
import jax.numpy as jnp
from jax.experimental import pallas as pl
from jax.experimental.pallas import tpu as pltpu  # noqa: F401  (kept for TPU backend)


# ----------------------------------------------------------------------------
# Small demo shapes consistent with the module
# ----------------------------------------------------------------------------
DX = 4                  # feature dim of x
DY = 8                  # feature dim of y
D_REP = DX * DY         # input_dimension of the aggregate MLP (= 32)
HIDDEN = 32             # decoder_hidden_dimension
K = 4                   # n_clusters (> 2 -> softmax / categorical branch)
OUT_DIM = K + 2         # MLP output: [alpha, beta, mixture logits (K)]
GROUP_SIZES = [8, 10, 6, 8]
G = len(GROUP_SIZES)
N = sum(GROUP_SIZES)
EPS = 0.01
B = 3                   # demo batch of independent problems (folded into rows)


def _round_up(v, m):
    return ((v + m - 1) // m) * m


def _softplus(t):
    # torch.nn.Softplus (threshold = 20)
    return jnp.where(t > 20.0, t, jnp.log1p(jnp.exp(jnp.minimum(t, 20.0))))


# ----------------------------------------------------------------------------
# Pallas kernel: whole (batch-folded) problem in one invocation
# ----------------------------------------------------------------------------
def _cluster_kernel(gidx_ref, xy_ref, anc_ref, p_ref, out_ref,
                    *, dx, dy, k, hidden, eps):
    f32 = jnp.float32
    hi = jax.lax.Precision.HIGHEST
    d_rep = dx * dy
    out_dim = k + 2

    n_rows = xy_ref.shape[0]                 # B*N
    g_tot = anc_ref.shape[0]                 # B*G
    out_lanes = out_ref.shape[1]

    gidx = gidx_ref[...]                     # [BN, 1] int32 global group ids (b*G+idx)
    xy = xy_ref[...]                         # [BN, DX+DY]  (x || y)
    anc = anc_ref[...]                       # [BG, DX+DY]  (anchor_x || anchor_y)

    # One-hot group membership built in-kernel (iota + compare on the VPU).
    oh = jnp.where(gidx == jax.lax.broadcasted_iota(jnp.int32, (n_rows, g_tot), 1),
                   1.0, 0.0)                 # [BN, BG] f32

    # Exact per-row gather of a [BG, D] table via unrolled one-hot select
    # (VPU only): no MXU contraction, no bf16 rounding.
    def gather_rows(tbl):                    # [BG, D] -> [BN, D]
        acc = oh[:, 0:1] * tbl[0:1, :]
        for gi in range(1, g_tot):
            acc = acc + oh[:, gi:gi + 1] * tbl[gi:gi + 1, :]
        return acc

    rel = xy - gather_rows(anc)              # x_rel || y_rel, exact f32
    x_rel = rel[:, 0:dx]
    y_rel = rel[:, dx:dx + dy]

    # Row-major flattened outer product z[i, a*dy + b] = x_rel[i,a] * y_rel[i,b]
    # built purely on the VPU (unrolled over dx, exact f32, no MXU).
    z = jnp.concatenate([x_rel[:, a:a + 1] * y_rel for a in range(dx)],
                        axis=1)              # [BN, d_rep]

    # One fused segment-sum contraction: [z | rowsum(x_rel) | ones].  HIGHEST
    # keeps it f32-exact (one operand is 0/1, so the multi-pass decomposition
    # is exact selection + f32 accumulation).
    rowsum_x = jnp.sum(x_rel, axis=1, keepdims=True)
    ones = jnp.ones((n_rows, 1), f32)
    stats = jnp.concatenate([z, rowsum_x, ones], axis=1)        # [BN, d_rep+2]
    seg = jax.lax.dot_general(oh, stats, (((0,), (0,)), ((), ())),
                              precision=hi, preferred_element_type=f32)  # [BG, d_rep+2]

    nsz = seg[:, d_rep + 1:d_rep + 2]                # [BG, 1] group sizes
    cross = seg[:, 0:d_rep] / nsz                    # [BG, d_rep] mean outer product

    # torch .var(): unbiased, over all dx*n_g elements.  Two-pass (group mean,
    # then centered squares) to avoid E[x^2] - mean^2 cancellation.
    cnt = nsz * float(dx)
    mean_g = seg[:, d_rep:d_rep + 1] / cnt           # [BG, 1]
    dev = x_rel - gather_rows(mean_g)                # [BN, dx]
    sq = jnp.sum(dev * dev, axis=1, keepdims=True)   # [BN, 1]
    ssq = jax.lax.dot_general(oh, sq, (((0,), (0,)), ((), ())),
                              precision=hi, preferred_element_type=f32)  # [BG, 1]
    var = ssq / (cnt - 1.0)

    rep = cross / var                                # xtxinv * representation

    # MLP head: Linear -> Tanh -> (Dropout = identity) -> Linear.  Parameter
    # slab is packed on 8-row (sublane-tile) boundaries -> zero-cost slices.
    r_b1 = _round_up(d_rep, 8)
    r_w2 = _round_up(r_b1 + 1, 8)
    r_b2 = _round_up(r_w2 + hidden, 8)
    p = p_ref[...]
    w1 = p[0:d_rep, 0:hidden]
    b1 = p[r_b1:r_b1 + 1, 0:hidden]
    w2 = p[r_w2:r_w2 + hidden, 0:out_dim]
    b2 = p[r_b2:r_b2 + 1, 0:out_dim]

    h = jnp.tanh(jnp.dot(rep, w1, preferred_element_type=f32) + b1)
    out = jnp.dot(h, w2, preferred_element_type=f32) + b2       # [BG, k+2]

    alpha = _softplus(out[:, 0:1]) * (1.0 - eps) + eps
    beta = _softplus(out[:, 1:2]) * (1.0 - eps) + eps
    logits = out[:, 2:2 + k]

    m = jnp.max(logits, axis=-1, keepdims=True)
    e = jnp.exp(logits - m)
    mix = e / jnp.sum(e, axis=-1, keepdims=True)
    scale = jnp.sqrt(beta / alpha)

    # Single full-width, lane-dense store:
    #   [ rep (d_rep) | mixture (k) | alpha | beta | scale | zero pad ]
    pieces = [rep, mix, alpha, beta, scale]
    pad_w = out_lanes - (d_rep + k + 3)
    if pad_w > 0:
        pieces.append(jnp.zeros((g_tot, pad_w), f32))
    out_ref[...] = jnp.concatenate(pieces, axis=1)


# ----------------------------------------------------------------------------
# Parameter packing (done once, one DMA per kernel launch; 8-row aligned)
# ----------------------------------------------------------------------------
def pack_params(params):
    """Pack (w1, b1, w2, b2) into one sublane-tile-aligned slab."""
    w1, b1, w2, b2 = (jnp.asarray(p, jnp.float32) for p in params)
    d_rep, hidden = w1.shape
    out_dim = w2.shape[1]
    width = max(hidden, out_dim)
    r_b1 = _round_up(d_rep, 8)
    r_w2 = _round_up(r_b1 + 1, 8)
    r_b2 = _round_up(r_w2 + hidden, 8)
    rows = _round_up(r_b2 + 1, 8)
    slab = jnp.zeros((rows, width), jnp.float32)
    slab = slab.at[0:d_rep, 0:hidden].set(w1)
    slab = slab.at[r_b1, 0:hidden].set(b1)
    slab = slab.at[r_w2:r_w2 + hidden, 0:out_dim].set(w2)
    slab = slab.at[r_b2, 0:out_dim].set(b2)
    return slab


# ----------------------------------------------------------------------------
# Batched wrapper: batch folded into rows/groups -> ONE pallas_call invocation
# ----------------------------------------------------------------------------
@functools.partial(jax.jit, static_argnames=("n_clusters", "hidden", "eps"))
def cluster_model_forward_batched(index, x, y, anchor_x, anchor_y, param_slab,
                                  *, n_clusters, hidden, eps=EPS):
    """x,y,anchor_*: batched [B, ...]; index: shared [N] int group ids.

    Returns (representation, mixture, scale, alpha, beta), each with leading B."""
    x = jnp.asarray(x, jnp.float32)
    y = jnp.asarray(y, jnp.float32)
    b, n, dx = x.shape
    dy = y.shape[-1]
    g = anchor_x.shape[-2]
    d_rep = dx * dy
    k = n_clusters
    out_dim = k + 2
    bn = b * n
    bg = b * g

    # Global group ids (b*G + idx), built host-side (tiny XLA op).
    idx = jnp.asarray(index, jnp.int32).reshape(1, n)
    gidx = (jnp.arange(b, dtype=jnp.int32)[:, None] * g + idx).reshape(bn, 1)

    xy = jnp.concatenate([x, y], axis=-1).reshape(bn, dx + dy)            # [BN,DX+DY]
    anc = jnp.concatenate([jnp.asarray(anchor_x, jnp.float32),
                           jnp.asarray(anchor_y, jnp.float32)],
                          axis=-1).reshape(bg, dx + dy)                    # [BG,DX+DY]

    p_rows, p_cols = param_slab.shape
    out_lanes = _round_up(d_rep + k + 3, 128)   # lane-dense packed output

    flops = (2 * bg * bn * (2 * dx + dy)              # unrolled one-hot gathers
             + 2 * bn * d_rep                         # VPU outer product
             + 2 * bg * bn * (d_rep + 2)              # fused segment-sum dot
             + 2 * bg * bn                            # centered-squares dot
             + 2 * bg * (d_rep * hidden + hidden * out_dim)   # MLP
             + 8 * bn * (dx + dy))                    # misc elementwise
    cost = pl.CostEstimate(
        flops=int(flops),
        transcendentals=int(bg * (hidden + k + 6)),
        bytes_accessed=int(4 * (bn * (dx + dy) + bn + bg * (dx + dy)
                                + p_rows * p_cols + bg * out_lanes)))

    kernel = functools.partial(_cluster_kernel, dx=dx, dy=dy, k=k,
                               hidden=hidden, eps=float(eps))

    out = pl.pallas_call(
        kernel,
        grid=(1,),                                    # single invocation
        in_specs=[
            pl.BlockSpec((bn, 1), lambda i: (0, 0)),            # global group ids
            pl.BlockSpec((bn, dx + dy), lambda i: (0, 0)),      # x||y slab
            pl.BlockSpec((bg, dx + dy), lambda i: (0, 0)),      # anchor slab
            pl.BlockSpec((p_rows, p_cols), lambda i: (0, 0)),   # params
        ],
        out_specs=pl.BlockSpec((bg, out_lanes), lambda i: (0, 0)),
        out_shape=jax.ShapeDtypeStruct((bg, out_lanes), jnp.float32),
        cost_estimate=cost,
    )(gidx, xy, anc, param_slab)

    out = out.reshape(b, g, out_lanes)
    rep = out[:, :, 0:d_rep]
    mixture = out[:, :, d_rep:d_rep + k]
    alpha = out[:, :, d_rep + k:d_rep + k + 1]
    beta = out[:, :, d_rep + k + 1:d_rep + k + 2]
    scale = out[:, :, d_rep + k + 2:d_rep + k + 3]
    return rep, mixture, scale, alpha, beta


def cluster_model_forward(index, x, y, anchor_x, anchor_y, params, eps=EPS):
    """Module-equivalent single-problem API.  params = (w1, b1, w2, b2)."""
    slab = pack_params(params)
    hidden = params[0].shape[1]
    k = params[2].shape[1] - 2
    idx = jnp.asarray(index, jnp.int32)
    outs = cluster_model_forward_batched(
        idx, jnp.asarray(x)[None], jnp.asarray(y)[None],
        jnp.asarray(anchor_x)[None], jnp.asarray(anchor_y)[None], slab,
        n_clusters=k, hidden=hidden, eps=float(eps))
    return tuple(o[0] for o in outs)


# ----------------------------------------------------------------------------
# Pure-JAX reference (mirrors the torch semantics directly)
# ----------------------------------------------------------------------------
def reference_forward(index, x, y, anchor_x, anchor_y, params, eps=EPS):
    index = np.asarray(index)
    w1, b1, w2, b2 = params
    x_rel = x - anchor_x[index]
    y_rel = y - anchor_y[index]
    reps = []
    for gi in range(anchor_x.shape[0]):
        m = index == gi
        xg = x_rel[m]
        yg = y_rel[m]
        cov = (xg.T @ yg) / xg.shape[0]
        var = jnp.var(xg, ddof=1)
        reps.append((cov / var).reshape(-1))
    rep = jnp.stack(reps)
    h = jnp.tanh(rep @ w1 + b1)
    out = h @ w2 + b2
    alpha = jax.nn.softplus(out[:, 0:1]) * (1.0 - eps) + eps
    beta = jax.nn.softplus(out[:, 1:2]) * (1.0 - eps) + eps
    scale = jnp.sqrt(beta / alpha)
    mixture = jax.nn.softmax(out[:, 2:], axis=-1)
    return rep, mixture, scale, alpha, beta


if __name__ == "__main__":
    key = jax.random.PRNGKey(0)
    k_x, k_y, k_ax, k_ay, k_w1, k_b1, k_w2, k_b2 = jax.random.split(key, 8)

    # index is grouped and contiguous (matches repeat_interleave / Counter order)
    index = np.repeat(np.arange(G), GROUP_SIZES)

    x = jax.random.normal(k_x, (B, N, DX), jnp.float32)
    y = jax.random.normal(k_y, (B, N, DY), jnp.float32)
    anchor_x = jax.random.normal(k_ax, (B, G, DX), jnp.float32)
    anchor_y = jax.random.normal(k_ay, (B, G, DY), jnp.float32)

    # Deterministic parameter init (PyTorch Linear default: U(-1/sqrt(fan_in), +)).
    lim1 = 1.0 / np.sqrt(D_REP)
    lim2 = 1.0 / np.sqrt(HIDDEN)
    w1 = jax.random.uniform(k_w1, (D_REP, HIDDEN), jnp.float32, -lim1, lim1)
    b1 = jax.random.uniform(k_b1, (HIDDEN,), jnp.float32, -lim1, lim1)
    w2 = jax.random.uniform(k_w2, (HIDDEN, OUT_DIM), jnp.float32, -lim2, lim2)
    b2 = jax.random.uniform(k_b2, (OUT_DIM,), jnp.float32, -lim2, lim2)
    params = (w1, b1, w2, b2)
    slab = pack_params(params)

    # Batched path: ONE pallas_call, batch folded into rows/groups.
    outs = cluster_model_forward_batched(jnp.asarray(index, jnp.int32),
                                         x, y, anchor_x, anchor_y, slab,
                                         n_clusters=K, hidden=HIDDEN, eps=EPS)
    outs = jax.block_until_ready(outs)
    rep, mixture, scale, alpha, beta = outs

    names = ("representation", "mixture", "scale", "alpha", "beta")
    for bi in range(B):
        refs = reference_forward(index, x[bi], y[bi], anchor_x[bi], anchor_y[bi],
                                 params, EPS)
        got_b = (rep[bi], mixture[bi], scale[bi], alpha[bi], beta[bi])
        for got, want, name in zip(got_b, refs, names):
            np.testing.assert_allclose(np.asarray(got), np.asarray(want),
                                       rtol=5e-2, atol=5e-3,
                                       err_msg=f"batch {bi} {name}")
    assert np.allclose(np.asarray(mixture).sum(axis=-1), 1.0, atol=5e-3)
    assert np.all(np.asarray(scale) > 0.0)

    # Single-problem (module-equivalent) API path.
    s_outs = cluster_model_forward(index, x[0], y[0], anchor_x[0], anchor_y[0],
                                   params, EPS)
    s_outs = jax.block_until_ready(s_outs)
    np.testing.assert_allclose(np.asarray(s_outs[0]), np.asarray(rep[0]),
                               rtol=1e-5, atol=1e-6)

    print("KERNEL_OK")
</pallas_src>

<mosaic_0001>
module attributes {stable_mosaic.version = 11 : i64} {
  func.func @_cluster_kernel(%arg0: i32, %arg1: memref<96x1xi32, #tpu.memory_space<vmem>>, %arg2: memref<96x12xf32, #tpu.memory_space<vmem>>, %arg3: memref<12x12xf32, #tpu.memory_space<vmem>>, %arg4: memref<80x32xf32, #tpu.memory_space<vmem>>, %arg5: memref<12x128xf32, #tpu.memory_space<vmem>>) attributes {dimension_semantics = [#tpu.dimension_semantics<arbitrary>], iteration_bounds = array<i64: 1>, scalar_prefetch = 0 : i64, scratch_operands = 0 : i64, tpu.core_type = #tpu.core_type<tc>, window_params = [{pipeline_mode = #tpu.pipeline_mode<synchronous>, transform_indices = @transform_0, window_bounds = array<i64: 96, 1>}, {pipeline_mode = #tpu.pipeline_mode<synchronous>, transform_indices = @transform_1, window_bounds = array<i64: 96, 12>}, {pipeline_mode = #tpu.pipeline_mode<synchronous>, transform_indices = @transform_2, window_bounds = array<i64: 12, 12>}, {pipeline_mode = #tpu.pipeline_mode<synchronous>, transform_indices = @transform_3, window_bounds = array<i64: 80, 32>}, {pipeline_mode = #tpu.pipeline_mode<synchronous>, transform_indices = @transform_4, window_bounds = array<i64: 12, 128>}]} {
    %c0 = arith.constant 0 : index
    %c0_0 = arith.constant 0 : index
    %0 = vector.load %arg1[%c0, %c0_0] : memref<96x1xi32, #tpu.memory_space<vmem>>, vector<96x1xi32>
    %c0_1 = arith.constant 0 : index
    %c0_2 = arith.constant 0 : index
    %1 = vector.load %arg2[%c0_1, %c0_2] : memref<96x12xf32, #tpu.memory_space<vmem>>, vector<96x12xf32>
    %c0_3 = arith.constant 0 : index
    %c0_4 = arith.constant 0 : index
    %2 = vector.load %arg3[%c0_3, %c0_4] : memref<12x12xf32, #tpu.memory_space<vmem>>, vector<12x12xf32>
    %3 = tpu.iota {dimensions = array<i32: 1>} : vector<96x12xi32>
    %4 = vector.broadcast %0 : vector<96x1xi32> to vector<96x12xi32>
    %5 = arith.cmpi eq, %4, %3 : vector<96x12xi32>
    %cst = arith.constant 1.000000e+00 : f32
    %cst_5 = arith.constant 0.000000e+00 : f32
    %6 = vector.broadcast %cst : f32 to vector<96x12xf32>
    %7 = vector.broadcast %cst_5 : f32 to vector<96x12xf32>
    %8 = arith.select %5, %6, %7 : vector<96x12xi1>, vector<96x12xf32>
    %9 = vector.extract_strided_slice %8 {offsets = [0, 0], sizes = [96, 1], strides = [1, 1]} : vector<96x12xf32> to vector<96x1xf32>
    %10 = vector.extract_strided_slice %2 {offsets = [0, 0], sizes = [1, 12], strides = [1, 1]} : vector<12x12xf32> to vector<1x12xf32>
    %11 = vector.broadcast %9 : vector<96x1xf32> to vector<96x12xf32>
    %12 = vector.broadcast %10 : vector<1x12xf32> to vector<96x12xf32>
    %13 = arith.mulf %11, %12 : vector<96x12xf32>
    %14 = vector.extract_strided_slice %8 {offsets = [0, 1], sizes = [96, 1], strides = [1, 1]} : vector<96x12xf32> to vector<96x1xf32>
    %15 = vector.extract_strided_slice %2 {offsets = [1, 0], sizes = [1, 12], strides = [1, 1]} : vector<12x12xf32> to vector<1x12xf32>
    %16 = vector.broadcast %14 : vector<96x1xf32> to vector<96x12xf32>
    %17 = vector.broadcast %15 : vector<1x12xf32> to vector<96x12xf32>
    %18 = arith.mulf %16, %17 : vector<96x12xf32>
    %19 = arith.addf %13, %18 : vector<96x12xf32>
    %20 = vector.extract_strided_slice %8 {offsets = [0, 2], sizes = [96, 1], strides = [1, 1]} : vector<96x12xf32> to vector<96x1xf32>
    %21 = vector.extract_strided_slice %2 {offsets = [2, 0], sizes = [1, 12], strides = [1, 1]} : vector<12x12xf32> to vector<1x12xf32>
    %22 = vector.broadcast %20 : vector<96x1xf32> to vector<96x12xf32>
    %23 = vector.broadcast %21 : vector<1x12xf32> to vector<96x12xf32>
    %24 = arith.mulf %22, %23 : vector<96x12xf32>
    %25 = arith.addf %19, %24 : vector<96x12xf32>
    %26 = vector.extract_strided_slice %8 {offsets = [0, 3], sizes = [96, 1], strides = [1, 1]} : vector<96x12xf32> to vector<96x1xf32>
    %27 = vector.extract_strided_slice %2 {offsets = [3, 0], sizes = [1, 12], strides = [1, 1]} : vector<12x12xf32> to vector<1x12xf32>
    %28 = vector.broadcast %26 : vector<96x1xf32> to vector<96x12xf32>
    %29 = vector.broadcast %27 : vector<1x12xf32> to vector<96x12xf32>
    %30 = arith.mulf %28, %29 : vector<96x12xf32>
    %31 = arith.addf %25, %30 : vector<96x12xf32>
    %32 = vector.extract_strided_slice %8 {offsets = [0, 4], sizes = [96, 1], strides = [1, 1]} : vector<96x12xf32> to vector<96x1xf32>
    %33 = vector.extract_strided_slice %2 {offsets = [4, 0], sizes = [1, 12], strides = [1, 1]} : vector<12x12xf32> to vector<1x12xf32>
    %34 = vector.broadcast %32 : vector<96x1xf32> to vector<96x12xf32>
    %35 = vector.broadcast %33 : vector<1x12xf32> to vector<96x12xf32>
    %36 = arith.mulf %34, %35 : vector<96x12xf32>
    %37 = arith.addf %31, %36 : vector<96x12xf32>
    %38 = vector.extract_strided_slice %8 {offsets = [0, 5], sizes = [96, 1], strides = [1, 1]} : vector<96x12xf32> to vector<96x1xf32>
    %39 = vector.extract_strided_slice %2 {offsets = [5, 0], sizes = [1, 12], strides = [1, 1]} : vector<12x12xf32> to vector<1x12xf32>
    %40 = vector.broadcast %38 : vector<96x1xf32> to vector<96x12xf32>
    %41 = vector.broadcast %39 : vector<1x12xf32> to vector<96x12xf32>
    %42 = arith.mulf %40, %41 : vector<96x12xf32>
    %43 = arith.addf %37, %42 : vector<96x12xf32>
    %44 = vector.extract_strided_slice %8 {offsets = [0, 6], sizes = [96, 1], strides = [1, 1]} : vector<96x12xf32> to vector<96x1xf32>
    %45 = vector.extract_strided_slice %2 {offsets = [6, 0], sizes = [1, 12], strides = [1, 1]} : vector<12x12xf32> to vector<1x12xf32>
    %46 = vector.broadcast %44 : vector<96x1xf32> to vector<96x12xf32>
    %47 = vector.broadcast %45 : vector<1x12xf32> to vector<96x12xf32>
    %48 = arith.mulf %46, %47 : vector<96x12xf32>
    %49 = arith.addf %43, %48 : vector<96x12xf32>
    %50 = vector.extract_strided_slice %8 {offsets = [0, 7], sizes = [96, 1], strides = [1, 1]} : vector<96x12xf32> to vector<96x1xf32>
    %51 = vector.extract_strided_slice %2 {offsets = [7, 0], sizes = [1, 12], strides = [1, 1]} : vector<12x12xf32> to vector<1x12xf32>
    %52 = vector.broadcast %50 : vector<96x1xf32> to vector<96x12xf32>
    %53 = vector.broadcast %51 : vector<1x12xf32> to vector<96x12xf32>
    %54 = arith.mulf %52, %53 : vector<96x12xf32>
    %55 = arith.addf %49, %54 : vector<96x12xf32>
    %56 = vector.extract_strided_slice %8 {offsets = [0, 8], sizes = [96, 1], strides = [1, 1]} : vector<96x12xf32> to vector<96x1xf32>
    %57 = vector.extract_strided_slice %2 {offsets = [8, 0], sizes = [1, 12], strides = [1, 1]} : vector<12x12xf32> to vector<1x12xf32>
    %58 = vector.broadcast %56 : vector<96x1xf32> to vector<96x12xf32>
    %59 = vector.broadcast %57 : vector<1x12xf32> to vector<96x12xf32>
    %60 = arith.mulf %58, %59 : vector<96x12xf32>
    %61 = arith.addf %55, %60 : vector<96x12xf32>
    %62 = vector.extract_strided_slice %8 {offsets = [0, 9], sizes = [96, 1], strides = [1, 1]} : vector<96x12xf32> to vector<96x1xf32>
    %63 = vector.extract_strided_slice %2 {offsets = [9, 0], sizes = [1, 12], strides = [1, 1]} : vector<12x12xf32> to vector<1x12xf32>
    %64 = vector.broadcast %62 : vector<96x1xf32> to vector<96x12xf32>
    %65 = vector.broadcast %63 : vector<1x12xf32> to vector<96x12xf32>
    %66 = arith.mulf %64, %65 : vector<96x12xf32>
    %67 = arith.addf %61, %66 : vector<96x12xf32>
    %68 = vector.extract_strided_slice %8 {offsets = [0, 10], sizes = [96, 1], strides = [1, 1]} : vector<96x12xf32> to vector<96x1xf32>
    %69 = vector.extract_strided_slice %2 {offsets = [10, 0], sizes = [1, 12], strides = [1, 1]} : vector<12x12xf32> to vector<1x12xf32>
    %70 = vector.broadcast %68 : vector<96x1xf32> to vector<96x12xf32>
    %71 = vector.broadcast %69 : vector<1x12xf32> to vector<96x12xf32>
    %72 = arith.mulf %70, %71 : vector<96x12xf32>
    %73 = arith.addf %67, %72 : vector<96x12xf32>
    %74 = vector.extract_strided_slice %8 {offsets = [0, 11], sizes = [96, 1], strides = [1, 1]} : vector<96x12xf32> to vector<96x1xf32>
    %75 = vector.extract_strided_slice %2 {offsets = [11, 0], sizes = [1, 12], strides = [1, 1]} : vector<12x12xf32> to vector<1x12xf32>
    %76 = vector.broadcast %74 : vector<96x1xf32> to vector<96x12xf32>
    %77 = vector.broadcast %75 : vector<1x12xf32> to vector<96x12xf32>
    %78 = arith.mulf %76, %77 : vector<96x12xf32>
    %79 = arith.addf %73, %78 : vector<96x12xf32>
    %80 = arith.subf %1, %79 : vector<96x12xf32>
    %81 = vector.extract_strided_slice %80 {offsets = [0, 0], sizes = [96, 4], strides = [1, 1]} : vector<96x12xf32> to vector<96x4xf32>
    %82 = vector.extract_strided_slice %80 {offsets = [0, 4], sizes = [96, 8], strides = [1, 1]} : vector<96x12xf32> to vector<96x8xf32>
    %83 = vector.extract_strided_slice %81 {offsets = [0, 0], sizes = [96, 1], strides = [1, 1]} : vector<96x4xf32> to vector<96x1xf32>
    %84 = vector.broadcast %83 : vector<96x1xf32> to vector<96x8xf32>
    %85 = arith.mulf %84, %82 : vector<96x8xf32>
    %86 = vector.extract_strided_slice %81 {offsets = [0, 1], sizes = [96, 1], strides = [1, 1]} : vector<96x4xf32> to vector<96x1xf32>
    %87 = vector.broadcast %86 : vector<96x1xf32> to vector<96x8xf32>
    %88 = arith.mulf %87, %82 : vector<96x8xf32>
    %89 = vector.extract_strided_slice %81 {offsets = [0, 2], sizes = [96, 1], strides = [1, 1]} : vector<96x4xf32> to vector<96x1xf32>
    %90 = vector.broadcast %89 : vector<96x1xf32> to vector<96x8xf32>
    %91 = arith.mulf %90, %82 : vector<96x8xf32>
    %92 = vector.extract_strided_slice %81 {offsets = [0, 3], sizes = [96, 1], strides = [1, 1]} : vector<96x4xf32> to vector<96x1xf32>
    %93 = vector.broadcast %92 : vector<96x1xf32> to vector<96x8xf32>
    %94 = arith.mulf %93, %82 : vector<96x8xf32>
    %95 = tpu.concatenate %85, %88, %91, %94 in 1 : vector<96x8xf32>, vector<96x8xf32>, vector<96x8xf32>, vector<96x8xf32> -> vector<96x32xf32>
    %cst_6 = arith.constant dense<0.000000e+00> : vector<96xf32>
    %96 = vector.multi_reduction <add>, %81, %cst_6 [1] : vector<96x4xf32> to vector<96xf32>
    %97 = vector.shape_cast %96 : vector<96xf32> to vector<96x1xf32>
    %cst_7 = arith.constant 1.000000e+00 : f32
    %98 = vector.broadcast %cst_7 : f32 to vector<96x1xf32>
    %99 = tpu.concatenate %95, %97, %98 in 1 : vector<96x32xf32>, vector<96x1xf32>, vector<96x1xf32> -> vector<96x34xf32>
    %cst_8 = arith.constant dense<0.000000e+00> : vector<12x34xf32>
    %100 = tpu.matmul %8, %99, %cst_8 {dimension_numbers = #tpu.dot_dimension_numbers<[0], [0], [1], [1], [0, 1, 1, 1], [], []>, precision = #tpu.contract_precision<fp32>} : vector<96x12xf32>, vector<96x34xf32>, vector<12x34xf32> -> vector<12x34xf32>
    %101 = vector.extract_strided_slice %100 {offsets = [0, 33], sizes = [12, 1], strides = [1, 1]} : vector<12x34xf32> to vector<12x1xf32>
    %102 = vector.extract_strided_slice %100 {offsets = [0, 0], sizes = [12, 32], strides = [1, 1]} : vector<12x34xf32> to vector<12x32xf32>
    %103 = vector.broadcast %101 : vector<12x1xf32> to vector<12x32xf32>
    %104 = arith.divf %102, %103 : vector<12x32xf32>
    %cst_9 = arith.constant 4.000000e+00 : f32
    %105 = vector.broadcast %cst_9 : f32 to vector<12x1xf32>
    %106 = arith.mulf %101, %105 : vector<12x1xf32>
    %107 = vector.extract_strided_slice %100 {offsets = [0, 32], sizes = [12, 1], strides = [1, 1]} : vector<12x34xf32> to vector<12x1xf32>
    %108 = arith.divf %107, %106 : vector<12x1xf32>
    %109 = vector.extract_strided_slice %8 {offsets = [0, 0], sizes = [96, 1], strides = [1, 1]} : vector<96x12xf32> to vector<96x1xf32>
    %110 = vector.extract_strided_slice %108 {offsets = [0, 0], sizes = [1, 1], strides = [1, 1]} : vector<12x1xf32> to vector<1x1xf32>
    %111 = vector.broadcast %110 : vector<1x1xf32> to vector<96x1xf32>
    %112 = arith.mulf %109, %111 : vector<96x1xf32>
    %113 = vector.extract_strided_slice %8 {offsets = [0, 1], sizes = [96, 1], strides = [1, 1]} : vector<96x12xf32> to vector<96x1xf32>
    %114 = vector.extract_strided_slice %108 {offsets = [1, 0], sizes = [1, 1], strides = [1, 1]} : vector<12x1xf32> to vector<1x1xf32>
    %115 = vector.broadcast %114 : vector<1x1xf32> to vector<96x1xf32>
    %116 = arith.mulf %113, %115 : vector<96x1xf32>
    %117 = arith.addf %112, %116 : vector<96x1xf32>
    %118 = vector.extract_strided_slice %8 {offsets = [0, 2], sizes = [96, 1], strides = [1, 1]} : vector<96x12xf32> to vector<96x1xf32>
    %119 = vector.extract_strided_slice %108 {offsets = [2, 0], sizes = [1, 1], strides = [1, 1]} : vector<12x1xf32> to vector<1x1xf32>
    %120 = vector.broadcast %119 : vector<1x1xf32> to vector<96x1xf32>
    %121 = arith.mulf %118, %120 : vector<96x1xf32>
    %122 = arith.addf %117, %121 : vector<96x1xf32>
    %123 = vector.extract_strided_slice %8 {offsets = [0, 3], sizes = [96, 1], strides = [1, 1]} : vector<96x12xf32> to vector<96x1xf32>
    %124 = vector.extract_strided_slice %108 {offsets = [3, 0], sizes = [1, 1], strides = [1, 1]} : vector<12x1xf32> to vector<1x1xf32>
    %125 = vector.broadcast %124 : vector<1x1xf32> to vector<96x1xf32>
    %126 = arith.mulf %123, %125 : vector<96x1xf32>
    %127 = arith.addf %122, %126 : vector<96x1xf32>
    %128 = vector.extract_strided_slice %8 {offsets = [0, 4], sizes = [96, 1], strides = [1, 1]} : vector<96x12xf32> to vector<96x1xf32>
    %129 = vector.extract_strided_slice %108 {offsets = [4, 0], sizes = [1, 1], strides = [1, 1]} : vector<12x1xf32> to vector<1x1xf32>
    %130 = vector.broadcast %129 : vector<1x1xf32> to vector<96x1xf32>
    %131 = arith.mulf %128, %130 : vector<96x1xf32>
    %132 = arith.addf %127, %131 : vector<96x1xf32>
    %133 = vector.extract_strided_slice %8 {offsets = [0, 5], sizes = [96, 1], strides = [1, 1]} : vector<96x12xf32> to vector<96x1xf32>
    %134 = vector.extract_strided_slice %108 {offsets = [5, 0], sizes = [1, 1], strides = [1, 1]} : vector<12x1xf32> to vector<1x1xf32>
    %135 = vector.broadcast %134 : vector<1x1xf32> to vector<96x1xf32>
    %136 = arith.mulf %133, %135 : vector<96x1xf32>
    %137 = arith.addf %132, %136 : vector<96x1xf32>
    %138 = vector.extract_strided_slice %8 {offsets = [0, 6], sizes = [96, 1], strides = [1, 1]} : vector<96x12xf32> to vector<96x1xf32>
    %139 = vector.extract_strided_slice %108 {offsets = [6, 0], sizes = [1, 1], strides = [1, 1]} : vector<12x1xf32> to vector<1x1xf32>
    %140 = vector.broadcast %139 : vector<1x1xf32> to vector<96x1xf32>
    %141 = arith.mulf %138, %140 : vector<96x1xf32>
    %142 = arith.addf %137, %141 : vector<96x1xf32>
    %143 = vector.extract_strided_slice %8 {offsets = [0, 7], sizes = [96, 1], strides = [1, 1]} : vector<96x12xf32> to vector<96x1xf32>
    %144 = vector.extract_strided_slice %108 {offsets = [7, 0], sizes = [1, 1], strides = [1, 1]} : vector<12x1xf32> to vector<1x1xf32>
    %145 = vector.broadcast %144 : vector<1x1xf32> to vector<96x1xf32>
    %146 = arith.mulf %143, %145 : vector<96x1xf32>
    %147 = arith.addf %142, %146 : vector<96x1xf32>
    %148 = vector.extract_strided_slice %8 {offsets = [0, 8], sizes = [96, 1], strides = [1, 1]} : vector<96x12xf32> to vector<96x1xf32>
    %149 = vector.extract_strided_slice %108 {offsets = [8, 0], sizes = [1, 1], strides = [1, 1]} : vector<12x1xf32> to vector<1x1xf32>
    %150 = vector.broadcast %149 : vector<1x1xf32> to vector<96x1xf32>
    %151 = arith.mulf %148, %150 : vector<96x1xf32>
    %152 = arith.addf %147, %151 : vector<96x1xf32>
    %153 = vector.extract_strided_slice %8 {offsets = [0, 9], sizes = [96, 1], strides = [1, 1]} : vector<96x12xf32> to vector<96x1xf32>
    %154 = vector.extract_strided_slice %108 {offsets = [9, 0], sizes = [1, 1], strides = [1, 1]} : vector<12x1xf32> to vector<1x1xf32>
    %155 = vector.broadcast %154 : vector<1x1xf32> to vector<96x1xf32>
    %156 = arith.mulf %153, %155 : vector<96x1xf32>
    %157 = arith.addf %152, %156 : vector<96x1xf32>
    %158 = vector.extract_strided_slice %8 {offsets = [0, 10], sizes = [96, 1], strides = [1, 1]} : vector<96x12xf32> to vector<96x1xf32>
    %159 = vector.extract_strided_slice %108 {offsets = [10, 0], sizes = [1, 1], strides = [1, 1]} : vector<12x1xf32> to vector<1x1xf32>
    %160 = vector.broadcast %159 : vector<1x1xf32> to vector<96x1xf32>
    %161 = arith.mulf %158, %160 : vector<96x1xf32>
    %162 = arith.addf %157, %161 : vector<96x1xf32>
    %163 = vector.extract_strided_slice %8 {offsets = [0, 11], sizes = [96, 1], strides = [1, 1]} : vector<96x12xf32> to vector<96x1xf32>
    %164 = vector.extract_strided_slice %108 {offsets = [11, 0], sizes = [1, 1], strides = [1, 1]} : vector<12x1xf32> to vector<1x1xf32>
    %165 = vector.broadcast %164 : vector<1x1xf32> to vector<96x1xf32>
    %166 = arith.mulf %163, %165 : vector<96x1xf32>
    %167 = arith.addf %162, %166 : vector<96x1xf32>
    %168 = vector.broadcast %167 : vector<96x1xf32> to vector<96x4xf32>
    %169 = arith.subf %81, %168 : vector<96x4xf32>
    %170 = arith.mulf %169, %169 : vector<96x4xf32>
    %cst_10 = arith.constant dense<0.000000e+00> : vector<96xf32>
    %171 = vector.multi_reduction <add>, %170, %cst_10 [1] : vector<96x4xf32> to vector<96xf32>
    %172 = vector.shape_cast %171 : vector<96xf32> to vector<96x1xf32>
    %cst_11 = arith.constant dense<0.000000e+00> : vector<12x1xf32>
    %173 = tpu.matmul %8, %172, %cst_11 {dimension_numbers = #tpu.dot_dimension_numbers<[0], [0], [1], [1], [0, 1, 1, 1], [], []>, precision = #tpu.contract_precision<fp32>} : vector<96x12xf32>, vector<96x1xf32>, vector<12x1xf32> -> vector<12x1xf32>
    %cst_12 = arith.constant 1.000000e+00 : f32
    %174 = vector.broadcast %cst_12 : f32 to vector<12x1xf32>
    %175 = arith.subf %106, %174 : vector<12x1xf32>
    %176 = arith.divf %173, %175 : vector<12x1xf32>
    %177 = vector.broadcast %176 : vector<12x1xf32> to vector<12x32xf32>
    %178 = arith.divf %104, %177 : vector<12x32xf32>
    %c0_13 = arith.constant 0 : index
    %c0_14 = arith.constant 0 : index
    %179 = vector.load %arg4[%c0_13, %c0_14] : memref<80x32xf32, #tpu.memory_space<vmem>>, vector<80x32xf32>
    %180 = vector.extract_strided_slice %179 {offsets = [0, 0], sizes = [32, 32], strides = [1, 1]} : vector<80x32xf32> to vector<32x32xf32>
    %181 = vector.extract_strided_slice %179 {offsets = [32, 0], sizes = [1, 32], strides = [1, 1]} : vector<80x32xf32> to vector<1x32xf32>
    %182 = vector.extract_strided_slice %179 {offsets = [40, 0], sizes = [32, 6], strides = [1, 1]} : vector<80x32xf32> to vector<32x6xf32>
    %183 = vector.extract_strided_slice %179 {offsets = [72, 0], sizes = [1, 6], strides = [1, 1]} : vector<80x32xf32> to vector<1x6xf32>
    %cst_15 = arith.constant dense<0.000000e+00> : vector<12x32xf32>
    %184 = tpu.matmul %178, %180, %cst_15 {dimension_numbers = #tpu.dot_dimension_numbers<[1], [0], [0], [1], [0, 0, 1, 1], [], []>} : vector<12x32xf32>, vector<32x32xf32>, vector<12x32xf32> -> vector<12x32xf32>
    %185 = vector.broadcast %181 : vector<1x32xf32> to vector<12x32xf32>
    %186 = arith.addf %184, %185 : vector<12x32xf32>
    %187 = math.tanh %186 : vector<12x32xf32>
    %cst_16 = arith.constant dense<0.000000e+00> : vector<12x6xf32>
    %188 = tpu.matmul %187, %182, %cst_16 {dimension_numbers = #tpu.dot_dimension_numbers<[1], [0], [0], [1], [0, 0, 1, 1], [], []>} : vector<12x32xf32>, vector<32x6xf32>, vector<12x6xf32> -> vector<12x6xf32>
    %189 = vector.broadcast %183 : vector<1x6xf32> to vector<12x6xf32>
    %190 = arith.addf %188, %189 : vector<12x6xf32>
    %191 = vector.extract_strided_slice %190 {offsets = [0, 0], sizes = [12, 1], strides = [1, 1]} : vector<12x6xf32> to vector<12x1xf32>
    %cst_17 = arith.constant 2.000000e+01 : f32
    %192 = vector.broadcast %cst_17 : f32 to vector<12x1xf32>
    %193 = arith.cmpf ogt, %191, %192 : vector<12x1xf32>
    %cst_18 = arith.constant 2.000000e+01 : f32
    %194 = vector.broadcast %cst_18 : f32 to vector<12x1xf32>
    %195 = arith.minimumf %191, %194 : vector<12x1xf32>
    %196 = math.exp %195 : vector<12x1xf32>
    %197 = math.log1p %196 : vector<12x1xf32>
    %198 = arith.select %193, %191, %197 : vector<12x1xi1>, vector<12x1xf32>
    %cst_19 = arith.constant 9.900000e-01 : f32
    %199 = vector.broadcast %cst_19 : f32 to vector<12x1xf32>
    %200 = arith.mulf %198, %199 : vector<12x1xf32>
    %cst_20 = arith.constant 0.00999999977 : f32
    %201 = vector.broadcast %cst_20 : f32 to vector<12x1xf32>
    %202 = arith.addf %200, %201 : vector<12x1xf32>
    %203 = vector.extract_strided_slice %190 {offsets = [0, 1], sizes = [12, 1], strides = [1, 1]} : vector<12x6xf32> to vector<12x1xf32>
    %cst_21 = arith.constant 2.000000e+01 : f32
    %204 = vector.broadcast %cst_21 : f32 to vector<12x1xf32>
    %205 = arith.cmpf ogt, %203, %204 : vector<12x1xf32>
    %cst_22 = arith.constant 2.000000e+01 : f32
    %206 = vector.broadcast %cst_22 : f32 to vector<12x1xf32>
    %207 = arith.minimumf %203, %206 : vector<12x1xf32>
    %208 = math.exp %207 : vector<12x1xf32>
    %209 = math.log1p %208 : vector<12x1xf32>
    %210 = arith.select %205, %203, %209 : vector<12x1xi1>, vector<12x1xf32>
    %cst_23 = arith.constant 9.900000e-01 : f32
    %211 = vector.broadcast %cst_23 : f32 to vector<12x1xf32>
    %212 = arith.mulf %210, %211 : vector<12x1xf32>
    %cst_24 = arith.constant 0.00999999977 : f32
    %213 = vector.broadcast %cst_24 : f32 to vector<12x1xf32>
    %214 = arith.addf %212, %213 : vector<12x1xf32>
    %215 = vector.extract_strided_slice %190 {offsets = [0, 2], sizes = [12, 4], strides = [1, 1]} : vector<12x6xf32> to vector<12x4xf32>
    %cst_25 = arith.constant dense<0xFF800000> : vector<12xf32>
    %216 = vector.multi_reduction <maximumf>, %215, %cst_25 [1] : vector<12x4xf32> to vector<12xf32>
    %217 = vector.shape_cast %216 : vector<12xf32> to vector<12x1xf32>
    %218 = vector.broadcast %217 : vector<12x1xf32> to vector<12x4xf32>
    %219 = arith.subf %215, %218 : vector<12x4xf32>
    %220 = math.exp %219 : vector<12x4xf32>
    %cst_26 = arith.constant dense<0.000000e+00> : vector<12xf32>
    %221 = vector.multi_reduction <add>, %220, %cst_26 [1] : vector<12x4xf32> to vector<12xf32>
    %222 = vector.shape_cast %221 : vector<12xf32> to vector<12x1xf32>
    %223 = vector.broadcast %222 : vector<12x1xf32> to vector<12x4xf32>
    %224 = arith.divf %220, %223 : vector<12x4xf32>
    %225 = arith.divf %214, %202 : vector<12x1xf32>
    %226 = math.sqrt %225 : vector<12x1xf32>
    %cst_27 = arith.constant 0.000000e+00 : f32
    %227 = vector.broadcast %cst_27 : f32 to vector<12x89xf32>
    %228 = tpu.concatenate %178, %224, %202, %214, %226, %227 in 1 : vector<12x32xf32>, vector<12x4xf32>, vector<12x1xf32>, vector<12x1xf32>, vector<12x1xf32>, vector<12x89xf32> -> vector<12x128xf32>
    %c0_28 = arith.constant 0 : index
    %c0_29 = arith.constant 0 : index
    %229 = vector.load %arg5[%c0_28, %c0_29] : memref<12x128xf32, #tpu.memory_space<vmem>>, vector<12x128xf32>
    tpu.vector_store %arg5[%c0_28, %c0_29], %228 {strides = array<i32>} : memref<12x128xf32, #tpu.memory_space<vmem>>, vector<12x128xf32>,
    return
  }
  func.func @transform_0(%arg0: i32) -> (i32, i32) {
    %c0_i32 = arith.constant 0 : i32
    %c0_i32_0 = arith.constant 0 : i32
    %c0_i32_1 = arith.constant 0 : i32
    return %c0_i32, %c0_i32_0 : i32, i32
  }
  func.func @transform_1(%arg0: i32) -> (i32, i32) {
    %c0_i32 = arith.constant 0 : i32
    %c0_i32_0 = arith.constant 0 : i32
    %c0_i32_1 = arith.constant 0 : i32
    return %c0_i32, %c0_i32_0 : i32, i32
  }
  func.func @transform_2(%arg0: i32) -> (i32, i32) {
    %c0_i32 = arith.constant 0 : i32
    %c0_i32_0 = arith.constant 0 : i32
    %c0_i32_1 = arith.constant 0 : i32
    return %c0_i32, %c0_i32_0 : i32, i32
  }
  func.func @transform_3(%arg0: i32) -> (i32, i32) {
    %c0_i32 = arith.constant 0 : i32
    %c0_i32_0 = arith.constant 0 : i32
    %c0_i32_1 = arith.constant 0 : i32
    return %c0_i32, %c0_i32_0 : i32, i32
  }
  func.func @transform_4(%arg0: i32) -> (i32, i32) {
    %c0_i32 = arith.constant 0 : i32
    %c0_i32_0 = arith.constant 0 : i32
    %c0_i32_1 = arith.constant 0 : i32
    return %c0_i32, %c0_i32_0 : i32, i32
  }
}

</mosaic_0001>

<bundles_post_ra>
// kernel: cluster_model_forward_batched.1
= control target key start
LH: loop header
LB: loop body
LE: loop exit
PB: predicated region body
PF: predicated region fallthrough
CT: control target
= control target key end

     0   :  { %v7960_v0 = vmov 0   ;;  %v7966_v13 = vmov 1   ;;  %v43_v14 = vlaneseq  ;;  %v5355_v20 = vmov 0.0   ;;  %s5368_s13 = smov 124   ;;  %s5369_s14 = smov 20   ;;  %s7955_s0 = inlined_call_operand.vmem [shape: s32[96,1], index: 0, kind: input, shape index: {}]   ;;  %s7956_s2 = inlined_call_operand.vmem [shape: f32[12,12], index: 2, kind: input, shape index: {}]   ;;  %s7957_s1 = inlined_call_operand.vmem [shape: f32[96,12], index: 1, kind: input, shape index: {}]   ;;  %s7958_s3 = inlined_call_operand.vmem [shape: f32[80,32], index: 3, kind: input, shape index: {}]   ;;  %s7959_s4 = inlined_call_operand.vmem [shape: f32[12,128], index: 4, kind: output, shape index: {}]  }
   0x1   :  { %4847 = vset.pattern.permute.xlu1 %v7960_v0  ;;  %4846 = vset.pattern.permute.xlu0 %v7960_v0  ;;  %v28_v1 = vld [vmem:[%s7955_s0 + $0x58] sm:$0xff]  ;;  %v26_v2 = vld [vmem:[%s7955_s0 + $0x48] sm:$0xff]  ;;  %v27_v3 = vld [vmem:[%s7955_s0 + $0x50] sm:$0xff]  ;;  %v7962_v31 = vmov 3   ;;  %v5357_v39 = vmov 5   ;;  %v7964_v40 = vmov 2  }
   0x2   :  { %79 = vperm.xlu0 %4846, %v28_v1   ;;  %73 = vperm.xlu1 %4847, %v26_v2   ;;  %v25_v4 = vld [vmem:[%s7955_s0 + $0x40] sm:$0xff]  ;;  %v24_v5 = vld [vmem:[%s7955_s0 + $0x38] sm:$0xff]  ;;  %v23_v6 = vld [vmem:[%s7955_s0 + $0x30] sm:$0xff]  ;;  %v5463_v15 = vand.u32 127, %v43_v14  ;;  %v5359_v41 = vmov 6   ;;  %v5360_v42 = vmov 4  }
   0x3   :  { %v22_v7 = vld [vmem:[%s7955_s0 + $0x28] sm:$0xff]  ;;  %v21_v8 = vld [vmem:[%s7955_s0 + $0x20] sm:$0xff]  ;;  %v20_v9 = vld [vmem:[%s7955_s0 + $0x18] sm:$0xff]  ;;  %v5361_v43 = vmov 8   ;;  %v5362_v52 = vmov 7   ;;  %v7968_v54 = vmov 10  }
   0x4   :  { %v19_v10 = vld [vmem:[%s7955_s0 + $0x10] sm:$0xff]  ;;  %v18_v11 = vld [vmem:[%s7955_s0 + $0x8] sm:$0xff]  ;;  %v17_v12 = vld [vmem:[%s7955_s0] sm:$0xff]  ;;  %v5364_v55 = vmov 9   ;;  %v5365_v56 = vmov 11   ;;  %vm1512_vm12 = vcmask 31744  }
   0x5   :  { %s5367_s0 = smov 12   ;;  %vm1473_vm13 = vcmask 64512   ;;  %vm1486_vm14 = vcmask 130048   ;;  %vm1499_vm15 = vcmask 195584   ;;  %s5370_s15 = smov 127  }
   0x6   :  { %76 = vperm.xlu0 %4846, %v27_v3   ;;  %70 = vperm.xlu1 %4847, %v25_v4   ;;  %s5372_s16 = smov 105   ;;  %s5373_s17 = smov 106  }
   0x7   :  { %s5374_s18 = smov 107   ;;  %s5375_s19 = smov 97  }
   0x8   :  { %s5376_s20 = smov 98   ;;  %s5377_s21 = smov 99  }
   0x9   :  { %s5378_s22 = smov 100   ;;  %s5379_s23 = smov 101  }
   0xa   :  { %67 = vperm.xlu0 %4846, %v24_v5   ;;  %64 = vperm.xlu1 %4847, %v23_v6   ;;  %s5380_s24 = smov 102   ;;  %s5381_s25 = smov 103  }
   0xb   :  { %s5382_s26 = smov 96   ;;  %s5383_s27 = smov 120  }
   0xc   :  { %s5384_s28 = smov 119   ;;  %s5385_s29 = smov 118  }
   0xd   :  { %s5386_s30 = smov 117   ;;  %s5387_s5 = smov 125  }
   0xe   :  { %61 = vperm.xlu0 %4846, %v22_v7   ;;  %58 = vperm.xlu1 %4847, %v21_v8   ;;  %s5388_s6 = smov 126   ;;  %s5389_s7 = smov 122  }
   0xf   :  { %s5390_s8 = smov 123   ;;  %s5391_s9 = smov 121  }
  0x10   :  { %s5393_s10 = smov 95  }
  0x12   :  { %55 = vperm.xlu0 %4846, %v20_v9   ;;  %52 = vperm.xlu1 %4847, %v19_v10  }
  0x16   :  { %49 = vperm.xlu0 %4846, %v18_v11   ;;  %46 = vperm.xlu1 %4847, %v17_v12  }
  0x1a   :  { %4853 = vset.pattern.permute.xlu1 %v7966_v13 }
  0x7d   :  { %v80_v16 = vpop.permute.xlu0 %79  ;;  %v74_v17 = vpop.permute.xlu1 %73 }
  0x7e   :  { %vm92_vm0 = vcmp.eq.s32.totalorder %v80_v16, %v5463_v15  ;;  %vm90_vm2 = vcmp.eq.s32.totalorder %v74_v17, %v5463_v15 }
  0x7f   :  { %v5468_v21 = vsel %vm92_vm0, 1.0, %v5355_v20  ;;  %v5480_v26 = vsel %vm90_vm2, 1.0, %v5355_v20  ;;  %vm1549_vm0 = vcmask 261120   ;;  %vm1607_vm2 = vcmask 785408  }
  0x80   :  { %8052 = vst [vmem:[#allocation2_spill] sm:$0xff] %v5468_v21  ;;  %8054 = vst [vmem:[#allocation4_spill] sm:$0xff] %v5480_v26 }
  0x81   :  { %v77_v18 = vpop.permute.xlu0 %76  ;;  %v71_v19 = vpop.permute.xlu1 %70 }
  0x82   :  { %vm91_vm1 = vcmp.eq.s32.totalorder %v77_v18, %v5463_v15  ;;  %vm89_vm3 = vcmp.eq.s32.totalorder %v71_v19, %v5463_v15 }
  0x83   :  { %v5472_v22 = vsel %vm91_vm1, 1.0, %v5355_v20  ;;  %v5483_v27 = vsel %vm89_vm3, 1.0, %v5355_v20  ;;  %vm1562_vm1 = vcmask 269312   ;;  %vm4172_vm3 = vcmask 44048  }
  0x84   :  { %8053 = vst [vmem:[#allocation3_spill] sm:$0xff] %v5472_v22  ;;  %v5477_v23 = vpack.i.bf16 %v5472_v22, %v5468_v21  ;;  %8055 = vst [vmem:[#allocation5_spill] sm:$0xff] %v5483_v27  ;;  %v5491_v30 = vpack.i.bf16 %v5483_v27, %v5480_v26 }
  0x85   :  { %v68_v24 = vpop.permute.xlu0 %67  ;;  %v65_v25 = vpop.permute.xlu1 %64 }
  0x86   :  { %4849 = vperm.xlu0 %4846, %v5477_v23   ;;  %4855 = vperm.xlu1 %4853, %v5477_v23   ;;  %vm88_vm4 = vcmp.eq.s32.totalorder %v68_v24, %v5463_v15  ;;  %vm87_vm5 = vcmp.eq.s32.totalorder %v65_v25, %v5463_v15 }
  0x87   :  { %v5496_v32 = vsel %vm88_vm4, 1.0, %v5355_v20  ;;  %v5499_v33 = vsel %vm87_vm5, 1.0, %v5355_v20  ;;  %vm4168_vm4 = vcmask 48144  }
  0x88   :  { %8056 = vst [vmem:[#allocation6_spill] sm:$0xff] %v5496_v32  ;;  %8057 = vst [vmem:[#allocation7_spill] sm:$0xff] %v5499_v33  ;;  %v5507_v36 = vpack.i.bf16 %v5499_v33, %v5496_v32  ;;  %v8080_v33 = vmov 10  }
  0x89   :  { %v62_v28 = vpop.permute.xlu0 %61  ;;  %v59_v29 = vpop.permute.xlu1 %58 }
  0x8a   :  { %4871 = vset.pattern.permute.xlu0 %v7962_v31  ;;  %4859 = vset.pattern.permute.xlu1 %v7960_v0  ;;  %vm86_vm8 = vcmp.eq.s32.totalorder %v62_v28, %v5463_v15  ;;  %vm85_vm9 = vcmp.eq.s32.totalorder %v59_v29, %v5463_v15 }
  0x8b   :  { %4873 = vperm.xlu0 %4871, %v5477_v23   ;;  %4861 = vperm.xlu1 %4859, %v5491_v30   ;;  %v5536_v44 = vsel %vm86_vm8, 1.0, %v5355_v20  ;;  %v5539_v45 = vsel %vm85_vm9, 1.0, %v5355_v20  ;;  %vm4193_vm9 = vcmask 27648  }
  0x8c   :  { %8060 = vst [vmem:[#allocation10_spill] sm:$0xff] %v5536_v44  ;;  %8061 = vst [vmem:[#allocation11_spill] sm:$0xff] %v5539_v45  ;;  %v5545_v46 = vpack.i.bf16 %v5539_v45, %v5536_v44 }
  0x8d   :  { %v56_v34 = vpop.permute.xlu0 %55  ;;  %v53_v35 = vpop.permute.xlu1 %52 }
  0x8e   :  { %vm84_vm6 = vcmp.eq.s32.totalorder %v56_v34, %v5463_v15  ;;  %vm83_vm7 = vcmp.eq.s32.totalorder %v53_v35, %v5463_v15 }
  0x8f   :  { %v5510_v37 = vsel %vm84_vm6, 1.0, %v5355_v20  ;;  %v5513_v38 = vsel %vm83_vm7, 1.0, %v5355_v20  ;;  %4889 = vset.pattern.permute.xlu0 %v7960_v0  ;;  %4865 = vset.pattern.permute.xlu1 %v7966_v13 }
  0x90   :  { %8058 = vst [vmem:[#allocation8_spill] sm:$0xff] %v5510_v37  ;;  %8059 = vst [vmem:[#allocation9_spill] sm:$0xff] %v5513_v38  ;;  %4891 = vperm.xlu0 %4889, %v5507_v36   ;;  %4867 = vperm.xlu1 %4865, %v5491_v30   ;;  %v5585_v53 = vpack.i.bf16 %v5513_v38, %v5510_v37 }
  0x91   :  { %v50_v47 = vpop.permute.xlu0 %49  ;;  %v47_v48 = vpop.permute.xlu1 %46 }
  0x92   :  { %vm82_vm10 = vcmp.eq.s32.totalorder %v50_v47, %v5463_v15  ;;  %vm81_vm11 = vcmp.eq.s32.totalorder %v47_v48, %v5463_v15  ;;  %v5746_v48 = vshrl.u32 %v43_v14, 7 }
  0x93   :  { %v5556_v49 = vsel %vm82_vm10, 1.0, %v5355_v20  ;;  %v5559_v50 = vsel %vm81_vm11, 1.0, %v5355_v20 }
  0x94   :  { %4907 = vset.pattern.permute.xlu0 %v5357_v39  ;;  %4877 = vset.pattern.permute.xlu1 %v7964_v40  ;;  %8062 = vst [vmem:[#allocation12_spill] sm:$0xff] %v5556_v49  ;;  %8063 = vst [vmem:[#allocation13_spill] sm:$0xff] %v5559_v50  ;;  %v5565_v51 = vpack.i.bf16 %v5559_v50, %v5556_v49  ;;  %v5788_v44 = vsub.s32 2, %v5746_v48 }
  0x95   :  { %4909 = vperm.xlu0 %4907, %v5477_v23   ;;  %4879 = vperm.xlu1 %4877, %v5491_v30   ;;  %8073 = vst [vmem:[#allocation23_spill] sm:$0xff] %v5746_v48 }
  0x96   :  { %8081 = vst [vmem:[#allocation30_spill] sm:$0xff] %v5788_v44 }
  0x99   :  { %4925 = vset.pattern.permute.xlu0 %v5359_v41  ;;  %4883 = vset.pattern.permute.xlu1 %v5360_v42 }
  0x9a   :  { %4927 = vperm.xlu0 %4925, %v5477_v23   ;;  %4885 = vperm.xlu1 %4883, %v5477_v23  }
  0x9e   :  { %4943 = vset.pattern.permute.xlu0 %v7962_v31  ;;  %4895 = vset.pattern.permute.xlu1 %v7966_v13 }
  0x9f   :  { %4945 = vperm.xlu0 %4943, %v5507_v36   ;;  %4897 = vperm.xlu1 %4895, %v5507_v36  }
  0xa3   :  { %4973 = vset.pattern.permute.xlu0 %v5361_v43  ;;  %4901 = vset.pattern.permute.xlu1 %v7962_v31 }
  0xa4   :  { %4975 = vperm.xlu0 %4973, %v5477_v23   ;;  %4903 = vperm.xlu1 %4901, %v5491_v30  }
  0xa8   :  { %4991 = vset.pattern.permute.xlu0 %v7962_v31  ;;  %4913 = vset.pattern.permute.xlu1 %v7964_v40 }
  0xa9   :  { %4993 = vperm.xlu0 %4991, %v5545_v46   ;;  %4915 = vperm.xlu1 %4913, %v5507_v36  }
  0xad   :  { %5021 = vset.pattern.permute.xlu0 %v5359_v41  ;;  %4919 = vset.pattern.permute.xlu1 %v5360_v42 }
  0xae   :  { %5023 = vperm.xlu0 %5021, %v5507_v36   ;;  %4921 = vperm.xlu1 %4919, %v5491_v30  }
  0xb2   :  { %5039 = vset.pattern.permute.xlu0 %v7960_v0  ;;  %4931 = vset.pattern.permute.xlu1 %v7960_v0 }
  0xb3   :  { %4933 = vperm.xlu1 %4931, %v5545_v46   ;;  %5041 = vperm.xlu0 %5039, %v5565_v51  }
  0xb7   :  { %4937 = vset.pattern.permute.xlu1 %v7966_v13  ;;  %5057 = vset.pattern.permute.xlu0 %v5357_v39 }
  0xb8   :  { %4939 = vperm.xlu1 %4937, %v5545_v46   ;;  %5059 = vperm.xlu0 %5057, %v5545_v46  }
  0xbc   :  { %4949 = vset.pattern.permute.xlu1 %v5357_v39  ;;  %5087 = vset.pattern.permute.xlu0 %v5359_v41 }
  0xbd   :  { %4951 = vperm.xlu1 %4949, %v5491_v30   ;;  %5089 = vperm.xlu0 %5087, %v5545_v46  }
  0xc1   :  { %4955 = vset.pattern.permute.xlu1 %v5362_v52  ;;  %5105 = vset.pattern.permute.xlu0 %v7962_v31 }
  0xc2   :  { %4957 = vperm.xlu1 %4955, %v5477_v23   ;;  %5107 = vperm.xlu0 %5105, %v5565_v51  }
  0xc6   :  { %4961 = vset.pattern.permute.xlu1 %v5360_v42  ;;  %5135 = vset.pattern.permute.xlu0 %v5359_v41 }
  0xc7   :  { %4963 = vperm.xlu1 %4961, %v5507_v36   ;;  %5137 = vperm.xlu0 %5135, %v5585_v53  }
  0xcb   :  { %4967 = vset.pattern.permute.xlu1 %v5359_v41  ;;  %5153 = vset.pattern.permute.xlu0 %v5357_v39 }
  0xcc   :  { %4969 = vperm.xlu1 %4967, %v5491_v30   ;;  %5155 = vperm.xlu0 %5153, %v5565_v51  }
  0xd0   :  { %4979 = vset.pattern.permute.xlu1 %v7960_v0  ;;  %5183 = vset.pattern.permute.xlu0 %v7968_v54  ;;  %v5755_v0 = vsub.s32 0, %v5746_v48 }
  0xd1   :  { %4981 = vperm.xlu1 %4979, %v5585_v53   ;;  %5185 = vperm.xlu0 %5183, %v5545_v46  }
  0xd2   :  { %8075 = vst [vmem:[#allocation25_spill] sm:$0xff] %v5755_v0 }
  0xd5   :  { %4985 = vset.pattern.permute.xlu1 %v7966_v13  ;;  %5189 = vset.pattern.permute.xlu0 %v5364_v55 }
  0xd6   :  { %4987 = vperm.xlu1 %4985, %v5585_v53   ;;  %5191 = vperm.xlu0 %5189, %v5477_v23  }
  0xda   :  { %4997 = vset.pattern.permute.xlu1 %v5357_v39  ;;  %5196 = vperm.xlu0 %5189, %v5507_v36  }
  0xdb   :  { %4999 = vperm.xlu1 %4997, %v5507_v36  }
  0xde   :  { %5225 = vperm.xlu0 %5189, %v5565_v51  }
  0xdf   :  { %5003 = vset.pattern.permute.xlu1 %v5362_v52 }
  0xe0   :  { %5005 = vperm.xlu1 %5003, %v5491_v30  }
  0xe2   :  { %5229 = vset.pattern.permute.xlu0 %v5365_v56 }
  0xe3   :  { %5231 = vperm.xlu0 %5229, %v5477_v23  }
  0xe4   :  { %5009 = vset.pattern.permute.xlu1 %v7964_v40 }
  0xe5   :  { %5011 = vperm.xlu1 %5009, %v5585_v53  }
  0xe7   :  { %5236 = vperm.xlu0 %5229, %v5507_v36  }
  0xe9   :  { %5015 = vset.pattern.permute.xlu1 %v5360_v42 }
  0xea   :  { %5017 = vperm.xlu1 %5015, %v5545_v46  }
  0xeb   :  { %5241 = vperm.xlu0 %5229, %v5545_v46  }
  0xee   :  { %5027 = vset.pattern.permute.xlu1 %v5361_v43 }
  0xef   :  { %5029 = vperm.xlu1 %5027, %v5491_v30   ;;  %5258 = vperm.xlu0 %5229, %v5565_v51  }
  0xf3   :  { %5033 = vset.pattern.permute.xlu1 %v7968_v54  ;;  %5262 = vset.pattern.permute.xlu0 %v7964_v40 }
  0xf4   :  { %5035 = vperm.xlu1 %5033, %v5477_v23   ;;  %5264 = vperm.xlu0 %5262, %v5477_v23  }
  0xf8   :  { %5045 = vset.pattern.permute.xlu1 %v7966_v13  ;;  %5269 = vperm.xlu0 %5262, %v5545_v46  }
  0xf9   :  { %5047 = vperm.xlu1 %5045, %v5565_v51  }
  0xfd   :  { %5051 = vset.pattern.permute.xlu1 %v7962_v31  ;;  %v41_v31 = vld [vmem:[%s7956_s2] sm:$0xff] }
  0xfe   :  { %5053 = vperm.xlu1 %5051, %v5585_v53   ;;  %v5770_v13 = vrot.slane %v41_v31, %v5755_v0 }
 0x101   :  { %v5629_v57 = vpop.permute.xlu0 %4849  ;;  %v5631_v58 = vpop.permute.xlu1 %4855 }
 0x102   :  { %5063 = vset.pattern.permute.xlu1 %v5362_v52  ;;  %v4852_v21 = vunpack.i.h.bf16 %v5629_v57  ;;  %v4851_v22 = vunpack.i.l.bf16 %v5629_v57  ;;  %v4858_v26 = vunpack.i.h.bf16 %v5631_v58  ;;  %v4857_v27 = vunpack.i.l.bf16 %v5631_v58 }
 0x103   :  { %5065 = vperm.xlu1 %5063, %v5507_v36  }
 0x104   :  { %v179_v57 = vmul.f32 %v4852_v21, %v5770_v13  ;;  %v180_v58 = vmul.f32 %v4851_v22, %v5770_v13  ;;  %v5805_v21 = vrot.slane %v41_v31, %v5788_v44 }
 0x106   :  { %v5635_v59 = vpop.permute.xlu0 %4873  ;;  %v5637_v60 = vpop.permute.xlu1 %4861 }
 0x107   :  { %5069 = vset.pattern.permute.xlu1 %v5364_v55 }
 0x108   :  { %5071 = vperm.xlu1 %5069, %v5491_v30  }
 0x10b   :  { %v5641_v61 = vpop.permute.xlu0 %4891  ;;  %v5643_v62 = vpop.permute.xlu1 %4867 }
 0x10c   :  { %5075 = vset.pattern.permute.xlu1 %v7964_v40 }
 0x10d   :  { %5077 = vperm.xlu1 %5075, %v5565_v51  }
 0x110   :  { %v5647_v63 = vpop.permute.xlu0 %4909  ;;  %v5649_v1 = vpop.permute.xlu1 %4879 }
 0x111   :  { %5081 = vset.pattern.permute.xlu1 %v5360_v42 }
 0x112   :  { %5083 = vperm.xlu1 %5081, %v5585_v53  }
 0x115   :  { %v5653_v2 = vpop.permute.xlu0 %4927  ;;  %v5655_v3 = vpop.permute.xlu1 %4885 }
 0x116   :  { %5093 = vset.pattern.permute.xlu1 %v5361_v43  ;;  %v4888_v50 = vunpack.i.h.bf16 %v5655_v3 }
 0x117   :  { %5095 = vperm.xlu1 %5093, %v5507_v36  }
 0x11a   :  { %v5659_v4 = vpop.permute.xlu0 %4945  ;;  %v5661_v5 = vpop.permute.xlu1 %4897 }
 0x11b   :  { %5099 = vset.pattern.permute.xlu1 %v7968_v54 }
 0x11c   :  { %5101 = vperm.xlu1 %5099, %v5491_v30  }
 0x11f   :  { %v5665_v6 = vpop.permute.xlu0 %4975  ;;  %v5667_v7 = vpop.permute.xlu1 %4903 }
 0x120   :  { %5111 = vset.pattern.permute.xlu1 %v5357_v39 }
 0x121   :  { %5113 = vperm.xlu1 %5111, %v5585_v53  }
 0x124   :  { %v5671_v8 = vpop.permute.xlu0 %4993  ;;  %v5673_v9 = vpop.permute.xlu1 %4915 }
 0x125   :  { %5117 = vset.pattern.permute.xlu1 %v5362_v52 }
 0x126   :  { %5119 = vperm.xlu1 %5117, %v5545_v46  }
 0x129   :  { %v5677_v10 = vpop.permute.xlu0 %5023  ;;  %v5679_v11 = vpop.permute.xlu1 %4921 }
 0x12a   :  { %5123 = vset.pattern.permute.xlu1 %v5365_v56 }
 0x12b   :  { %5125 = vperm.xlu1 %5123, %v5491_v30  }
 0x12e   :  { %v5683_v12 = vpop.permute.xlu0 %5041  ;;  %v5685_v15 = vpop.permute.xlu1 %4933 }
 0x12f   :  { %8064 = vst [vmem:[#allocation14_spill] sm:$0xff] %v5683_v12  ;;  %5129 = vset.pattern.permute.xlu1 %v5360_v42 }
 0x130   :  { %5131 = vperm.xlu1 %5129, %v5565_v51  }
 0x133   :  { %v5689_v16 = vpop.permute.xlu0 %5059  ;;  %v5691_v17 = vpop.permute.xlu1 %4939 }
 0x134   :  { %5141 = vset.pattern.permute.xlu1 %v5361_v43 }
 0x135   :  { %5143 = vperm.xlu1 %5141, %v5545_v46  }
 0x138   :  { %v5695_v18 = vpop.permute.xlu0 %5089  ;;  %v5697_v19 = vpop.permute.xlu1 %4951 }
 0x139   :  { %8065 = vst [vmem:[#allocation15_spill] sm:$0xff] %v5695_v18  ;;  %5147 = vset.pattern.permute.xlu1 %v7968_v54 }
 0x13a   :  { %5149 = vperm.xlu1 %5147, %v5507_v36  }
 0x13d   :  { %v5701_v20 = vpop.permute.xlu0 %5107  ;;  %v5703_v23 = vpop.permute.xlu1 %4957 }
 0x13e   :  { %8066 = vst [vmem:[#allocation16_spill] sm:$0xff] %v5701_v20  ;;  %5159 = vset.pattern.permute.xlu1 %v5362_v52 }
 0x13f   :  { %5161 = vperm.xlu1 %5159, %v5585_v53  }
 0x142   :  { %v5707_v24 = vpop.permute.xlu0 %5137  ;;  %v5709_v25 = vpop.permute.xlu1 %4963 }
 0x143   :  { %8067 = vst [vmem:[#allocation17_spill] sm:$0xff] %v5707_v24  ;;  %5165 = vset.pattern.permute.xlu1 %v5364_v55  ;;  %v4887_v24 = vunpack.i.l.bf16 %v5655_v3 }
 0x144   :  { %5167 = vperm.xlu1 %5165, %v5545_v46  }
 0x147   :  { %v5713_v28 = vpop.permute.xlu0 %5155  ;;  %v5715_v29 = vpop.permute.xlu1 %4969 }
 0x148   :  { %8068 = vst [vmem:[#allocation18_spill] sm:$0xff] %v5713_v28  ;;  %5171 = vset.pattern.permute.xlu1 %v5359_v41 }
 0x149   :  { %5173 = vperm.xlu1 %5171, %v5565_v51  }
 0x14c   :  { %v5719_v30 = vpop.permute.xlu0 %5185  ;;  %v5721_v34 = vpop.permute.xlu1 %4981 }
 0x14d   :  { %8069 = vst [vmem:[#allocation19_spill] sm:$0xff] %v5719_v30  ;;  %8070 = vst [vmem:[#allocation20_spill] sm:$0xff] %v5721_v34  ;;  %5177 = vset.pattern.permute.xlu1 %v5361_v43  ;;  %v8083_v34 = vsub.s32 4, %v5746_v48 }
 0x14e   :  { %5179 = vperm.xlu1 %5177, %v5585_v53  }
 0x151   :  { %v5725_v35 = vpop.permute.xlu0 %5191  ;;  %v5727_v36 = vpop.permute.xlu1 %4987 }
 0x152   :  { %8071 = vst [vmem:[#allocation21_spill] sm:$0xff] %v5727_v36  ;;  %5200 = vset.pattern.permute.xlu1 %v5362_v52  ;;  %v5811_v36 = vrot.slane %v41_v31, %v8083_v34 }
 0x153   :  { %5202 = vperm.xlu1 %5200, %v5565_v51  }
 0x154   :  { %v471_v30 = vmul.f32 %v4888_v50, %v5811_v36  ;;  %v4959_v50 = vunpack.i.l.bf16 %v5703_v23 }
 0x155   :  { %v5731_v39 = vpop.permute.xlu0 %5196 }
 0x156   :  { %v5733_v41 = vpop.permute.xlu1 %4999 }
 0x157   :  { %5206 = vset.pattern.permute.xlu1 %v5364_v55 }
 0x158   :  { %5208 = vperm.xlu1 %5206, %v5585_v53  }
 0x159   :  { %v5737_v42 = vpop.permute.xlu0 %5225 }
 0x15a   :  { %8072 = vst [vmem:[#allocation22_spill] sm:$0xff] %v5737_v42 }
 0x15b   :  { %v5739_v46 = vpop.permute.xlu1 %5005 }
 0x15c   :  { %5212 = vset.pattern.permute.xlu1 %v5361_v43  ;;  %v5758_v43 = vsub.s32 1, %v5746_v48 }
 0x15d   :  { %5214 = vperm.xlu1 %5212, %v5565_v51  }
 0x15e   :  { %v5743_v47 = vpop.permute.xlu0 %5231  ;;  %8076 = vst [vmem:[#allocation26_spill] sm:$0xff] %v5758_v43 }
 0x160   :  { %v5748_v52 = vpop.permute.xlu1 %5011 }
 0x161   :  { %8074 = vst [vmem:[#allocation24_spill] sm:$0xff] %v5748_v52  ;;  %5218 = vset.pattern.permute.xlu1 %v7968_v54  ;;  %v5773_v54 = vrot.slane %v41_v31, %v5758_v43 }
 0x162   :  { %5220 = vperm.xlu1 %5218, %v5585_v53   ;;  %v5752_v55 = vpop.permute.xlu0 %5236 }
 0x163   :  { %v243_v37 = vmul.f32 %v4858_v26, %v5773_v54  ;;  %v244_v38 = vmul.f32 %v4857_v27, %v5773_v54  ;;  %v8082_v26 = vmov 1  }
 0x165   :  { %v5763_v14 = vpop.permute.xlu1 %5017  ;;  %v255_v27 = vadd.f32 %v243_v37, %v179_v57  ;;  %v256_v28 = vadd.f32 %v244_v38, %v180_v58  ;;  %v4912_v38 = vunpack.i.h.bf16 %v5647_v63  ;;  %v4911_v58 = vunpack.i.l.bf16 %v5647_v63  ;;  %v42_v63 = vld [vmem:[%s7956_s2 + $0x8] sm:$0xf]  ;;  %s5371_s2 = smov 104  }
 0x166   :  { %5245 = vset.pattern.permute.xlu1 %v5365_v56  ;;  %v5766_v40 = vpop.permute.xlu0 %5241  ;;  %v472_v57 = vmul.f32 %v4887_v24, %v5811_v36  ;;  %v5848_v18 = vrot.slane %v42_v63, %v5755_v0 }
 0x167   :  { %8077 = vst [vmem:[#allocation27_spill] sm:$0xff] %v5766_v40  ;;  %5247 = vperm.xlu1 %5245, %v5585_v53   ;;  %v5784_v53 = vsub.s32 3, %v5746_v48  ;;  %v8084_v40 = vsub.s32 5, %v5746_v48 }
 0x169   :  { %8079 = vst [vmem:[#allocation29_spill] sm:$0xff] %v5784_v53  ;;  %v5797_v49 = vrot.slane %v41_v31, %v5784_v53  ;;  %v5820_v37 = vrot.slane %v41_v31, %v8084_v40  ;;  %v4929_v40 = vunpack.i.l.bf16 %v5653_v2 }
 0x16a   :  { %v5779_v32 = vpop.permute.xlu0 %5258  ;;  %v5781_v56 = vpop.permute.xlu1 %5029 }
 0x16b   :  { %8078 = vst [vmem:[#allocation28_spill] sm:$0xff] %v5779_v32  ;;  %5251 = vset.pattern.permute.xlu1 %v8080_v33  ;;  %v4876_v33 = vunpack.i.h.bf16 %v5635_v59 }
 0x16c   :  { %5253 = vperm.xlu1 %5251, %v5565_v51   ;;  %v4875_v51 = vunpack.i.l.bf16 %v5635_v59 }
 0x16e   :  { %v396_v34 = vmul.f32 %v4875_v51, %v5797_v49 }
 0x16f   :  { %v5265_v32 = vpop.permute.xlu0 %5264  ;;  %v5801_v42 = vpop.permute.xlu1 %5035 }
 0x170   :  { %v5267_v22 = vunpack.i.h.bf16 %v5265_v32  ;;  %v5266_v45 = vunpack.i.l.bf16 %v5265_v32  ;;  %5273 = vset.pattern.permute.xlu1 %v8082_v26  ;;  %v395_v32 = vmul.f32 %v4876_v33, %v5797_v49  ;;  %v4930_v33 = vunpack.i.h.bf16 %v5653_v2 }
 0x171   :  { %v548_v2 = vmul.f32 %v4911_v58, %v5820_v37 }
 0x172   :  { %v319_v59 = vmul.f32 %v5267_v22, %v5805_v21  ;;  %v320_v20 = vmul.f32 %v5266_v45, %v5805_v21  ;;  %v8086_v45 = vsub.s32 6, %v5746_v48 }
 0x174   :  { %v331_v52 = vadd.f32 %v319_v59, %v255_v27  ;;  %v332_v3 = vadd.f32 %v320_v20, %v256_v28  ;;  %v5826_v12 = vpop.permute.xlu1 %5047  ;;  %v5830_v22 = vrot.slane %v41_v31, %v8086_v45  ;;  %v547_v28 = vmul.f32 %v4912_v38, %v5820_v37 }
 0x175   :  { %8085 = vst [vmem:[#allocation31_spill] sm:$0xff] %v5826_v12  ;;  %v8087_v27 = vsub.s32 7, %v5746_v48  ;;  %v4960_v45 = vunpack.i.h.bf16 %v5703_v23  ;;  %v5858_v23 = vrot.slane %v42_v63, %v5758_v43 }
 0x176   :  { %v407_v51 = vadd.f32 %v395_v32, %v331_v52  ;;  %v408_v20 = vadd.f32 %v396_v34, %v332_v3  ;;  %v4978_v52 = vunpack.i.h.bf16 %v5665_v6  ;;  %v4977_v32 = vunpack.i.l.bf16 %v5665_v6 }
 0x177   :  { %v5842_v59 = vrot.slane %v41_v31, %v8087_v27  ;;  %v623_v31 = vmul.f32 %v4930_v33, %v5830_v22  ;;  %v624_v34 = vmul.f32 %v4929_v40, %v5830_v22  ;;  %v5037_v40 = vunpack.i.l.bf16 %v5801_v42 }
 0x178   :  { %v483_v12 = vadd.f32 %v471_v30, %v407_v51  ;;  %v484_v24 = vadd.f32 %v472_v57, %v408_v20  ;;  %v5194_v30 = vunpack.i.h.bf16 %v5725_v35  ;;  %v5193_v51 = vunpack.i.l.bf16 %v5725_v35 }
 0x179   :  { %v5852_v38 = vpop.permute.xlu1 %5053  ;;  %v699_v58 = vmul.f32 %v4960_v45, %v5842_v59  ;;  %v700_v57 = vmul.f32 %v4959_v50, %v5842_v59  ;;  %v775_v48 = vmul.f32 %v4978_v52, %v5848_v18  ;;  %v776_v33 = vmul.f32 %v4977_v32, %v5848_v18 }
 0x17a   :  { %v559_v3 = vadd.f32 %v547_v28, %v483_v12  ;;  %v560_v27 = vadd.f32 %v548_v2, %v484_v24  ;;  %v5038_v12 = vunpack.i.h.bf16 %v5801_v42  ;;  %v5870_v24 = vrot.slane %v42_v63, %v5788_v44 }
 0x17b   :  { %v851_v50 = vmul.f32 %v5194_v30, %v5858_v23  ;;  %v5874_v35 = vrot.slane %v42_v63, %v5784_v53  ;;  %v852_v52 = vmul.f32 %v5193_v51, %v5858_v23  ;;  %v5233_v32 = vunpack.i.l.bf16 %v5743_v47  ;;  %v40_v51 = vld [vmem:[%s7957_s1 + $0x58] sm:$0xff] }
 0x17c   :  { %v635_v6 = vadd.f32 %v623_v31, %v559_v3  ;;  %v636_v20 = vadd.f32 %v624_v34, %v560_v27  ;;  %v5234_v42 = vunpack.i.h.bf16 %v5743_v47  ;;  %v927_v3 = vmul.f32 %v5038_v12, %v5870_v24 }
 0x17d   :  { %v1004_v30 = vmul.f32 %v5233_v32, %v5874_v35  ;;  %v4864_v32 = vunpack.i.h.bf16 %v5637_v60  ;;  %v4948_v44 = vunpack.i.h.bf16 %v5659_v4 }
 0x17e   :  { %v711_v28 = vadd.f32 %v699_v58, %v635_v6  ;;  %v712_v45 = vadd.f32 %v700_v57, %v636_v20  ;;  %v5867_v2 = vpop.permute.xlu1 %5065  ;;  %v928_v57 = vmul.f32 %v5037_v40, %v5870_v24  ;;  %v39_v40 = vld [vmem:[%s7957_s1 + $0x50] sm:$0xff] }
 0x180   :  { %v787_v31 = vadd.f32 %v775_v48, %v711_v28  ;;  %v788_v34 = vadd.f32 %v776_v33, %v712_v45  ;;  %v1003_v48 = vmul.f32 %v5234_v42, %v5874_v35  ;;  %v4894_v42 = vunpack.i.h.bf16 %v5641_v61 }
 0x182   :  { %v863_v27 = vadd.f32 %v851_v50, %v787_v31  ;;  %v864_v58 = vadd.f32 %v852_v52, %v788_v34  ;;  %v4870_v52 = vunpack.i.h.bf16 %v5643_v62  ;;  %v4863_v31 = vunpack.i.l.bf16 %v5637_v60 }
 0x183   :  { %v5881_v6 = vpop.permute.xlu1 %5071  ;;  %v4869_v34 = vunpack.i.l.bf16 %v5643_v62  ;;  %v4917_v60 = vunpack.i.l.bf16 %v5673_v9  ;;  %v8092_v62 = vmov 2  }
 0x184   :  { %v939_v63 = vadd.f32 %v927_v3, %v863_v27  ;;  %v940_v20 = vadd.f32 %v928_v57, %v864_v58  ;;  %v4900_v3 = vunpack.i.h.bf16 %v5661_v5  ;;  %v4899_v27 = vunpack.i.l.bf16 %v5661_v5 }
 0x185   :  { %v4893_v58 = vunpack.i.l.bf16 %v5641_v61  ;;  %v4882_v57 = vunpack.i.h.bf16 %v5649_v1  ;;  %v178_v5 = vmul.f32 %v4863_v31, %v5770_v13  ;;  %v242_v61 = vmul.f32 %v4869_v34, %v5773_v54 }
 0x186   :  { %v1016_v33 = vadd.f32 %v1004_v30, %v940_v20  ;;  %v1015_v47 = vadd.f32 %v1003_v48, %v939_v63  ;;  %v4881_v30 = vunpack.i.l.bf16 %v5649_v1  ;;  %v241_v63 = vmul.f32 %v4870_v52, %v5773_v54 }
 0x187   :  { %v4918_v20 = vunpack.i.h.bf16 %v5673_v9  ;;  %v177_v48 = vmul.f32 %v4864_v32, %v5770_v13  ;;  %v175_v1 = vmul.f32 %v4894_v42, %v5770_v13  ;;  %v240_v9 = vmul.f32 %v4899_v27, %v5773_v54 }
 0x188   :  { %v5888_v28 = vsub.f32 %v40_v51, %v1016_v33  ;;  %v5890_v12 = vpop.permute.xlu1 %5077  ;;  %v5897_v45 = vsub.f32 %v39_v40, %v1015_v47  ;;  %v4905_v33 = vunpack.i.l.bf16 %v5667_v7  ;;  %v239_v47 = vmul.f32 %v4900_v3, %v5773_v54 }
 0x189   :  { %8089 = vst [vmem:[#allocation33_spill] sm:$0xff] %v5890_v12  ;;  %v4906_v40 = vunpack.i.h.bf16 %v5667_v7  ;;  %v176_v52 = vmul.f32 %v4893_v58, %v5770_v13  ;;  %v317_v32 = vmul.f32 %v4882_v57, %v5805_v21  ;;  %v318_v31 = vmul.f32 %v4881_v30, %v5805_v21 }
 0x18a   :  { %8088 = vst [vmem:[#allocation32_spill] sm:$0xff] %v5888_v28  ;;  %1206 = vperm.xlu0 %5262, %v5888_v28   ;;  %1146 = vperm.xlu1 %5273, %v5888_v28   ;;  %8090 = vst [vmem:[#allocation34_spill] sm:$0xff] %v5897_v45  ;;  %v4923_v34 = vunpack.i.l.bf16 %v5679_v11  ;;  %v253_v53 = vadd.f32 %v241_v63, %v177_v48  ;;  %v315_v43 = vmul.f32 %v4918_v20, %v5805_v21  ;;  %v8093_v57 = vmov 3  }
 0x18b   :  { %v316_v42 = vmul.f32 %v4917_v60, %v5805_v21  ;;  %v254_v3 = vadd.f32 %v242_v61, %v178_v5  ;;  %v4947_v27 = vunpack.i.l.bf16 %v5659_v4  ;;  %v394_v7 = vmul.f32 %v4905_v33, %v5797_v49 }
 0x18c   :  { %v4953_v58 = vunpack.i.l.bf16 %v5697_v19  ;;  %v251_v30 = vadd.f32 %v239_v47, %v175_v1  ;;  %v252_v28 = vadd.f32 %v240_v9, %v176_v52  ;;  %v393_v63 = vmul.f32 %v4906_v40, %v5797_v49 }
 0x18d   :  { %v5899_v50 = vpop.permute.xlu1 %5083  ;;  %v4924_v48 = vunpack.i.h.bf16 %v5679_v11  ;;  %v329_v20 = vadd.f32 %v317_v32, %v253_v53  ;;  %v330_v60 = vadd.f32 %v318_v31, %v254_v3  ;;  %v470_v4 = vmul.f32 %v4923_v34, %v5811_v36 }
 0x18e   :  { %8091 = vst [vmem:[#allocation35_spill] sm:$0xff] %v5899_v50  ;;  %1142 = vperm.xlu1 %5273, %v5897_v45   ;;  %5275 = vset.pattern.permute.xlu0 %v8082_v26  ;;  %v4971_v5 = vunpack.i.l.bf16 %v5715_v29  ;;  %v391_v61 = vmul.f32 %v4948_v44, %v5797_v49  ;;  %v327_v33 = vadd.f32 %v315_v43, %v251_v30  ;;  %v4954_v12 = vunpack.i.h.bf16 %v5697_v19 }
 0x18f   :  { %v328_v50 = vadd.f32 %v316_v42, %v252_v28  ;;  %v392_v1 = vmul.f32 %v4947_v27, %v5797_v49  ;;  %v406_v47 = vadd.f32 %v394_v7, %v330_v60  ;;  %v546_v9 = vmul.f32 %v4953_v58, %v5820_v37 }
 0x190   :  { %v5007_v11 = vunpack.i.l.bf16 %v5739_v46  ;;  %v405_v40 = vadd.f32 %v393_v63, %v329_v20  ;;  %v5026_v53 = vunpack.i.h.bf16 %v5677_v10  ;;  %v469_v52 = vmul.f32 %v4924_v48, %v5811_v36 }
 0x191   :  { %v4972_v32 = vunpack.i.h.bf16 %v5715_v29  ;;  %v5025_v44 = vunpack.i.l.bf16 %v5677_v10  ;;  %v482_v19 = vadd.f32 %v470_v4, %v406_v47  ;;  %v622_v43 = vmul.f32 %v4971_v5, %v5830_v22 }
 0x192   :  { %v5916_v51 = vpop.permute.xlu1 %5095  ;;  %5274 = vset.pattern.permute.xlu1 %v8092_v62  ;;  %v5031_v28 = vunpack.i.l.bf16 %v5781_v56  ;;  %v545_v34 = vmul.f32 %v4954_v12, %v5820_v37  ;;  %v403_v42 = vadd.f32 %v391_v61, %v327_v33  ;;  %v404_v3 = vadd.f32 %v392_v1, %v328_v50 }
 0x193   :  { %1202 = vperm.xlu1 %5274, %v5897_v45   ;;  %v5008_v27 = vunpack.i.h.bf16 %v5739_v46  ;;  %v558_v7 = vadd.f32 %v546_v9, %v482_v19  ;;  %v4966_v29 = vunpack.i.h.bf16 %v5709_v25  ;;  %v698_v58 = vmul.f32 %v5007_v11, %v5842_v59 }
 0x194   :  { %v5073_v30 = vunpack.i.l.bf16 %v5881_v6  ;;  %v481_v63 = vadd.f32 %v469_v52, %v405_v40  ;;  %v4935_v48 = vunpack.i.l.bf16 %v5685_v15  ;;  %v621_v20 = vmul.f32 %v4972_v32, %v5830_v22 }
 0x195   :  { %v5032_v60 = vunpack.i.h.bf16 %v5781_v56  ;;  %v4965_v12 = vunpack.i.l.bf16 %v5709_v25  ;;  %v634_v4 = vadd.f32 %v622_v43, %v558_v7  ;;  %v774_v50 = vmul.f32 %v5031_v28, %v5848_v18  ;;  %v5978_v25 = vpop.permute.xlu0 %5269 }
 0x196   :  { %v4941_v61 = vunpack.i.l.bf16 %v5691_v17  ;;  %v557_v33 = vadd.f32 %v545_v34, %v481_v63  ;;  %v697_v1 = vmul.f32 %v5008_v27, %v5842_v59  ;;  %v5074_v47 = vunpack.i.h.bf16 %v5881_v6 }
 0x197   :  { %v5938_v0 = vpop.permute.xlu1 %5101  ;;  %5276 = vset.pattern.permute.xlu1 %v8093_v57  ;;  %v467_v9 = vmul.f32 %v4966_v29, %v5811_v36  ;;  %v5002_v56 = vunpack.i.h.bf16 %v5733_v41  ;;  %v710_v11 = vadd.f32 %v698_v58, %v634_v4  ;;  %v850_v40 = vmul.f32 %v5073_v30, %v5858_v23 }
 0x198   :  { %1262 = vperm.xlu1 %5276, %v5897_v45   ;;  %v5103_v46 = vunpack.i.l.bf16 %v5938_v0  ;;  %v633_v52 = vadd.f32 %v621_v20, %v557_v33  ;;  %v5001_v32 = vunpack.i.l.bf16 %v5733_v41  ;;  %v773_v19 = vmul.f32 %v5032_v60, %v5848_v18 }
 0x199   :  { %v5104_v43 = vunpack.i.h.bf16 %v5938_v0  ;;  %v174_v28 = vmul.f32 %v4935_v48, %v5770_v13  ;;  %v468_v6 = vmul.f32 %v4965_v12, %v5811_v36  ;;  %v786_v34 = vadd.f32 %v774_v50, %v710_v11 }
 0x19a   :  { %v926_v27 = vmul.f32 %v5103_v46, %v5870_v24  ;;  %v238_v7 = vmul.f32 %v4941_v61, %v5773_v54  ;;  %v709_v29 = vadd.f32 %v697_v1, %v633_v52  ;;  %v5271_v58 = vunpack.i.l.bf16 %v5978_v25 }
 0x19b   :  { %v849_v30 = vmul.f32 %v5074_v47, %v5858_v23  ;;  %v543_v41 = vmul.f32 %v5002_v56, %v5820_v37  ;;  %v862_v20 = vadd.f32 %v850_v40, %v786_v34  ;;  %v479_v4 = vadd.f32 %v467_v9, %v403_v42  ;;  %v38_v42 = vld [vmem:[%s7957_s1 + $0x48] sm:$0xff] }
 0x19c   :  { %v5954_v31 = vpop.permute.xlu1 %5113  ;;  %5277 = vset.pattern.permute.xlu1 %v8092_v62  ;;  %v544_v48 = vmul.f32 %v5001_v32, %v5820_v37  ;;  %v785_v12 = vadd.f32 %v773_v19, %v709_v29  ;;  %v925_v50 = vmul.f32 %v5104_v43, %v5870_v24  ;;  %v480_v46 = vadd.f32 %v468_v6, %v404_v3 }
 0x19d   :  { %v5068_v61 = vunpack.i.h.bf16 %v5867_v2  ;;  %v938_v33 = vadd.f32 %v926_v27, %v862_v20  ;;  %v314_v47 = vmul.f32 %v5271_v58, %v5805_v21  ;;  %v5067_v11 = vunpack.i.l.bf16 %v5867_v2 }
 0x19e   :  { %v861_v56 = vadd.f32 %v849_v30, %v785_v12  ;;  %v4995_v40 = vunpack.i.l.bf16 %v5671_v8  ;;  %v555_v52 = vadd.f32 %v543_v41, %v479_v4  ;;  %v5098_v3 = vunpack.i.h.bf16 %v5916_v51 }
 0x19f   :  { %v250_v43 = vadd.f32 %v238_v7, %v174_v28  ;;  %v556_v6 = vadd.f32 %v544_v48, %v480_v46  ;;  %v5097_v34 = vunpack.i.l.bf16 %v5916_v51  ;;  %v619_v27 = vmul.f32 %v5026_v53, %v5830_v22  ;;  %v37_v53 = vld [vmem:[%s7957_s1 + $0x40] sm:$0xff] }
 0x1a0   :  { %v937_v2 = vadd.f32 %v925_v50, %v861_v56  ;;  %v695_v29 = vmul.f32 %v5068_v61, %v5842_v59  ;;  %v620_v30 = vmul.f32 %v5025_v44, %v5830_v22  ;;  %v696_v41 = vmul.f32 %v5067_v11, %v5842_v59 }
 0x1a1   :  { %v5971_v5 = vpop.permute.xlu1 %5119  ;;  %v390_v7 = vmul.f32 %v4995_v40, %v5797_v49  ;;  %v4942_v51 = vunpack.i.h.bf16 %v5691_v17  ;;  %v631_v20 = vadd.f32 %v619_v27, %v555_v52  ;;  %v4936_v10 = vunpack.i.h.bf16 %v5685_v15 }
 0x1a2   :  { %v5019_v44 = vunpack.i.l.bf16 %v5763_v14  ;;  %v772_v4 = vmul.f32 %v5097_v34, %v5848_v18  ;;  %v5199_v17 = vunpack.i.h.bf16 %v5731_v39  ;;  %v5272_v12 = vunpack.i.h.bf16 %v5978_v25 }
 0x1a3   :  { %v707_v50 = vadd.f32 %v695_v29, %v631_v20  ;;  %v5198_v46 = vunpack.i.l.bf16 %v5731_v39  ;;  %v5061_v15 = vunpack.i.l.bf16 %v5689_v16  ;;  %v4996_v56 = vunpack.i.h.bf16 %v5671_v8  ;;  %v8096_v29 = vld [vmem:[#allocation15_spill] sm:$0xff] }
 0x1a4   :  { %v173_v25 = vmul.f32 %v4936_v10, %v5770_v13  ;;  %v5239_v40 = vunpack.i.h.bf16 %v5752_v55  ;;  %v5238_v52 = vunpack.i.l.bf16 %v5752_v55 }
 0x1a5   :  { %v848_v8 = vmul.f32 %v5198_v46, %v5858_v23  ;;  %v36_v46 = vld [vmem:[%s7957_s1 + $0x38] sm:$0xff] }
 0x1a6   :  { %v5126_v63 = vpop.permute.xlu1 %5125  ;;  %v1000_v20 = vmul.f32 %v5238_v52, %v5874_v35  ;;  %v8099_v52 = vld [vmem:[#allocation19_spill] sm:$0xff] }
 0x1a7   :  { %v5128_v60 = vunpack.i.h.bf16 %v5126_v63  ;;  %v5127_v0 = vunpack.i.l.bf16 %v5126_v63  ;;  %v326_v63 = vadd.f32 %v314_v47, %v250_v43  ;;  %v237_v47 = vmul.f32 %v4942_v51, %v5773_v54 }
 0x1a8   :  { %v999_v51 = vmul.f32 %v5239_v40, %v5874_v35 }
 0x1a9   :  { %v1002_v1 = vmul.f32 %v5127_v0, %v5874_v35  ;;  %v1001_v9 = vmul.f32 %v5128_v60, %v5874_v35  ;;  %v771_v60 = vmul.f32 %v5098_v3, %v5848_v18  ;;  %v632_v0 = vadd.f32 %v620_v30, %v556_v6 }
 0x1aa   :  { %v402_v61 = vadd.f32 %v390_v7, %v326_v63  ;;  %v313_v3 = vmul.f32 %v5272_v12, %v5805_v21  ;;  %v249_v27 = vadd.f32 %v237_v47, %v173_v25  ;;  %v5091_v30 = vunpack.i.l.bf16 %v8096_v29 }
 0x1ab   :  { %v1014_v32 = vadd.f32 %v1002_v1, %v938_v33  ;;  %v6003_v19 = vpop.permute.xlu1 %5131  ;;  %v1013_v28 = vadd.f32 %v1001_v9, %v937_v2  ;;  %v708_v33 = vadd.f32 %v696_v41, %v632_v0  ;;  %v783_v11 = vadd.f32 %v771_v60, %v707_v50  ;;  %v35_v50 = vld [vmem:[%s7957_s1 + $0x30] sm:$0xff] }
 0x1ac   :  { %v847_v9 = vmul.f32 %v5199_v17, %v5858_v23  ;;  %v542_v2 = vmul.f32 %v5061_v15, %v5820_v37  ;;  %v5121_v41 = vunpack.i.l.bf16 %v5971_v5  ;;  %v325_v60 = vadd.f32 %v313_v3, %v249_v27 }
 0x1ad   :  { %v6010_v58 = vsub.f32 %v38_v42, %v1014_v32  ;;  %v6032_v1 = vsub.f32 %v37_v53, %v1013_v28  ;;  %v466_v42 = vmul.f32 %v5019_v44, %v5811_v36  ;;  %v784_v39 = vadd.f32 %v772_v4, %v708_v33 }
 0x1ae   :  { %v859_v63 = vadd.f32 %v847_v9, %v783_v11  ;;  %v389_v17 = vmul.f32 %v4996_v56, %v5797_v49  ;;  %v618_v12 = vmul.f32 %v5091_v30, %v5830_v22  ;;  %v694_v33 = vmul.f32 %v5121_v41, %v5842_v59 }
 0x1af   :  { %8094 = vst [vmem:[#allocation36_spill] sm:$0xff] %v6010_v58  ;;  %1138 = vperm.xlu0 %5275, %v6010_v58   ;;  %1198 = vperm.xlu1 %5277, %v6010_v58   ;;  %8095 = vst [vmem:[#allocation37_spill] sm:$0xff] %v6032_v1  ;;  %v478_v43 = vadd.f32 %v466_v42, %v402_v61  ;;  %v860_v7 = vadd.f32 %v848_v8, %v784_v39  ;;  %v5020_v61 = vunpack.i.h.bf16 %v5763_v14 }
 0x1b0   :  { %v6027_v48 = vpop.permute.xlu1 %5143  ;;  %v401_v11 = vadd.f32 %v389_v17, %v325_v60  ;;  %v5062_v9 = vunpack.i.h.bf16 %v5689_v16  ;;  %v5187_v3 = vunpack.i.l.bf16 %v8099_v52  ;;  %v5092_v41 = vunpack.i.h.bf16 %v8096_v29 }
 0x1b1   :  { %v554_v53 = vadd.f32 %v542_v2, %v478_v43  ;;  %v5145_v10 = vunpack.i.l.bf16 %v6027_v48  ;;  %v465_v14 = vmul.f32 %v5020_v61, %v5811_v36  ;;  %v8100_v43 = vld [vmem:[#allocation14_spill] sm:$0xff]  ;;  %v8101_v2 = vld [vmem:[#allocation27_spill] sm:$0xff]  ;;  %v5122_v60 = vunpack.i.h.bf16 %v5971_v5 }
 0x1b2   :  { %v5243_v27 = vunpack.i.l.bf16 %v8101_v2  ;;  %v617_v61 = vmul.f32 %v5092_v41, %v5830_v22 }
 0x1b3   :  { %5280 = vset.pattern.permute.xlu0 %v8092_v62  ;;  %5278 = vset.pattern.permute.xlu1 %v8082_v26  ;;  %v630_v56 = vadd.f32 %v618_v12, %v554_v53  ;;  %v770_v25 = vmul.f32 %v5145_v10, %v5848_v18  ;;  %v477_v30 = vadd.f32 %v465_v14, %v401_v11  ;;  %v34_v11 = vld [vmem:[%s7957_s1 + $0x28] sm:$0xff] }
 0x1b4   :  { %1194 = vperm.xlu0 %5280, %v6032_v1   ;;  %1134 = vperm.xlu1 %5278, %v6032_v1   ;;  %v998_v12 = vmul.f32 %v5243_v27, %v5874_v35 }
 0x1b5   :  { %v5150_v32 = vpop.permute.xlu1 %5149 }
 0x1b6   :  { %v5152_v6 = vunpack.i.h.bf16 %v5150_v32  ;;  %v5151_v34 = vunpack.i.l.bf16 %v5150_v32  ;;  %v706_v32 = vadd.f32 %v694_v33, %v630_v56  ;;  %v8104_v56 = vld [vmem:[#allocation21_spill] sm:$0xff] }
 0x1b8   :  { %v923_v28 = vmul.f32 %v5152_v6, %v5870_v24  ;;  %v924_v55 = vmul.f32 %v5151_v34, %v5870_v24  ;;  %5279 = vset.pattern.permute.xlu1 %v8093_v57  ;;  %5283 = vset.pattern.permute.xlu0 %v8082_v26  ;;  %v5044_v6 = vunpack.i.h.bf16 %v8100_v43  ;;  %v5043_v34 = vunpack.i.l.bf16 %v8100_v43 }
 0x1b9   :  { %1258 = vperm.xlu1 %5279, %v6010_v58  }
 0x1ba   :  { %v935_v44 = vadd.f32 %v923_v28, %v859_v63  ;;  %v936_v0 = vadd.f32 %v924_v55, %v860_v7  ;;  %v6059_v4 = vpop.permute.xlu1 %5161  ;;  %v782_v63 = vadd.f32 %v770_v25, %v706_v32  ;;  %v8102_v28 = vld [vmem:[#allocation16_spill] sm:$0xff]  ;;  %v6100_v29 = vmul.f32 %v5043_v34, %v5770_v13 }
 0x1bb   :  { %v5110_v7 = vunpack.i.h.bf16 %v8102_v28  ;;  %v5109_v55 = vunpack.i.l.bf16 %v8102_v28  ;;  %v4990_v25 = vunpack.i.h.bf16 %v8104_v56  ;;  %v8106_v34 = vld [vmem:[#allocation24_spill] sm:$0xff] }
 0x1bc   :  { %v1011_v15 = vadd.f32 %v999_v51, %v935_v44  ;;  %v1012_v47 = vadd.f32 %v1000_v20, %v936_v0  ;;  %v541_v51 = vmul.f32 %v5062_v9, %v5820_v37  ;;  %v922_v20 = vmul.f32 %v5187_v3, %v5870_v24  ;;  %v8103_v0 = vld [vmem:[#allocation17_spill] sm:$0xff] }
 0x1bd   :  { %5281 = vset.pattern.permute.xlu1 %v8082_v26  ;;  %v6097_v44 = vmul.f32 %v5044_v6, %v5770_v13  ;;  %v5140_v17 = vunpack.i.h.bf16 %v8103_v0  ;;  %v6108_v33 = vmul.f32 %v5110_v7, %v5797_v49  ;;  %v693_v9 = vmul.f32 %v5122_v60, %v5842_v59 }
 0x1be   :  { %v6073_v42 = vsub.f32 %v35_v50, %v1011_v15  ;;  %v6075_v39 = vsub.f32 %v36_v46, %v1012_v47  ;;  %v553_v5 = vadd.f32 %v541_v51, %v477_v30  ;;  %v5146_v50 = vunpack.i.h.bf16 %v6027_v48 }
 0x1bf   :  { %v5168_v40 = vpop.permute.xlu1 %5167  ;;  %v6111_v15 = vmul.f32 %v5109_v55, %v5797_v49  ;;  %v5188_v47 = vunpack.i.h.bf16 %v8099_v52  ;;  %v6120_v14 = vmul.f32 %v5140_v17, %v5830_v22  ;;  %v5139_v32 = vunpack.i.l.bf16 %v8103_v0 }
 0x1c0   :  { %8097 = vst [vmem:[#allocation15_spill] sm:$0xff] %v6073_v42  ;;  %8098 = vst [vmem:[#allocation38_spill] sm:$0xff] %v6075_v39  ;;  %v5169_v8 = vunpack.i.l.bf16 %v5168_v40  ;;  %1126 = vperm.xlu0 %5283, %v6073_v42   ;;  %1130 = vperm.xlu1 %5281, %v6075_v39   ;;  %v5170_v48 = vunpack.i.h.bf16 %v5168_v40  ;;  %v4989_v6 = vunpack.i.l.bf16 %v8104_v56  ;;  %v5014_v27 = vunpack.i.h.bf16 %v8106_v34 }
 0x1c1   :  { %v629_v30 = vadd.f32 %v617_v61, %v553_v5  ;;  %v921_v28 = vmul.f32 %v5188_v47, %v5870_v24  ;;  %v5013_v55 = vunpack.i.l.bf16 %v8106_v34  ;;  %v235_v51 = vmul.f32 %v4990_v25, %v5773_v54  ;;  %v8110_v47 = vld [vmem:[#allocation33_spill] sm:$0xff] }
 0x1c2   :  { %v846_v16 = vmul.f32 %v5169_v8, %v5858_v23  ;;  %v8105_v8 = vld [vmem:[#allocation20_spill] sm:$0xff]  ;;  %v845_v0 = vmul.f32 %v5170_v48, %v5858_v23  ;;  %v5056_v61 = vunpack.i.h.bf16 %v5852_v38 }
 0x1c3   :  { %v4984_v43 = vunpack.i.h.bf16 %v8105_v8  ;;  %v4983_v7 = vunpack.i.l.bf16 %v8105_v8  ;;  %v312_v48 = vmul.f32 %v5013_v55, %v5805_v21  ;;  %v8111_v8 = vld [vmem:[#allocation35_spill] sm:$0xff] }
 0x1c4   :  { %v858_v53 = vadd.f32 %v846_v16, %v782_v63  ;;  %v6092_v10 = vpop.permute.xlu1 %5173  ;;  %5282 = vset.pattern.permute.xlu1 %v8092_v62  ;;  %5288 = vset.pattern.permute.xlu0 %v8092_v62  ;;  %v769_v63 = vmul.f32 %v5146_v50, %v5848_v18  ;;  %v8108_v16 = vld [vmem:[#allocation18_spill] sm:$0xff]  ;;  %v5055_v50 = vunpack.i.l.bf16 %v5852_v38  ;;  %v5086_v34 = vunpack.i.h.bf16 %v8111_v8 }
 0x1c5   :  { %1190 = vperm.xlu1 %5282, %v6075_v39   ;;  %v5158_v41 = vunpack.i.h.bf16 %v8108_v16  ;;  %v171_v17 = vmul.f32 %v4984_v43, %v5770_v13  ;;  %v5085_v43 = vunpack.i.l.bf16 %v8111_v8 }
 0x1c6   :  { %v934_v46 = vadd.f32 %v922_v20, %v858_v53  ;;  %v8109_v20 = vld [vmem:[#allocation31_spill] sm:$0xff]  ;;  %v705_v53 = vadd.f32 %v693_v9, %v629_v30  ;;  %v172_v9 = vmul.f32 %v4983_v7, %v5770_v13  ;;  %v388_v13 = vmul.f32 %v5055_v50, %v5797_v49 }
 0x1c7   :  { %v5050_v60 = vunpack.i.h.bf16 %v8109_v20  ;;  %v5049_v5 = vunpack.i.l.bf16 %v8109_v20  ;;  %v5115_v7 = vunpack.i.l.bf16 %v5954_v31  ;;  %v5244_v20 = vunpack.i.h.bf16 %v8101_v2 }
 0x1c8   :  { %v1010_v3 = vadd.f32 %v998_v12, %v934_v46  ;;  %v236_v12 = vmul.f32 %v4989_v6, %v5773_v54  ;;  %v311_v46 = vmul.f32 %v5014_v27, %v5805_v21  ;;  %v781_v56 = vadd.f32 %v769_v63, %v705_v53 }
 0x1c9   :  { %v6125_v52 = vpop.permute.xlu1 %5179  ;;  %5284 = vset.pattern.permute.xlu1 %v8093_v57  ;;  %v247_v6 = vadd.f32 %v235_v51, %v171_v17  ;;  %v233_v38 = vmul.f32 %v5050_v60, %v5773_v54  ;;  %v234_v63 = vmul.f32 %v5049_v5, %v5773_v54  ;;  %v387_v53 = vmul.f32 %v5056_v61, %v5797_v49 }
 0x1ca   :  { %v6130_v40 = vsub.f32 %v34_v11, %v1010_v3  ;;  %1250 = vperm.xlu1 %5284, %v6075_v39   ;;  %v5080_v11 = vunpack.i.h.bf16 %v8110_v47  ;;  %v5079_v3 = vunpack.i.l.bf16 %v8110_v47  ;;  %v857_v27 = vadd.f32 %v845_v0, %v781_v56 }
 0x1cb   :  { %v248_v30 = vadd.f32 %v236_v12, %v172_v9  ;;  %v323_v55 = vadd.f32 %v311_v46, %v247_v6  ;;  %v464_v0 = vmul.f32 %v5085_v43, %v5811_v36  ;;  %v5116_v12 = vunpack.i.h.bf16 %v5954_v31 }
 0x1cc   :  { %8107 = vst [vmem:[#allocation19_spill] sm:$0xff] %v6130_v40  ;;  %1182 = vperm.xlu0 %5288, %v6130_v40   ;;  %v309_v51 = vmul.f32 %v5080_v11, %v5805_v21  ;;  %v310_v17 = vmul.f32 %v5079_v3, %v5805_v21  ;;  %v245_v54 = vadd.f32 %v233_v38, %v6097_v44  ;;  %v5134_v2 = vunpack.i.h.bf16 %v6003_v19 }
 0x1cd   :  { %v324_v60 = vadd.f32 %v312_v48, %v248_v30  ;;  %v463_v5 = vmul.f32 %v5086_v34, %v5811_v36  ;;  %v933_v49 = vadd.f32 %v921_v28, %v857_v27  ;;  %v616_v50 = vmul.f32 %v5139_v32, %v5830_v22  ;;  %v33_v27 = vld [vmem:[%s7957_s1 + $0x20] sm:$0xff] }
 0x1ce   :  { %v6148_v25 = vpop.permute.xlu1 %5202  ;;  %5285 = vset.pattern.permute.xlu1 %v8092_v62  ;;  %v246_v21 = vadd.f32 %v234_v63, %v6100_v29  ;;  %v540_v31 = vmul.f32 %v5115_v7, %v5820_v37  ;;  %v5157_v61 = vunpack.i.l.bf16 %v8108_v16  ;;  %v997_v11 = vmul.f32 %v5244_v20, %v5874_v35  ;;  %v8112_v63 = vld [vmem:[#allocation22_spill] sm:$0xff] }
 0x1cf   :  { %1186 = vperm.xlu1 %5285, %v6073_v42   ;;  %v400_v46 = vadd.f32 %v388_v13, %v324_v60  ;;  %v399_v56 = vadd.f32 %v387_v53, %v323_v55  ;;  %v321_v44 = vadd.f32 %v309_v51, %v245_v54  ;;  %v539_v3 = vmul.f32 %v5116_v12, %v5820_v37 }
 0x1d0   :  { %5291 = vset.pattern.permute.xlu0 %v8082_v26  ;;  %v322_v9 = vadd.f32 %v310_v17, %v246_v21  ;;  %v5163_v28 = vunpack.i.l.bf16 %v6059_v4  ;;  %v537_v8 = vmul.f32 %v5158_v41, %v5820_v37  ;;  %v461_v29 = vmul.f32 %v5134_v2, %v5811_v36 }
 0x1d1   :  { %v476_v48 = vadd.f32 %v464_v0, %v400_v46  ;;  %v475_v32 = vadd.f32 %v463_v5, %v399_v56  ;;  %v1009_v43 = vadd.f32 %v997_v11, %v933_v49  ;;  %v5133_v38 = vunpack.i.l.bf16 %v6003_v19 }
 0x1d2   :  { %v5164_v34 = vunpack.i.h.bf16 %v6059_v4  ;;  %v5181_v30 = vunpack.i.l.bf16 %v6125_v52  ;;  %v538_v41 = vmul.f32 %v5157_v61, %v5820_v37  ;;  %v5228_v13 = vunpack.i.h.bf16 %v8112_v63 }
 0x1d3   :  { %v6168_v47 = vpop.permute.xlu1 %5208  ;;  %5286 = vset.pattern.permute.xlu1 %v8082_v26  ;;  %v552_v16 = vadd.f32 %v540_v31, %v476_v48  ;;  %v397_v7 = vadd.f32 %v6108_v33, %v321_v44  ;;  %v5176_v55 = vunpack.i.h.bf16 %v6092_v10  ;;  %v551_v20 = vadd.f32 %v539_v3, %v475_v32 }
 0x1d4   :  { %1122 = vperm.xlu1 %5286, %v6130_v40   ;;  %v398_v19 = vadd.f32 %v6111_v15, %v322_v9  ;;  %v692_v4 = vmul.f32 %v5163_v28, %v5842_v59  ;;  %v5210_v53 = vunpack.i.l.bf16 %v6168_v47  ;;  %v6201_v60 = vsub.f32 %v33_v27, %v1009_v43 }
 0x1d5   :  { %v473_v51 = vadd.f32 %v461_v29, %v397_v7  ;;  %v5182_v17 = vunpack.i.h.bf16 %v6125_v52  ;;  %v5205_v37 = vunpack.i.h.bf16 %v6148_v25  ;;  %v462_v0 = vmul.f32 %v5133_v38, %v5811_v36 }
 0x1d6   :  { %8113 = vst [vmem:[#allocation14_spill] sm:$0xff] %v6201_v60  ;;  %v691_v33 = vmul.f32 %v5164_v34, %v5842_v59  ;;  %v628_v12 = vadd.f32 %v616_v50, %v552_v16  ;;  %v768_v54 = vmul.f32 %v5181_v30, %v5848_v18  ;;  %v613_v15 = vmul.f32 %v5176_v55, %v5830_v22 }
 0x1d7   :  { %v5211_v2 = vunpack.i.h.bf16 %v6168_v47  ;;  %v627_v52 = vadd.f32 %v6120_v14, %v551_v20  ;;  %v5175_v46 = vunpack.i.l.bf16 %v6092_v10  ;;  %v844_v50 = vmul.f32 %v5210_v53, %v5858_v23 }
 0x1d8   :  { %v6184_v6 = vpop.permute.xlu1 %5214  ;;  %5287 = vset.pattern.permute.xlu1 %v8093_v57  ;;  %v704_v36 = vadd.f32 %v692_v4, %v628_v12  ;;  %v549_v31 = vadd.f32 %v537_v8, %v473_v51  ;;  %v767_v61 = vmul.f32 %v5182_v17, %v5848_v18  ;;  %v689_v11 = vmul.f32 %v5205_v37, %v5842_v59  ;;  %v8114_v12 = vld [vmem:[#allocation28_spill] sm:$0xff] }
 0x1d9   :  { %1246 = vperm.xlu1 %5287, %v6073_v42   ;;  %v5217_v49 = vunpack.i.h.bf16 %v6184_v6  ;;  %v474_v44 = vadd.f32 %v462_v0, %v398_v19  ;;  %v5204_v9 = vunpack.i.l.bf16 %v6148_v25  ;;  %v703_v3 = vadd.f32 %v691_v33, %v627_v52 }
 0x1da   :  { %v780_v47 = vadd.f32 %v768_v54, %v704_v36  ;;  %v625_v28 = vadd.f32 %v613_v15, %v549_v31  ;;  %v843_v14 = vmul.f32 %v5211_v2, %v5858_v23  ;;  %v614_v8 = vmul.f32 %v5175_v46, %v5830_v22  ;;  %v32_v22 = vld [vmem:[%s7957_s1 + $0x18] sm:$0xff] }
 0x1db   :  { %v765_v10 = vmul.f32 %v5217_v49, %v5848_v18  ;;  %v779_v38 = vadd.f32 %v767_v61, %v703_v3  ;;  %v5216_v34 = vunpack.i.l.bf16 %v6184_v6  ;;  %v550_v30 = vadd.f32 %v538_v41, %v474_v44 }
 0x1dc   :  { %v856_v29 = vadd.f32 %v844_v50, %v780_v47  ;;  %v701_v25 = vadd.f32 %v689_v11, %v625_v28  ;;  %v690_v7 = vmul.f32 %v5204_v9, %v5842_v59  ;;  %v841_v6 = vmul.f32 %v5228_v13, %v5858_v23  ;;  %v8119_v28 = vld [vmem:[#allocation32_spill] sm:$0xff] }
 0x1dd   :  { %v5221_v5 = vpop.permute.xlu1 %5220  ;;  %5289 = vset.pattern.permute.xlu1 %v8082_v26  ;;  %v855_v19 = vadd.f32 %v843_v14, %v779_v38  ;;  %v626_v51 = vadd.f32 %v614_v8, %v550_v30  ;;  %v766_v59 = vmul.f32 %v5216_v34, %v5848_v18  ;;  %v5227_v33 = vunpack.i.l.bf16 %v8112_v63  ;;  %v31_v18 = vld [vmem:[%s7957_s1 + $0x10] sm:$0xff] }
 0x1de   :  { %v5222_v21 = vunpack.i.l.bf16 %v5221_v5  ;;  %1118 = vperm.xlu1 %5289, %v6201_v60   ;;  %v5223_v56 = vunpack.i.h.bf16 %v5221_v5  ;;  %v777_v4 = vadd.f32 %v765_v10, %v701_v25  ;;  %v5261_v54 = vunpack.i.h.bf16 %v8114_v12 }
 0x1df   :  { %v702_v5 = vadd.f32 %v690_v7, %v626_v51  ;;  %v842_v46 = vmul.f32 %v5227_v33, %v5858_v23  ;;  %v5260_v11 = vunpack.i.l.bf16 %v8114_v12  ;;  %v1546_v14 = vsel %vm1512_vm12, %v8119_v28, 0.0 }
 0x1e0   :  { %v920_v48 = vmul.f32 %v5222_v21, %v5870_v24  ;;  %v919_v27 = vmul.f32 %v5223_v56, %v5870_v24  ;;  %v853_v52 = vadd.f32 %v841_v6, %v777_v4  ;;  %v993_v63 = vmul.f32 %v5261_v54, %v5874_v35  ;;  %v29_v56 = vld [vmem:[%s7957_s1] sm:$0xff] }
 0x1e1   :  { %v778_v13 = vadd.f32 %v766_v59, %v702_v5 }
 0x1e2   :  { %v5248_v32 = vpop.permute.xlu1 %5247  ;;  %5290 = vset.pattern.permute.xlu1 %v8092_v62  ;;  %v932_v55 = vadd.f32 %v920_v48, %v856_v29  ;;  %v931_v41 = vadd.f32 %v919_v27, %v855_v19  ;;  %v30_v48 = vld [vmem:[%s7957_s1 + $0x8] sm:$0xff]  ;;  %s5366_s1 = smov 4  }
 0x1e3   :  { %v5250_v43 = vunpack.i.h.bf16 %v5248_v32  ;;  %v5249_v16 = vunpack.i.l.bf16 %v5248_v32  ;;  %1178 = vperm.xlu1 %5290, %v6201_v60   ;;  %v854_v44 = vadd.f32 %v842_v46, %v778_v13  ;;  %v1534_v32 = vsel %vm1512_vm12, %v6075_v39, 0.0 }
 0x1e5   :  { %v996_v20 = vmul.f32 %v5249_v16, %v5874_v35  ;;  %v995_v53 = vmul.f32 %v5250_v43, %v5874_v35 }
 0x1e7   :  { %v1008_v17 = vadd.f32 %v996_v20, %v932_v55  ;;  %v5254_v37 = vpop.permute.xlu1 %5253  ;;  %5292 = vset.pattern.permute.xlu1 %v8093_v57  ;;  %v1007_v2 = vadd.f32 %v995_v53, %v931_v41 }
 0x1e8   :  { %v5256_v0 = vunpack.i.h.bf16 %v5254_v37  ;;  %1238 = vperm.xlu1 %5292, %v6201_v60   ;;  %v5255_v21 = vunpack.i.l.bf16 %v5254_v37 }
 0x1e9   :  { %v6239_v15 = vsub.f32 %v32_v22, %v1008_v17  ;;  %v6250_v50 = vsub.f32 %v31_v18, %v1007_v2 }
 0x1ea   :  { %v917_v49 = vmul.f32 %v5256_v0, %v5870_v24  ;;  %v918_v31 = vmul.f32 %v5255_v21, %v5870_v24  ;;  %v994_v24 = vmul.f32 %v5260_v11, %v5874_v35  ;;  %v1543_v35 = vsel %vm1512_vm12, %v5897_v45, 0.0 }
 0x1eb   :  { %8115 = vst [vmem:[#allocation27_spill] sm:$0xff] %v6239_v15  ;;  %1114 = vperm.xlu0 %5291, %v6239_v15   ;;  %8116 = vst [vmem:[#allocation16_spill] sm:$0xff] %v6250_v50 }
 0x1ec   :  { %v929_v36 = vadd.f32 %v917_v49, %v853_v52  ;;  %5293 = vset.pattern.permute.xlu1 %v8092_v62  ;;  %v930_v47 = vadd.f32 %v918_v31, %v854_v44 }
 0x1ed   :  { %1174 = vperm.xlu1 %5293, %v6239_v15  }
 0x1ee   :  { %v1005_v61 = vadd.f32 %v993_v63, %v929_v36  ;;  %v1006_v9 = vadd.f32 %v994_v24, %v930_v47 }
 0x1ef   :  { %5296 = vset.pattern.permute.xlu0 %v8092_v62 }
 0x1f0   :  { %1170 = vperm.xlu0 %5296, %v6250_v50   ;;  %v6261_v23 = vsub.f32 %v29_v56, %v1005_v61  ;;  %v6272_v3 = vsub.f32 %v30_v48, %v1006_v9  ;;  %v1531_v9 = vsel %vm1512_vm12, %v6073_v42, 0.0  ;;  %v1528_v48 = vsel %vm1512_vm12, %v6130_v40, 0.0 }
 0x1f1   :  { %5294 = vset.pattern.permute.xlu1 %v8082_v26 }
 0x1f2   :  { %1110 = vperm.xlu1 %5294, %v6250_v50   ;;  %8117 = vst [vmem:[#allocation17_spill] sm:$0xff] %v6261_v23  ;;  %8118 = vst [vmem:[#allocation21_spill] sm:$0xff] %v6272_v3 }
 0x1f4   :  { %5299 = vset.pattern.permute.xlu0 %v8082_v26 }
 0x1f5   :  { %1102 = vperm.xlu0 %5299, %v6261_v23  }
 0x1f6   :  { %5295 = vset.pattern.permute.xlu1 %v8093_v57 }
 0x1f7   :  { %1234 = vperm.xlu1 %5295, %v6239_v15  }
 0x1f9   :  { %5300 = vset.pattern.permute.xlu0 %v8093_v57 }
 0x1fa   :  { %1266 = vperm.xlu0 %5300, %v8119_v28  }
 0x1fb   :  { %5297 = vset.pattern.permute.xlu1 %v8082_v26  ;;  %v8120_v26 = vmov 0  }
 0x1fc   :  { %1106 = vperm.xlu1 %5297, %v6272_v3  }
 0x1fe   :  { %1254 = vperm.xlu0 %5300, %v6032_v1  }
 0x200   :  { %5298 = vset.pattern.permute.xlu1 %v8092_v62 }
 0x201   :  { %1166 = vperm.xlu1 %5298, %v6272_v3  }
 0x202   :  { %1242 = vperm.xlu0 %5300, %v6130_v40  }
 0x205   :  { %5301 = vset.pattern.permute.xlu1 %v8093_v57  ;;  %v1537_v57 = vsel %vm1512_vm12, %v6032_v1, 0.0  ;;  %v1147_v10 = vpop.permute.xlu1 %1146  ;;  %v1207_v25 = vpop.permute.xlu0 %1206 }
 0x206   :  { %1230 = vperm.xlu0 %5300, %v6250_v50   ;;  %1226 = vperm.xlu1 %5301, %v6272_v3   ;;  %v1160_v38 = vmul.f32 %v1147_v10, %v8119_v28  ;;  %v1220_v27 = vmul.f32 %v1207_v25, %v8119_v28 }
 0x209   :  { %v1143_v8 = vpop.permute.xlu1 %1142 }
 0x20a   :  { %1222 = vperm.xlu0 %5300, %v6261_v23   ;;  %5302 = vset.pattern.permute.xlu1 %v8092_v62  ;;  %v1540_v62 = vsel %vm1512_vm12, %v6010_v58, 0.0  ;;  %v1159_v56 = vmul.f32 %v1143_v8, %v5897_v45 }
 0x20b   :  { %1162 = vperm.xlu1 %5302, %v6261_v23  }
 0x20e   :  { %5304 = vset.pattern.permute.xlu0 %v8120_v26  ;;  %v1203_v29 = vpop.permute.xlu1 %1202 }
 0x20f   :  { %5303 = vset.pattern.permute.xlu1 %v8120_v26  ;;  %v1219_v24 = vmul.f32 %v1203_v29, %v5897_v45 }
 0x213   :  { %v6299_v43 = vpop.permute.xlu1 %1262 }
 0x229   :  { %1544 = vadd.xlane.f32.xlu0 %v1543_v35 }
 0x22a   :  { %v6302_v16 = vpop.permute.xlu1 %1198  ;;  %v1139_v33 = vpop.permute.xlu0 %1138 }
 0x22b   :  { %v1158_v35 = vmul.f32 %v1139_v33, %v6010_v58 }
 0x22d   :  { %1538 = vadd.xlane.f32.xlu0 %v1537_v57 }
 0x22f   :  { %1547 = vadd.xlane.f32.xlu1 %v1546_v14  ;;  %v6306_v34 = vpop.permute.xlu1 %1134  ;;  %v6343_v54 = vpop.permute.xlu0 %1194 }
 0x233   :  { %1541 = vadd.xlane.f32.xlu1 %v1540_v62 }
 0x234   :  { %v6311_v30 = vpop.permute.xlu1 %1258 }
 0x237   :  { %1535 = vadd.xlane.f32.xlu1 %v1534_v32 }
 0x23b   :  { %v6313_v7 = vpop.permute.xlu1 %1130  ;;  %v6345_v5 = vpop.permute.xlu0 %1126 }
 0x240   :  { %v6315_v55 = vpop.permute.xlu1 %1190 }
 0x245   :  { %v6317_v20 = vpop.permute.xlu1 %1250 }
 0x247   :  { %v6349_v49 = vpop.permute.xlu0 %1182 }
 0x248   :  { %1086 = vperm.xlu1 %5303, %v8119_v28  }
 0x24a   :  { %v6319_v19 = vpop.permute.xlu1 %1186 }
 0x24c   :  { %1081 = vperm.xlu1 %5303, %v5897_v45  }
 0x24f   :  { %v6321_v4 = vpop.permute.xlu1 %1122 }
 0x250   :  { %1363 = vrot.lane.b32.xlu1 %v1160_v38, %s5366_s1 }
 0x254   :  { %1411 = vrot.lane.b32.xlu1 %v1220_v27, %s5367_s0  ;;  %v6323_v22 = vpop.permute.xlu1 %1246 }
 0x259   :  { %v6325_v53 = vpop.permute.xlu1 %1118 }
 0x25e   :  { %v6327_v51 = vpop.permute.xlu1 %1178 }
 0x263   :  { %v6329_v17 = vpop.permute.xlu1 %1238 }
 0x266   :  { %v6351_v52 = vpop.permute.xlu0 %1114 }
 0x268   :  { %v6331_v37 = vpop.permute.xlu1 %1174 }
 0x26b   :  { %v6357_v36 = vpop.permute.xlu0 %1170 }
 0x26d   :  { %v6333_v6 = vpop.permute.xlu1 %1110 }
 0x270   :  { %v6361_v31 = vpop.permute.xlu0 %1102 }
 0x272   :  { %v6335_v59 = vpop.permute.xlu1 %1234 }
 0x275   :  { %v1267_v44 = vpop.permute.xlu0 %1266 }
 0x276   :  { %v1280_v47 = vmul.f32 %v1267_v44, %v8119_v28 }
 0x277   :  { %v6337_v41 = vpop.permute.xlu1 %1106 }
 0x279   :  { %v6378_v57 = vpop.permute.xlu0 %1254 }
 0x27c   :  { %v6339_v0 = vpop.permute.xlu1 %1166 }
 0x27d   :  { %v6380_v14 = vpop.permute.xlu0 %1242 }
 0x281   :  { %v6341_v12 = vpop.permute.xlu1 %1226  ;;  %v6382_v62 = vpop.permute.xlu0 %1230 }
 0x285   :  { %v6384_v10 = vpop.permute.xlu0 %1222 }
 0x286   :  { %v6347_v2 = vpop.permute.xlu1 %1162 }
 0x2b2   :  { %v1545_v8 = vpop.xlane.xlu0 %1544 }
 0x2b6   :  { %v6386_v38 = vpop.xlane.xlu0 %1538 }
 0x2b8   :  { %v1548_v21 = vpop.xlane.xlu1 %1547 }
 0x2bc   :  { %v6353_v18 = vpop.xlane.xlu1 %1541 }
 0x2c0   :  { %v6355_v13 = vpop.xlane.xlu1 %1535 }
 0x2c4   :  { %v1087_v63 = vpop.permute.xlu1 %1086 }
 0x2c5   :  { %v1100_v46 = vmul.f32 %v1087_v63, %v8119_v28 }
 0x2c7   :  { %1315 = vrot.lane.b32.xlu0 %v1100_v46, %s5368_s13 }
 0x2c8   :  { %v1082_v61 = vpop.permute.xlu1 %1081 }
 0x2c9   :  { %v1099_v11 = vmul.f32 %v1082_v61, %v5897_v45 }
 0x2cb   :  { %1313 = vrot.lane.b32.xlu1 %v1099_v11, %s5368_s13 }
 0x2cc   :  { %v1364_v32 = vpop.permute.xlu1 %1363 }
 0x2cf   :  { %1361 = vrot.lane.b32.xlu1 %v1159_v56, %s5366_s1 }
 0x2d0   :  { %v1412_v29 = vpop.permute.xlu1 %1411 }
 0x2d3   :  { %1459 = vrot.lane.b32.xlu1 %v1280_v47, %s5369_s14 }
 0x2d7   :  { %1409 = vrot.lane.b32.xlu1 %v1219_v24, %s5367_s0 }
 0x2e6   :  { %1532 = vadd.xlane.f32.xlu0 %v1531_v9 }
 0x2fb   :  { %1529 = vadd.xlane.f32.xlu1 %v1528_v48 }
 0x30c   :  { %1076 = vperm.xlu1 %5303, %v6010_v58  }
 0x310   :  { %1359 = vrot.lane.b32.xlu1 %v1158_v35, %s5366_s1 }
 0x339   :  { %v1316_v27 = vpop.permute.xlu0 %1315 }
 0x33a   :  { %v1485_v33 = vsel %vm1473_vm13, %v1316_v27, %v1364_v32 }
 0x33b   :  { %v1498_v46 = vsel %vm1486_vm14, %v1485_v33, %v1412_v29  ;;  %v1279_v33 = vmul.f32 %v6299_v43, %v5897_v45 }
 0x33d   :  { %v1314_v25 = vpop.permute.xlu1 %1313 }
 0x341   :  { %v1362_v63 = vpop.permute.xlu1 %1361 }
 0x345   :  { %v1460_v61 = vpop.permute.xlu1 %1459 }
 0x346   :  { %v1511_v11 = vsel %vm1499_vm15, %v1498_v46, %v1460_v61  ;;  %v1218_v46 = vmul.f32 %v6302_v16, %v6010_v58  ;;  %v1525_v61 = vsel %vm1512_vm12, %v6201_v60, 0.0 }
 0x347   :  { %v1561_v56 = vsel %vm1549_vm0, %v1511_v11, %v1548_v21 }
 0x348   :  { %v1574_v44 = vsel %vm1562_vm1, %v1561_v56, 1.0 }
 0x349   :  { %v6393_v47 = vand.u32 4294901760, %v1574_v44  ;;  %v1410_v21 = vpop.permute.xlu1 %1409 }
 0x34b   :  { %v6396_v24 = vsub.f32 %v1574_v44, %v6393_v47  ;;  %4455 = vmatprep.subr.mxu0 %v6393_v47  ;;  %v1484_v44 = vsel %vm1473_vm13, %v1314_v25, %v1362_v63 }
 0x34c   :  { %4456 = vmatpush3.msra.mxu0 %v6393_v47  ;;  %v1497_v43 = vsel %vm1486_vm14, %v1484_v44, %v1410_v21 }
 0x34d   :  { %v6401_v9 = vand.u32 4294901760, %v6396_v24 }
 0x34f   :  { %v1723_v48 = vsub.f32 %v6396_v24, %v6401_v9 }
 0x351   :  { %v1724_v35 = vand.u32 4294901760, %v1723_v48 }
 0x353   :  { %4482 = vmatprep.subr.mxu1 %v1724_v35 }
 0x354   :  { %4483 = vmatpush3.msra.mxu1 %v1724_v35 }
 0x36f   :  { %v6418_v11 = vpop.xlane.xlu0 %1532 }
 0x384   :  { %v6405_v32 = vpop.xlane.xlu1 %1529 }
 0x388   :  { %v1077_v29 = vpop.permute.xlu1 %1076 }
 0x389   :  { %v1098_v27 = vmul.f32 %v1077_v29, %v6010_v58 }
 0x38b   :  { %1311 = vrot.lane.b32.xlu0 %v1098_v27, %s5368_s13 }
 0x38f   :  { %1457 = vrot.lane.b32.xlu0 %v1279_v33, %s5369_s14 }
 0x393   :  { %1407 = vrot.lane.b32.xlu0 %v1218_v46, %s5367_s0 }
 0x3b2   :  { %1526 = vadd.xlane.f32.xlu0 %v1525_v61 }
 0x3c8   :  { %1071 = vperm.xlu0 %5304, %v6032_v1  }
 0x3fd   :  { %v1312_v56 = vpop.permute.xlu0 %1311 }
 0x401   :  { %v1458_v48 = vpop.permute.xlu0 %1457 }
 0x402   :  { %v1510_v35 = vsel %vm1499_vm15, %v1497_v43, %v1458_v48  ;;  %v1157_v43 = vmul.f32 %v6306_v34, %v6032_v1  ;;  %v1278_v48 = vmul.f32 %v6311_v30, %v6010_v58  ;;  %v1216_v34 = vmul.f32 %v6315_v55, %v6075_v39  ;;  %v1360_v30 = vpop.permute.xlu1 %1359 }
 0x403   :  { %v1560_v16 = vsel %vm1549_vm0, %v1510_v35, %v1545_v8  ;;  %v1217_v35 = vmul.f32 %v6343_v54, %v6032_v1 }
 0x404   :  { %v1573_v29 = vsel %vm1562_vm1, %v1560_v16, 1.0  ;;  %v1522_v16 = vsel %vm1512_vm12, %v6239_v15, 0.0 }
 0x405   :  { %v6425_v27 = vand.u32 4294901760, %v1573_v29  ;;  %v1408_v8 = vpop.permute.xlu0 %1407 }
 0x407   :  { %v6428_v33 = vsub.f32 %v1573_v29, %v6425_v27  ;;  %4457 = vmatprep.subr.mxu0 %v6425_v27 }
 0x408   :  { %4458 = vmatpush3.msra.mxu0 %v6425_v27 }
 0x409   :  { %v6433_v25 = vand.u32 4294901760, %v6428_v33 }
 0x40b   :  { %v1730_v63 = vsub.f32 %v6428_v33, %v6433_v25 }
 0x40d   :  { %v1731_v21 = vand.u32 4294901760, %v1730_v63  ;;  %v1483_v63 = vsel %vm1473_vm13, %v1312_v56, %v1360_v30 }
 0x40f   :  { %4484 = vmatprep.subr.mxu1 %v1731_v21 }
 0x410   :  { %4485 = vmatpush3.msra.mxu1 %v1731_v21  ;;  %v1496_v21 = vsel %vm1486_vm14, %v1483_v63, %v1408_v8 }
 0x43b   :  { %v6437_v46 = vpop.xlane.xlu0 %1526 }
 0x443   :  { %v1072_v61 = vpop.permute.xlu0 %1071 }
 0x444   :  { %v1097_v44 = vmul.f32 %v1072_v61, %v6032_v1 }
 0x446   :  { %1309 = vrot.lane.b32.xlu1 %v1097_v44, %s5368_s13 }
 0x44a   :  { %1357 = vrot.lane.b32.xlu1 %v1157_v43, %s5366_s1 }
 0x44e   :  { %1455 = vrot.lane.b32.xlu1 %v1278_v48, %s5369_s14 }
 0x452   :  { %1405 = vrot.lane.b32.xlu1 %v1217_v35, %s5367_s0 }
 0x476   :  { %1523 = vadd.xlane.f32.xlu1 %v1522_v16 }
 0x487   :  { %1066 = vperm.xlu1 %5303, %v6075_v39  }
 0x48b   :  { %1061 = vperm.xlu1 %5303, %v6073_v42  }
 0x48f   :  { %1051 = vperm.xlu1 %5303, %v6201_v60  }
 0x493   :  { %1046 = vperm.xlu1 %5303, %v6239_v15  }
 0x497   :  { %1036 = vperm.xlu1 %5303, %v6272_v3  }
 0x49b   :  { %1031 = vperm.xlu1 %5303, %v6261_v23  }
 0x49f   :  { %1403 = vrot.lane.b32.xlu1 %v1216_v34, %s5367_s0 }
 0x4b8   :  { %v6461_v54 = vpop.permute.xlu1 %1309 }
 0x4bc   :  { %v6463_v29 = vpop.permute.xlu1 %1357 }
 0x4c0   :  { %v1456_v61 = vpop.permute.xlu1 %1455 }
 0x4c1   :  { %v1509_v44 = vsel %vm1499_vm15, %v1496_v21, %v1456_v61  ;;  %v1156_v61 = vmul.f32 %v6313_v7, %v6075_v39  ;;  %v1215_v7 = vmul.f32 %v6319_v19, %v6073_v42 }
 0x4c2   :  { %v1559_v43 = vsel %vm1549_vm0, %v1509_v44, %v6353_v18 }
 0x4c3   :  { %v1572_v48 = vsel %vm1562_vm1, %v1559_v43, 1.0  ;;  %v1155_v43 = vmul.f32 %v6345_v5, %v6073_v42  ;;  %v1519_v5 = vsel %vm1512_vm12, %v6250_v50, 0.0 }
 0x4c4   :  { %v6471_v55 = vand.u32 4294901760, %v1572_v48  ;;  %v1406_v18 = vpop.permute.xlu1 %1405 }
 0x4c6   :  { %v6474_v35 = vsub.f32 %v1572_v48, %v6471_v55  ;;  %4459 = vmatprep.subr.mxu0 %v6471_v55  ;;  %v1277_v48 = vmul.f32 %v6378_v57, %v6032_v1  ;;  %v1516_v57 = vsel %vm1512_vm12, %v6272_v3, 0.0 }
 0x4c7   :  { %4460 = vmatpush3.msra.mxu0 %v6471_v55 }
 0x4c8   :  { %v6479_v56 = vand.u32 4294901760, %v6474_v35 }
 0x4ca   :  { %v1737_v8 = vsub.f32 %v6474_v35, %v6479_v56 }
 0x4cc   :  { %v1738_v16 = vand.u32 4294901760, %v1737_v8  ;;  %v1276_v8 = vmul.f32 %v6317_v20, %v6075_v39  ;;  %v1154_v20 = vmul.f32 %v6321_v4, %v6130_v40  ;;  %v1213_v4 = vmul.f32 %v6327_v51, %v6201_v60 }
 0x4ce   :  { %4486 = vmatprep.subr.mxu1 %v1738_v16 }
 0x4cf   :  { %4487 = vmatpush3.msra.mxu1 %v1738_v16 }
 0x4ff   :  { %v6483_v34 = vpop.xlane.xlu1 %1523 }
 0x503   :  { %v1067_v30 = vpop.permute.xlu1 %1066 }
 0x504   :  { %v1096_v63 = vmul.f32 %v1067_v30, %v6075_v39  ;;  %v1153_v30 = vmul.f32 %v6325_v53, %v6201_v60  ;;  %v1152_v53 = vmul.f32 %v6351_v52, %v6239_v15  ;;  %v1482_v52 = vsel %vm1473_vm13, %v6461_v54, %v6463_v29 }
 0x506   :  { %1307 = vrot.lane.b32.xlu0 %v1096_v63, %s5368_s13  ;;  %v1274_v63 = vmul.f32 %v6380_v14, %v6130_v40  ;;  %v1212_v14 = vmul.f32 %v6331_v37, %v6239_v15 }
 0x507   :  { %v1062_v21 = vpop.permute.xlu1 %1061 }
 0x508   :  { %v1095_v44 = vmul.f32 %v1062_v21, %v6073_v42 }
 0x50a   :  { %1355 = vrot.lane.b32.xlu0 %v1156_v61, %s5366_s1  ;;  %1305 = vrot.lane.b32.xlu1 %v1095_v44, %s5368_s13 }
 0x50b   :  { %v1052_v16 = vpop.permute.xlu1 %1051 }
 0x50c   :  { %v1093_v19 = vmul.f32 %v1052_v16, %v6201_v60 }
 0x50e   :  { %1453 = vrot.lane.b32.xlu0 %v1277_v48, %s5369_s14  ;;  %1353 = vrot.lane.b32.xlu1 %v1155_v43, %s5366_s1 }
 0x50f   :  { %v1047_v21 = vpop.permute.xlu1 %1046 }
 0x510   :  { %v1092_v61 = vmul.f32 %v1047_v21, %v6239_v15 }
 0x512   :  { %1451 = vrot.lane.b32.xlu1 %v1276_v8, %s5369_s14 }
 0x513   :  { %v6532_v44 = vpop.permute.xlu1 %1036 }
 0x516   :  { %1401 = vrot.lane.b32.xlu1 %v1215_v7, %s5367_s0 }
 0x517   :  { %v6534_v51 = vpop.permute.xlu1 %1031 }
 0x51b   :  { %v1404_v43 = vpop.permute.xlu1 %1403 }
 0x52d   :  { %1520 = vadd.xlane.f32.xlu0 %v1519_v5  ;;  %v1495_v5 = vsel %vm1486_vm14, %v1482_v52, %v1406_v18 }
 0x531   :  { %1517 = vadd.xlane.f32.xlu0 %v1516_v57 }
 0x547   :  { %1056 = vperm.xlu0 %5304, %v6130_v40  }
 0x54b   :  { %1041 = vperm.xlu0 %5304, %v6250_v50  }
 0x54f   :  { %1351 = vrot.lane.b32.xlu0 %v1154_v20, %s5366_s1 }
 0x553   :  { %1301 = vrot.lane.b32.xlu0 %v1093_v19, %s5368_s13 }
 0x557   :  { %1349 = vrot.lane.b32.xlu0 %v1153_v30, %s5366_s1 }
 0x55b   :  { %1447 = vrot.lane.b32.xlu0 %v1274_v63, %s5369_s14 }
 0x55f   :  { %1397 = vrot.lane.b32.xlu0 %v1213_v4, %s5367_s0 }
 0x563   :  { %1299 = vrot.lane.b32.xlu0 %v1092_v61, %s5368_s13 }
 0x567   :  { %1347 = vrot.lane.b32.xlu0 %v1152_v53, %s5366_s1 }
 0x56b   :  { %1395 = vrot.lane.b32.xlu0 %v1212_v14, %s5367_s0 }
 0x578   :  { %v1308_v48 = vpop.permute.xlu0 %1307 }
 0x57c   :  { %v1356_v8 = vpop.permute.xlu0 %1355  ;;  %v6536_v7 = vpop.permute.xlu1 %1305 }
 0x57d   :  { %v1481_v37 = vsel %vm1473_vm13, %v1308_v48, %v1356_v8 }
 0x57e   :  { %v1494_v4 = vsel %vm1486_vm14, %v1481_v37, %v1404_v43 }
 0x580   :  { %v1454_v57 = vpop.permute.xlu0 %1453  ;;  %v6542_v20 = vpop.permute.xlu1 %1353 }
 0x581   :  { %v1508_v16 = vsel %vm1499_vm15, %v1495_v5, %v1454_v57 }
 0x582   :  { %v1558_v19 = vsel %vm1549_vm0, %v1508_v16, %v6386_v38 }
 0x583   :  { %v1571_v30 = vsel %vm1562_vm1, %v1558_v19, 1.0 }
 0x584   :  { %v6549_v63 = vand.u32 4294901760, %v1571_v30  ;;  %v1452_v21 = vpop.permute.xlu1 %1451 }
 0x585   :  { %v1507_v54 = vsel %vm1499_vm15, %v1494_v4, %v1452_v21  ;;  %v1214_v21 = vmul.f32 %v6349_v49, %v6130_v40  ;;  %v1150_v49 = vmul.f32 %v6337_v41, %v6272_v3  ;;  %v1513_v41 = vsel %vm1512_vm12, %v6261_v23, 0.0 }
 0x586   :  { %v6554_v29 = vsub.f32 %v1571_v30, %v6549_v63  ;;  %v1557_v18 = vsel %vm1549_vm0, %v1507_v54, %v6355_v13  ;;  %4461 = vmatprep.subr.mxu0 %v6549_v63  ;;  %v1275_v30 = vmul.f32 %v6323_v22, %v6073_v42  ;;  %v1151_v54 = vmul.f32 %v6333_v6, %v6250_v50 }
 0x587   :  { %v1570_v61 = vsel %vm1562_vm1, %v1557_v18, 1.0  ;;  %4462 = vmatpush3.msra.mxu0 %v6549_v63  ;;  %v1272_v18 = vmul.f32 %v6335_v59, %v6239_v15  ;;  %v1211_v22 = vmul.f32 %v6357_v36, %v6250_v50  ;;  %v1210_v6 = vmul.f32 %v6339_v0, %v6272_v3  ;;  %v8121_v0 = vld [vmem:[#allocation13_spill] sm:$0xff] }
 0x588   :  { %v6561_v38 = vand.u32 4294901760, %v1570_v61  ;;  %v6564_v53 = vand.u32 4294901760, %v6554_v29  ;;  %v1149_v59 = vmul.f32 %v6361_v31, %v6261_v23  ;;  %v1209_v36 = vmul.f32 %v6347_v2, %v6261_v23 }
 0x589   :  { %v1090_v31 = vmul.f32 %v6532_v44, %v6272_v3  ;;  %v1271_v2 = vmul.f32 %v6382_v62, %v6250_v50  ;;  %v1270_v44 = vmul.f32 %v6341_v12, %v6272_v3  ;;  %v1269_v62 = vmul.f32 %v6384_v10, %v6261_v23  ;;  %v1402_v10 = vpop.permute.xlu1 %1401 }
 0x58a   :  { %v6567_v14 = vsub.f32 %v1570_v61, %v6561_v38  ;;  %4463 = vmatprep.subr.mxu0 %v6561_v38  ;;  %v1744_v43 = vsub.f32 %v6554_v29, %v6564_v53  ;;  %v1273_v61 = vmul.f32 %v6329_v17, %v6201_v60  ;;  %v1089_v17 = vmul.f32 %v6534_v51, %v6261_v23  ;;  %v8128_v51 = vld [vmem:[#allocation6_spill] sm:$0xff] }
 0x58b   :  { %4464 = vmatpush3.msra.mxu0 %v6561_v38 }
 0x58c   :  { %v1745_v13 = vand.u32 4294901760, %v1744_v43  ;;  %v6574_v48 = vand.u32 4294901760, %v6567_v14  ;;  %v8122_v43 = vld [vmem:[#allocation12_spill] sm:$0xff] }
 0x58e   :  { %4488 = vmatprep.subr.mxu1 %v1745_v13  ;;  %v1751_v8 = vsub.f32 %v6567_v14, %v6574_v48 }
 0x58f   :  { %4489 = vmatpush3.msra.mxu1 %v1745_v13  ;;  %v8123_v13 = vld [vmem:[#allocation9_spill] sm:$0xff] }
 0x590   :  { %v1752_v52 = vand.u32 4294901760, %v1751_v8  ;;  %v8124_v8 = vld [vmem:[#allocation8_spill] sm:$0xff] }
 0x592   :  { %4490 = vmatprep.subr.mxu1 %v1752_v52 }
 0x593   :  { %4491 = vmatpush3.msra.mxu1 %v1752_v52  ;;  %v8125_v52 = vld [vmem:[#allocation11_spill] sm:$0xff] }
 0x5b6   :  { %v6578_v5 = vpop.xlane.xlu0 %1520 }
 0x5ba   :  { %v6580_v57 = vpop.xlane.xlu0 %1517 }
 0x5c2   :  { %v1057_v37 = vpop.permute.xlu0 %1056 }
 0x5c3   :  { %v1094_v16 = vmul.f32 %v1057_v37, %v6130_v40  ;;  %v8126_v37 = vld [vmem:[#allocation10_spill] sm:$0xff] }
 0x5c5   :  { %1303 = vrot.lane.b32.xlu1 %v1094_v16, %s5368_s13  ;;  %v8127_v16 = vld [vmem:[#allocation7_spill] sm:$0xff] }
 0x5c6   :  { %v1042_v19 = vpop.permute.xlu0 %1041 }
 0x5c7   :  { %v1091_v4 = vmul.f32 %v1042_v19, %v6250_v50 }
 0x5c9   :  { %1449 = vrot.lane.b32.xlu1 %v1275_v30, %s5369_s14  ;;  %1297 = vrot.lane.b32.xlu0 %v1091_v4, %s5368_s13  ;;  %v8129_v30 = vld [vmem:[#allocation5_spill] sm:$0xff]  ;;  %v8130_v4 = vld [vmem:[#allocation4_spill] sm:$0xff] }
 0x5ca   :  { %v1352_v19 = vpop.permute.xlu0 %1351 }
 0x5cd   :  { %1399 = vrot.lane.b32.xlu1 %v1214_v21, %s5367_s0  ;;  %1345 = vrot.lane.b32.xlu0 %v1151_v54, %s5366_s1  ;;  %v8131_v21 = vld [vmem:[#allocation3_spill] sm:$0xff] }
 0x5ce   :  { %v1302_v12 = vpop.permute.xlu0 %1301 }
 0x5d1   :  { %1443 = vrot.lane.b32.xlu0 %v1272_v18, %s5369_s14  ;;  %v8132_v18 = vld [vmem:[#allocation2_spill] sm:$0xff] }
 0x5d2   :  { %v1350_v54 = vpop.permute.xlu0 %1349 }
 0x5d3   :  { %v1478_v39 = vsel %vm1473_vm13, %v1302_v12, %v1350_v54 }
 0x5d5   :  { %1393 = vrot.lane.b32.xlu0 %v1211_v22, %s5367_s0 }
 0x5d6   :  { %v1448_v22 = vpop.permute.xlu0 %1447 }
 0x5d9   :  { %1343 = vrot.lane.b32.xlu0 %v1150_v49, %s5366_s1 }
 0x5dd   :  { %1391 = vrot.lane.b32.xlu0 %v1210_v6, %s5367_s0  ;;  %v1480_v6 = vsel %vm1473_vm13, %v6536_v7, %v6542_v20 }
 0x5e1   :  { %1341 = vrot.lane.b32.xlu0 %v1149_v59, %s5366_s1  ;;  %v1493_v59 = vsel %vm1486_vm14, %v1480_v6, %v1402_v10 }
 0x5e5   :  { %1389 = vrot.lane.b32.xlu0 %v1209_v36, %s5367_s0  ;;  %v1398_v36 = vpop.permute.xlu0 %1397 }
 0x5e9   :  { %v1300_v23 = vpop.permute.xlu0 %1299 }
 0x5f1   :  { %1514 = vadd.xlane.f32.xlu1 %v1513_v41 }
 0x602   :  { %1445 = vrot.lane.b32.xlu1 %v1273_v61, %s5369_s14 }
 0x603   :  { %1575 = vxpose.xlu0.b32.start [1/12] (short) (narrow) %v8121_v0, 16 }
 0x606   :  { %1295 = vrot.lane.b32.xlu1 %v1090_v31, %s5368_s13 }
 0x607   :  { %1576 = vxpose.xlu0.b32.cont [2/12] (short) (narrow) %v8122_v43, 16 }
 0x60a   :  { %1441 = vrot.lane.b32.xlu1 %v1271_v2, %s5369_s14 }
 0x60b   :  { %1577 = vxpose.xlu0.b32.cont [3/12] (short) (narrow) %v8123_v13, 16 }
 0x60e   :  { %1293 = vrot.lane.b32.xlu1 %v1089_v17, %s5368_s13 }
 0x60f   :  { %1578 = vxpose.xlu0.b32.cont [4/12] (short) (narrow) %v8124_v8, 16 }
 0x612   :  { %1439 = vrot.lane.b32.xlu1 %v1270_v44, %s5369_s14 }
 0x613   :  { %1579 = vxpose.xlu0.b32.cont [5/12] (short) (narrow) %v8125_v52, 16 }
 0x616   :  { %1437 = vrot.lane.b32.xlu1 %v1269_v62, %s5369_s14 }
 0x617   :  { %1580 = vxpose.xlu0.b32.cont [6/12] (short) (narrow) %v8126_v37, 16 }
 0x61b   :  { %1581 = vxpose.xlu0.b32.cont [7/12] (short) (narrow) %v8127_v16, 16 }
 0x61f   :  { %1582 = vxpose.xlu0.b32.cont [8/12] (short) (narrow) %v8128_v51, 16 }
 0x623   :  { %1583 = vxpose.xlu0.b32.cont [9/12] (short) (narrow) %v8129_v30, 16 }
 0x627   :  { %1584 = vxpose.xlu0.b32.cont [10/12] (short) (narrow) %v8130_v4, 16 }
 0x62b   :  { %1585 = vxpose.xlu0.b32.cont [11/12] (short) (narrow) %v8131_v21, 16 }
 0x62f   :  { %1586 = vxpose.xlu0.b32.end [12/12] (short) (narrow) %v8132_v18, 16 }
 0x637   :  { %v1304_v49 = vpop.permute.xlu1 %1303 }
 0x638   :  { %v1479_v17 = vsel %vm1473_vm13, %v1304_v49, %v1352_v19 }
 0x63b   :  { %v1450_v41 = vpop.permute.xlu1 %1449 }
 0x63c   :  { %v1506_v61 = vsel %vm1499_vm15, %v1493_v59, %v1450_v41 }
 0x63d   :  { %v1556_v31 = vsel %vm1549_vm0, %v1506_v61, %v6418_v11 }
 0x63e   :  { %v1569_v2 = vsel %vm1562_vm1, %v1556_v31, 1.0 }
 0x63f   :  { %v6654_v44 = vand.u32 4294901760, %v1569_v2  ;;  %v1400_v62 = vpop.permute.xlu1 %1399 }
 0x640   :  { %v1492_v26 = vsel %vm1486_vm14, %v1479_v17, %v1400_v62 }
 0x641   :  { %v6658_v7 = vsub.f32 %v1569_v2, %v6654_v44  ;;  %v1505_v20 = vsel %vm1499_vm15, %v1492_v26, %v1448_v22  ;;  %4465 = vmatprep.subr.mxu0 %v6654_v44  ;;  %v1348_v26 = vpop.permute.xlu0 %1347 }
 0x642   :  { %v1555_v11 = vsel %vm1549_vm0, %v1505_v20, %v6405_v32  ;;  %4466 = vmatpush3.msra.mxu0 %v6654_v44 }
 0x643   :  { %v1568_v19 = vsel %vm1562_vm1, %v1555_v11, 1.0  ;;  %v6667_v10 = vand.u32 4294901760, %v6658_v7 }
 0x644   :  { %v6669_v49 = vand.u32 4294901760, %v1568_v19 }
 0x645   :  { %v1758_v6 = vsub.f32 %v6658_v7, %v6667_v10  ;;  %v1396_v31 = vpop.permute.xlu0 %1395 }
 0x646   :  { %v6674_v59 = vsub.f32 %v1568_v19, %v6669_v49  ;;  %4467 = vmatprep.subr.mxu0 %v6669_v49 }
 0x647   :  { %4468 = vmatpush3.msra.mxu0 %v6669_v49  ;;  %v1759_v32 = vand.u32 4294901760, %v1758_v6  ;;  %v1477_v6 = vsel %vm1473_vm13, %v1300_v23, %v1348_v26  ;;  %v1491_v23 = vsel %vm1486_vm14, %v1478_v39, %v1398_v36 }
 0x648   :  { %v6679_v22 = vand.u32 4294901760, %v6674_v59  ;;  %v1490_v3 = vsel %vm1486_vm14, %v1477_v6, %v1396_v31 }
 0x649   :  { %4492 = vmatprep.subr.mxu1 %v1759_v32  ;;  %v1298_v2 = vpop.permute.xlu0 %1297 }
 0x64a   :  { %4493 = vmatpush3.msra.mxu1 %v1759_v32  ;;  %v1765_v41 = vsub.f32 %v6674_v59, %v6679_v22 }
 0x64c   :  { %v1766_v61 = vand.u32 4294901760, %v1765_v41 }
 0x64d   :  { %v1346_v17 = vpop.permute.xlu0 %1345 }
 0x64e   :  { %4494 = vmatprep.subr.mxu1 %v1766_v61 }
 0x64f   :  { %4495 = vmatpush3.msra.mxu1 %v1766_v61 }
 0x651   :  { %v1444_v62 = vpop.permute.xlu0 %1443 }
 0x652   :  { %v1503_v15 = vsel %vm1499_vm15, %v1490_v3, %v1444_v62 }
 0x653   :  { %v1553_v50 = vsel %vm1549_vm0, %v1503_v15, %v6483_v34 }
 0x654   :  { %v1566_v41 = vsel %vm1562_vm1, %v1553_v50, 1.0 }
 0x655   :  { %v1394_v20 = vpop.permute.xlu0 %1393  ;;  %v6693_v40 = vand.u32 4294901760, %v1566_v41 }
 0x657   :  { %v6699_v62 = vsub.f32 %v1566_v41, %v6693_v40 }
 0x659   :  { %v1344_v11 = vpop.permute.xlu0 %1343 }
 0x65d   :  { %v1392_v19 = vpop.permute.xlu0 %1391 }
 0x661   :  { %v1342_v32 = vpop.permute.xlu0 %1341 }
 0x665   :  { %v6691_v61 = vpop.permute.xlu0 %1389 }
 0x67a   :  { %v6689_v60 = vpop.xlane.xlu1 %1514 }
 0x67e   :  { %v1446_v26 = vpop.permute.xlu1 %1445 }
 0x67f   :  { %v1504_v3 = vsel %vm1499_vm15, %v1491_v23, %v1446_v26  ;;  %v1591_v31 = vpop.trf.xlu0  ;;  %v6719_v23 = vand.u32 4294901760, %v6699_v62  ;;  %v1476_v26 = vsel %vm1473_vm13, %v1298_v2, %v1346_v17 }
 0x680   :  { %v1554_v15 = vsel %vm1549_vm0, %v1504_v3, %v6437_v46  ;;  %v1609_v50 = vsel %vm1607_vm2, %v1591_v31, 0  ;;  %v1489_v31 = vsel %vm1486_vm14, %v1476_v26, %v1394_v20 }
 0x681   :  { %v1567_v34 = vsel %vm1562_vm1, %v1554_v15, 1.0  ;;  %v6705_v6 = vand.u32 4294901760, %v1609_v50  ;;  %v1779_v26 = vsub.f32 %v6699_v62, %v6719_v23 }
 0x682   :  { %v6707_v12 = vand.u32 4294901760, %v1567_v34  ;;  %v1296_v54 = vpop.permute.xlu1 %1295 }
 0x683   :  { %8133 = vst [vmem:[#allocation20_spill] sm:$0xff] %v6705_v6  ;;  %v6710_v39 = vsub.f32 %v1609_v50, %v6705_v6  ;;  %v1592_v36 = vpop.trf.xlu0  ;;  %4506 = vmatprep.mubr.f32.mxu1 %v6705_v6  ;;  %v1475_v28 = vsel %vm1473_vm13, %v1296_v54, %v1344_v11 }
 0x684   :  { %v6714_v41 = vsub.f32 %v1567_v34, %v6707_v12  ;;  %4469 = vmatprep.subr.mxu0 %v6707_v12  ;;  %v1612_v46 = vsel %vm1607_vm2, %v1592_v36, 0  ;;  %vm4260_vm2 = vcmask 318464  }
 0x685   :  { %8134 = vst [vmem:[#allocation24_spill] sm:$0xff] %v6710_v39  ;;  %4470 = vmatpush3.msra.mxu0 %v6707_v12  ;;  %v6724_v3 = vand.u32 4294901760, %v6710_v39  ;;  %v6731_v34 = vand.u32 4294901760, %v1612_v46 }
 0x686   :  { %4471 = vmatprep.subr.mxu0 %v6693_v40  ;;  %v1442_v15 = vpop.permute.xlu1 %1441  ;;  %v6729_v50 = vand.u32 4294901760, %v6714_v41 }
 0x687   :  { %8135 = vst [vmem:[#allocation18_spill] sm:$0xff] %v6724_v3  ;;  %8136 = vst [vmem:[#allocation31_spill] sm:$0xff] %v6731_v34  ;;  %v1502_v36 = vsel %vm1499_vm15, %v1489_v31, %v1442_v15  ;;  %4472 = vmatpush3.msra.mxu0 %v6693_v40  ;;  %v1694_v2 = vsub.f32 %v6710_v39, %v6724_v3  ;;  %v6749_v45 = vsub.f32 %v1612_v46, %v6731_v34 }
 0x688   :  { %v1552_v17 = vsel %vm1549_vm0, %v1502_v36, %v6578_v5  ;;  %v1772_v20 = vsub.f32 %v6714_v41, %v6729_v50  ;;  %v1780_v36 = vand.u32 4294901760, %v1779_v26 }
 0x689   :  { %v1565_v42 = vsel %vm1562_vm1, %v1552_v17, 1.0  ;;  %v6744_v1 = vand.u32 4294901760, %v1694_v2  ;;  %8137 = vst [vmem:[#allocation33_spill] sm:$0xff] %v6749_v45  ;;  %v1488_v2 = vsel %vm1486_vm14, %v1475_v28, %v1392_v19  ;;  %v6763_v11 = vand.u32 4294901760, %v6749_v45 }
 0x68a   :  { %v6746_v58 = vand.u32 4294901760, %v1565_v42  ;;  %v1294_v31 = vpop.permute.xlu1 %1293  ;;  %v1773_v15 = vand.u32 4294901760, %v1772_v20 }
 0x68b   :  { %4479 = vmatprep.mubr.f32.mxu0 %v6744_v1  ;;  %8138 = vst [vmem:[#allocation35_spill] sm:$0xff] %v6763_v11 }
 0x68c   :  { %v6754_v5 = vsub.f32 %v1565_v42, %v6746_v58  ;;  %4473 = vmatprep.subr.mxu0 %v6746_v58  ;;  %4496 = vmatprep.subr.mxu1 %v1773_v15  ;;  %v1474_v42 = vsel %vm1473_vm13, %v1294_v31, %v1342_v32  ;;  %v1704_v32 = vsub.f32 %v6749_v45, %v6763_v11 }
 0x68d   :  { %4474 = vmatpush3.msra.mxu0 %v6746_v58  ;;  %4497 = vmatpush3.msra.mxu1 %v1773_v15  ;;  %v1487_v15 = vsel %vm1486_vm14, %v1474_v42, %v6691_v61  ;;  %vm4251_vm14 = vcmask 293888  }
 0x68e   :  { %4498 = vmatprep.subr.mxu1 %v1780_v36  ;;  %v1440_v17 = vpop.permute.xlu1 %1439  ;;  %v6760_v46 = vand.u32 4294901760, %v6754_v5 }
 0x68f   :  { %v1501_v54 = vsel %vm1499_vm15, %v1488_v2, %v1440_v17  ;;  %4499 = vmatpush3.msra.mxu1 %v1780_v36  ;;  %v6787_v17 = vand.u32 4294901760, %v1704_v32 }
 0x690   :  { %v1551_v20 = vsel %vm1549_vm0, %v1501_v54, %v6580_v57  ;;  %v1786_v26 = vsub.f32 %v6754_v5, %v6760_v46 }
 0x691   :  { %v1564_v28 = vsel %vm1562_vm1, %v1551_v20, 1.0  ;;  %8139 = vst [vmem:[#allocation22_spill] sm:$0xff] %v6787_v17 }
 0x692   :  { %v6772_v19 = vand.u32 4294901760, %v1564_v28  ;;  %v1438_v0 = vpop.permute.xlu1 %1437  ;;  %v1787_v43 = vand.u32 4294901760, %v1786_v26 }
 0x693   :  { %v1500_v31 = vsel %vm1499_vm15, %v1487_v15, %v1438_v0  ;;  %vm4254_vm15 = vcmask 302080  }
 0x694   :  { %v1791_v36 = vsub.f32 %v1564_v28, %v6772_v19  ;;  %v1550_v57 = vsel %vm1549_vm0, %v1500_v31, %v6689_v60  ;;  %4475 = vmatprep.subr.mxu0 %v6772_v19  ;;  %4500 = vmatprep.subr.mxu1 %v1787_v43 }
 0x695   :  { %v1563_v2 = vsel %vm1562_vm1, %v1550_v57, 1.0  ;;  %4476 = vmatpush3.msra.mxu0 %v6772_v19  ;;  %4501 = vmatpush3.msra.mxu1 %v1787_v43  ;;  %vm4257_vm1 = vcmask 310272  }
 0x696   :  { %v6785_v61 = vand.u32 4294901760, %v1563_v2  ;;  %v6789_v42 = vand.u32 4294901760, %v1791_v36 }
 0x698   :  { %v1798_v0 = vsub.f32 %v1563_v2, %v6785_v61  ;;  %4477 = vmatprep.subr.mxu0 %v6785_v61  ;;  %v1793_v60 = vsub.f32 %v1791_v36, %v6789_v42 }
 0x699   :  { %4478 = vmatpush3.msra.mxu0 %v6785_v61 }
 0x69a   :  { %4480 = vmatmul.mubr.f32.vlgmr.msra.gmra.mxu0 %v6787_v17  ;;  %4509 = vmatprep.subr.mxu0 %v6396_v24  ;;  %v1794_v54 = vand.u32 4294901760, %v1793_v60  ;;  %v6797_v43 = vand.u32 4294901760, %v1798_v0 }
 0x69b   :  { %4510 = vmatpush3.msra.mxu0 %v6396_v24  ;;  %4533 = vmatprep.mubr.f32.mxu0 %v6710_v39 }
 0x69c   :  { %4502 = vmatprep.subr.mxu1 %v1794_v54  ;;  %4511 = vmatprep.subr.mxu0 %v6428_v33  ;;  %v1800_v20 = vsub.f32 %v1798_v0, %v6797_v43 }
 0x69d   :  { %4503 = vmatpush3.msra.mxu1 %v1794_v54  ;;  %4512 = vmatpush3.msra.mxu0 %v6428_v33 }
 0x69e   :  { %4513 = vmatprep.subr.mxu0 %v6474_v35  ;;  %v1801_v26 = vand.u32 4294901760, %v1800_v20 }
 0x69f   :  { %4514 = vmatpush3.msra.mxu0 %v6474_v35 }
 0x6a0   :  { %4504 = vmatprep.subr.mxu1 %v1801_v26  ;;  %4515 = vmatprep.subr.mxu0 %v6554_v29 }
 0x6a1   :  { %4505 = vmatpush3.msra.mxu1 %v1801_v26  ;;  %4516 = vmatpush3.msra.mxu0 %v6554_v29 }
 0x6a2   :  { %4507 = vmatmul.mubr.f32.vlgmr.msra.gmra.mxu1 %v6731_v34  ;;  %4517 = vmatprep.subr.mxu0 %v6567_v14 }
 0x6a3   :  { %4536 = vmatprep.subr.mxu1 %v6393_v47  ;;  %4518 = vmatpush3.msra.mxu0 %v6567_v14 }
 0x6a4   :  { %4537 = vmatpush3.msra.mxu1 %v6393_v47  ;;  %4560 = vmatprep.mubr.f32.mxu1 %v6724_v3 }
 0x6a5   :  { %4519 = vmatprep.subr.mxu0 %v6658_v7  ;;  %4538 = vmatprep.subr.mxu1 %v6425_v27 }
 0x6a6   :  { %4520 = vmatpush3.msra.mxu0 %v6658_v7  ;;  %4539 = vmatpush3.msra.mxu1 %v6425_v27 }
 0x6a7   :  { %4521 = vmatprep.subr.mxu0 %v6674_v59  ;;  %4540 = vmatprep.subr.mxu1 %v6471_v55 }
 0x6a8   :  { %4522 = vmatpush3.msra.mxu0 %v6674_v59  ;;  %4541 = vmatpush3.msra.mxu1 %v6471_v55 }
 0x6a9   :  { %4523 = vmatprep.subr.mxu0 %v6714_v41  ;;  %4542 = vmatprep.subr.mxu1 %v6549_v63 }
 0x6aa   :  { %4524 = vmatpush3.msra.mxu0 %v6714_v41  ;;  %4543 = vmatpush3.msra.mxu1 %v6549_v63 }
 0x6ab   :  { %4525 = vmatprep.subr.mxu0 %v6699_v62  ;;  %4544 = vmatprep.subr.mxu1 %v6561_v38 }
 0x6ac   :  { %4526 = vmatpush3.msra.mxu0 %v6699_v62  ;;  %4545 = vmatpush3.msra.mxu1 %v6561_v38 }
 0x6ad   :  { %4527 = vmatprep.subr.mxu0 %v6754_v5  ;;  %4546 = vmatprep.subr.mxu1 %v6654_v44 }
 0x6ae   :  { %4528 = vmatpush3.msra.mxu0 %v6754_v5  ;;  %4547 = vmatpush3.msra.mxu1 %v6654_v44 }
 0x6af   :  { %4529 = vmatprep.subr.mxu0 %v1791_v36  ;;  %4548 = vmatprep.subr.mxu1 %v6669_v49 }
 0x6b0   :  { %4530 = vmatpush3.msra.mxu0 %v1791_v36  ;;  %4549 = vmatpush3.msra.mxu1 %v6669_v49  ;;  %v8147_v36 = vld [vmem:[#allocation29_spill] sm:$0xff] }
 0x6b1   :  { %4531 = vmatprep.subr.mxu0 %v1798_v0  ;;  %4550 = vmatprep.subr.mxu1 %v6707_v12 }
 0x6b2   :  { %4532 = vmatpush3.msra.mxu0 %v1798_v0  ;;  %4551 = vmatpush3.msra.mxu1 %v6707_v12  ;;  %v8148_v0 = vld [vmem:[#allocation23_spill] sm:$0xff] }
 0x6b3   :  { %4534 = vmatmul.mubr.f32.vlgmr.msra.gmra.mxu0 %v6749_v45  ;;  %4552 = vmatprep.subr.mxu1 %v6693_v40  ;;  %v8149_v60 = vsub.s32 4, %v8148_v0  ;;  %v8151_v26 = vsub.s32 6, %v8148_v0 }
 0x6b4   :  { %4563 = vmatprep.subr.mxu0 %v6401_v9  ;;  %4553 = vmatpush3.msra.mxu1 %v6693_v40 }
 0x6b5   :  { %4564 = vmatpush3.msra.mxu0 %v6401_v9  ;;  %4587 = vmatprep.mubr.f32.mxu0 %v6705_v6 }
 0x6b6   :  { %4554 = vmatprep.subr.mxu1 %v6746_v58  ;;  %4565 = vmatprep.subr.mxu0 %v6433_v25 }
 0x6b7   :  { %4555 = vmatpush3.msra.mxu1 %v6746_v58  ;;  %4566 = vmatpush3.msra.mxu0 %v6433_v25 }
 0x6b8   :  { %4556 = vmatprep.subr.mxu1 %v6772_v19  ;;  %4567 = vmatprep.subr.mxu0 %v6479_v56 }
 0x6b9   :  { %4557 = vmatpush3.msra.mxu1 %v6772_v19  ;;  %4568 = vmatpush3.msra.mxu0 %v6479_v56 }
 0x6ba   :  { %4558 = vmatprep.subr.mxu1 %v6785_v61  ;;  %4569 = vmatprep.subr.mxu0 %v6564_v53 }
 0x6bb   :  { %4559 = vmatpush3.msra.mxu1 %v6785_v61  ;;  %4570 = vmatpush3.msra.mxu0 %v6564_v53 }
 0x6bc   :  { %4561 = vmatmul.mubr.f32.vlgmr.msra.gmra.mxu1 %v6763_v11  ;;  %4571 = vmatprep.subr.mxu0 %v6574_v48 }
 0x6bd   :  { %4590 = vmatprep.subr.mxu1 %v6393_v47  ;;  %4572 = vmatpush3.msra.mxu0 %v6574_v48 }
 0x6be   :  { %4591 = vmatpush3.msra.mxu1 %v6393_v47  ;;  %4614 = vmatprep.mubr.f32.mxu1 %v6705_v6 }
 0x6bf   :  { %4573 = vmatprep.subr.mxu0 %v6667_v10  ;;  %4592 = vmatprep.subr.mxu1 %v6425_v27 }
 0x6c0   :  { %4574 = vmatpush3.msra.mxu0 %v6667_v10  ;;  %4593 = vmatpush3.msra.mxu1 %v6425_v27 }
 0x6c1   :  { %4575 = vmatprep.subr.mxu0 %v6679_v22  ;;  %4594 = vmatprep.subr.mxu1 %v6471_v55 }
 0x6c2   :  { %4576 = vmatpush3.msra.mxu0 %v6679_v22  ;;  %4595 = vmatpush3.msra.mxu1 %v6471_v55 }
 0x6c3   :  { %4577 = vmatprep.subr.mxu0 %v6729_v50  ;;  %4596 = vmatprep.subr.mxu1 %v6549_v63 }
 0x6c4   :  { %4578 = vmatpush3.msra.mxu0 %v6729_v50  ;;  %4597 = vmatpush3.msra.mxu1 %v6549_v63  ;;  %v8144_v50 = vld [vmem:[#allocation25_spill] sm:$0xff] }
 0x6c5   :  { %4579 = vmatprep.subr.mxu0 %v6719_v23  ;;  %4598 = vmatprep.subr.mxu1 %v6561_v38 }
 0x6c6   :  { %4580 = vmatpush3.msra.mxu0 %v6719_v23  ;;  %4599 = vmatpush3.msra.mxu1 %v6561_v38 }
 0x6c7   :  { %4581 = vmatprep.subr.mxu0 %v6760_v46  ;;  %4600 = vmatprep.subr.mxu1 %v6654_v44 }
 0x6c8   :  { %4582 = vmatpush3.msra.mxu0 %v6760_v46  ;;  %4601 = vmatpush3.msra.mxu1 %v6654_v44  ;;  %v8145_v46 = vld [vmem:[#allocation26_spill] sm:$0xff] }
 0x6c9   :  { %4583 = vmatprep.subr.mxu0 %v6789_v42  ;;  %4602 = vmatprep.subr.mxu1 %v6669_v49 }
 0x6ca   :  { %4584 = vmatpush3.msra.mxu0 %v6789_v42  ;;  %4603 = vmatpush3.msra.mxu1 %v6669_v49 }
 0x6cb   :  { %4585 = vmatprep.subr.mxu0 %v6797_v43  ;;  %4604 = vmatprep.subr.mxu1 %v6707_v12 }
 0x6cc   :  { %4586 = vmatpush3.msra.mxu0 %v6797_v43  ;;  %4605 = vmatpush3.msra.mxu1 %v6707_v12  ;;  %v8150_v43 = vsub.s32 5, %v8148_v0 }
 0x6cd   :  { %4588 = vmatmul.mubr.f32.vlgmr.msra.gmra.mxu0 %v6731_v34  ;;  %4606 = vmatprep.subr.mxu1 %v6693_v40 }
 0x6ce   :  { %4607 = vmatpush3.msra.mxu1 %v6693_v40  ;;  %4641 = vmatprep.mubr.f32.mxu0 %v6744_v1 }
 0x6cf   :  { %4608 = vmatprep.subr.mxu1 %v6746_v58 }
 0x6d0   :  { %4609 = vmatpush3.msra.mxu1 %v6746_v58 }
 0x6d1   :  { %4610 = vmatprep.subr.mxu1 %v6772_v19 }
 0x6d2   :  { %4611 = vmatpush3.msra.mxu1 %v6772_v19  ;;  %v8146_v19 = vld [vmem:[#allocation30_spill] sm:$0xff] }
 0x6d3   :  { %4612 = vmatprep.subr.mxu1 %v6785_v61 }
 0x6d4   :  { %4613 = vmatpush3.msra.mxu1 %v6785_v61 }
 0x6d5   :  { %4615 = vmatmul.mubr.f32.vlgmr.msra.gmra.mxu1 %v6731_v34 }
 0x6d6   :  { %4668 = vmatprep.mubr.f32.mxu1 %v6705_v6 }
 0x75a   :  { %v4481_v47 = vpop.f32.mrf.mxu0 }
 0x75c   :  { %v1697_v40 = vpop.f32.mrf.mxu0 }
 0x762   :  { %v4508_v24 = vpop.f32.mrf.mxu1 }
 0x763   :  { %v1845_v58 = vadd.f32 %v4508_v24, %v4481_v47 }
 0x764   :  { %v1838_v9 = vpop.f32.mrf.mxu1 }
 0x765   :  { %v1839_v55 = vadd.f32 %v1838_v9, %v1697_v40  ;;  %v8152_v40 = vsub.s32 7, %v8148_v0 }
 0x773   :  { %v4535_v1 = vpop.f32.mrf.mxu0 }
 0x774   :  { %v1948_v35 = vadd.f32 %v4535_v1, %v1845_v58 }
 0x775   :  { %v1940_v27 = vpop.f32.mrf.mxu0 }
 0x776   :  { %v1941_v63 = vadd.f32 %v1940_v27, %v1839_v55 }
 0x77c   :  { %v4562_v33 = vpop.f32.mrf.mxu1 }
 0x77d   :  { %v2041_v29 = vadd.f32 %v4562_v33, %v1948_v35 }
 0x77e   :  { %v2032_v56 = vpop.f32.mrf.mxu1 }
 0x77f   :  { %v2033_v53 = vadd.f32 %v2032_v56, %v1941_v63 }
 0x78d   :  { %v4589_v25 = vpop.f32.mrf.mxu0 }
 0x78e   :  { %v2154_v14 = vadd.f32 %v4589_v25, %v2041_v29 }
 0x78f   :  { %v2147_v38 = vpop.f32.mrf.mxu0 }
 0x790   :  { %v2148_v44 = vadd.f32 %v2147_v38, %v2033_v53 }
 0x795   :  { %v4616_v48 = vpop.f32.mrf.mxu1 }
 0x796   :  { %v6902_v7 = vadd.f32 %v4616_v48, %v2154_v14 }
 0x797   :  { %v2236_v10 = vpop.f32.mrf.mxu1 }
 0x798   :  { %8140 = vst [vmem:[#allocation28_spill] sm:$0xff] %v6902_v7  ;;  %v6904_v49 = vadd.f32 %v2236_v10, %v2148_v44  ;;  %v6907_v59 = vmul.f32 4.0, %v6902_v7 }
 0x79a   :  { %8141 = vst [vmem:[#allocation8_spill] sm:$0xff] %v6904_v49  ;;  %8142 = vst [vmem:[#allocation7_spill] sm:$0xff] %v6907_v59  ;;  %2266 = vrot.lane.b32.xlu1 %v6907_v59, %s5370_s15  ;;  %v6912_v22 = vmul.f32 4.0, %v6904_v49 }
 0x79c   :  { %8143 = vst [vmem:[#allocation6_spill] sm:$0xff] %v6912_v22 }
 0x79e   :  { %2264 = vrot.lane.b32.xlu1 %v6912_v22, %s5370_s15 }
 0x80c   :  { %v2267_v62 = vpop.permute.xlu1 %2266 }
 0x80d   :  { %5309 = vrcp.f32 %v2267_v62 }
 0x810   :  { %v2265_v12 = vpop.permute.xlu1 %2264 }
 0x811   :  { %5311 = vrcp.f32 %v2265_v12 }
 0x81a   :  { %v5310_v41 = vpop.eup %5309 }
 0x81b   :  { %v2273_v23 = vmul.f32 %v5310_v41, %v6902_v7 }
 0x81d   :  { %v2857_v5 = vrot.slane %v2273_v23, %v8144_v50  ;;  %v2937_v28 = vrot.slane %v2273_v23, %v8145_v46  ;;  %v3017_v15 = vrot.slane %v2273_v23, %v8146_v19  ;;  %v3097_v57 = vrot.slane %v2273_v23, %v8147_v36 }
 0x81e   :  { %v5312_v32 = vpop.eup %5311 }
 0x81f   :  { %2859 = vrot.lane.b32.xlu1 %v2857_v5, %s5371_s2  ;;  %v2271_v31 = vmul.f32 %v5312_v32, %v6904_v49 }
 0x821   :  { %v2297_v2 = vrot.slane %v2271_v31, %v8145_v46  ;;  %v2377_v61 = vrot.slane %v2271_v31, %v8146_v19  ;;  %v2457_v42 = vrot.slane %v2271_v31, %v8147_v36  ;;  %v2537_v54 = vrot.slane %v2271_v31, %v8149_v60 }
 0x822   :  { %v2617_v20 = vrot.slane %v2271_v31, %v8150_v43  ;;  %v2697_v47 = vrot.slane %v2271_v31, %v8151_v26  ;;  %v2777_v24 = vrot.slane %v2271_v31, %v8152_v40  ;;  %v2277_v1 = vrot.slane %v2271_v31, %v8144_v50 }
 0x823   :  { %2939 = vrot.lane.b32.xlu1 %v2937_v28, %s5372_s16 }
 0x827   :  { %3019 = vrot.lane.b32.xlu1 %v3017_v15, %s5373_s17 }
 0x82b   :  { %3099 = vrot.lane.b32.xlu1 %v3097_v57, %s5374_s18 }
 0x82f   :  { %2299 = vrot.lane.b32.xlu1 %v2297_v2, %s5375_s19 }
 0x833   :  { %2379 = vrot.lane.b32.xlu1 %v2377_v61, %s5376_s20 }
 0x837   :  { %2459 = vrot.lane.b32.xlu1 %v2457_v42, %s5377_s21 }
 0x83b   :  { %2539 = vrot.lane.b32.xlu1 %v2537_v54, %s5378_s22 }
 0x83f   :  { %2619 = vrot.lane.b32.xlu1 %v2617_v20, %s5379_s23 }
 0x843   :  { %2699 = vrot.lane.b32.xlu1 %v2697_v47, %s5380_s24 }
 0x847   :  { %2779 = vrot.lane.b32.xlu1 %v2777_v24, %s5381_s25  ;;  %v8153_v24 = vld [vmem:[#allocation12_spill] sm:$0xff] }
 0x84b   :  { %2279 = vrot.lane.b32.xlu1 %v2277_v1, %s5382_s26 }
 0x891   :  { %v6934_v9 = vpop.permute.xlu1 %2859 }
 0x892   :  { %v2873_v27 = vmul.f32 %v6934_v9, %v8132_v18  ;;  %v2872_v58 = vmul.f32 %v6934_v9, %v8131_v21  ;;  %v2871_v35 = vmul.f32 %v6934_v9, %v8130_v4  ;;  %v2870_v53 = vmul.f32 %v6934_v9, %v8129_v30 }
 0x893   :  { %v2869_v44 = vmul.f32 %v6934_v9, %v8128_v51  ;;  %v2868_v12 = vmul.f32 %v6934_v9, %v8127_v16  ;;  %v2867_v19 = vmul.f32 %v6934_v9, %v8126_v37  ;;  %v2866_v36 = vmul.f32 %v6934_v9, %v8125_v52 }
 0x894   :  { %2908 = vrot.lane.b32.xlu1 %v2873_v27, %s5383_s27  ;;  %v2865_v61 = vmul.f32 %v6934_v9, %v8124_v8  ;;  %v2864_v60 = vmul.f32 %v6934_v9, %v8123_v13  ;;  %v2863_v1 = vmul.f32 %v6934_v9, %v8153_v24 }
 0x895   :  { %v6939_v33 = vpop.permute.xlu1 %2939 }
 0x896   :  { %v2953_v25 = vmul.f32 %v6939_v33, %v8132_v18  ;;  %v2952_v56 = vmul.f32 %v6939_v33, %v8131_v21  ;;  %v2951_v63 = vmul.f32 %v6939_v33, %v8130_v4  ;;  %v2950_v10 = vmul.f32 %v6939_v33, %v8129_v30 }
 0x897   :  { %v2949_v5 = vmul.f32 %v6939_v33, %v8128_v51  ;;  %v2948_v46 = vmul.f32 %v6939_v33, %v8127_v16  ;;  %v2947_v31 = vmul.f32 %v6939_v33, %v8126_v37  ;;  %v2946_v42 = vmul.f32 %v6939_v33, %v8125_v52 }
 0x898   :  { %2906 = vrot.lane.b32.xlu1 %v2872_v58, %s5383_s27  ;;  %2988 = vrot.lane.b32.xlu0 %v2953_v25, %s5384_s28  ;;  %v2945_v20 = vmul.f32 %v6939_v33, %v8124_v8  ;;  %v2944_v26 = vmul.f32 %v6939_v33, %v8123_v13 }
 0x899   :  { %v6947_v55 = vpop.permute.xlu1 %3019 }
 0x89a   :  { %v3033_v29 = vmul.f32 %v6947_v55, %v8132_v18  ;;  %v3032_v48 = vmul.f32 %v6947_v55, %v8131_v21  ;;  %v3031_v62 = vmul.f32 %v6947_v55, %v8130_v4  ;;  %v3030_v23 = vmul.f32 %v6947_v55, %v8129_v30 }
 0x89b   :  { %v3029_v32 = vmul.f32 %v6947_v55, %v8128_v51  ;;  %v3028_v2 = vmul.f32 %v6947_v55, %v8127_v16  ;;  %v3027_v0 = vmul.f32 %v6947_v55, %v8126_v37  ;;  %v3026_v43 = vmul.f32 %v6947_v55, %v8125_v52 }
 0x89c   :  { %2904 = vrot.lane.b32.xlu0 %v2871_v35, %s5383_s27  ;;  %2986 = vrot.lane.b32.xlu1 %v2952_v56, %s5384_s28  ;;  %v3025_v25 = vmul.f32 %v6947_v55, %v8124_v8  ;;  %v2943_v35 = vmul.f32 %v6939_v33, %v8153_v24  ;;  %v8154_v56 = vld [vmem:[#allocation13_spill] sm:$0xff] }
 0x89d   :  { %v6959_v38 = vpop.permute.xlu1 %3099 }
 0x89e   :  { %v3113_v14 = vmul.f32 %v6959_v38, %v8132_v18  ;;  %v3112_v41 = vmul.f32 %v6959_v38, %v8131_v21  ;;  %v3111_v28 = vmul.f32 %v6959_v38, %v8130_v4  ;;  %v3110_v15 = vmul.f32 %v6959_v38, %v8129_v30 }
 0x89f   :  { %v3109_v57 = vmul.f32 %v6959_v38, %v8128_v51  ;;  %v3108_v54 = vmul.f32 %v6959_v38, %v8127_v16  ;;  %v3107_v47 = vmul.f32 %v6959_v38, %v8126_v37  ;;  %v3106_v27 = vmul.f32 %v6959_v38, %v8125_v52 }
 0x8a0   :  { %2984 = vrot.lane.b32.xlu1 %v2951_v63, %s5384_s28  ;;  %3068 = vrot.lane.b32.xlu0 %v3033_v29, %s5385_s29  ;;  %v2862_v63 = vmul.f32 %v6934_v9, %v8154_v56  ;;  %v3105_v29 = vmul.f32 %v6959_v38, %v8124_v8 }
 0x8a1   :  { %v7045_v40 = vpop.permute.xlu1 %2299 }
 0x8a4   :  { %2902 = vrot.lane.b32.xlu0 %v2870_v53, %s5383_s27  ;;  %3148 = vrot.lane.b32.xlu1 %v3113_v14, %s5386_s30  ;;  %v3024_v14 = vmul.f32 %v6947_v55, %v8123_v13 }
 0x8a5   :  { %v7055_v58 = vpop.permute.xlu1 %2379 }
 0x8a8   :  { %3066 = vrot.lane.b32.xlu0 %v3032_v48, %s5385_s29  ;;  %2900 = vrot.lane.b32.xlu1 %v2869_v44, %s5383_s27  ;;  %v3023_v48 = vmul.f32 %v6947_v55, %v8153_v24  ;;  %v2942_v44 = vmul.f32 %v6939_v33, %v8154_v56  ;;  %v2393_v33 = vmul.f32 %v7055_v58, %v8132_v18 }
 0x8a9   :  { %v7067_v53 = vpop.permute.xlu1 %2459 }
 0x8ac   :  { %2982 = vrot.lane.b32.xlu0 %v2950_v10, %s5384_s28  ;;  %3064 = vrot.lane.b32.xlu1 %v3031_v62, %s5385_s29  ;;  %v2313_v10 = vmul.f32 %v7045_v40, %v8132_v18  ;;  %v2312_v62 = vmul.f32 %v7045_v40, %v8131_v21 }
 0x8ad   :  { %v7077_v9 = vpop.permute.xlu1 %2539 }
 0x8b0   :  { %2898 = vrot.lane.b32.xlu1 %v2868_v12, %s5383_s27  ;;  %3146 = vrot.lane.b32.xlu0 %v3112_v41, %s5386_s30  ;;  %v2473_v12 = vmul.f32 %v7067_v53, %v8132_v18 }
 0x8b1   :  { %v7089_v41 = vpop.permute.xlu1 %2619 }
 0x8b4   :  { %3062 = vrot.lane.b32.xlu1 %v3030_v23, %s5385_s29  ;;  %2980 = vrot.lane.b32.xlu0 %v2949_v5, %s5384_s28  ;;  %v2389_v23 = vmul.f32 %v7055_v58, %v8128_v51 }
 0x8b5   :  { %v7099_v5 = vpop.permute.xlu1 %2699 }
 0x8b8   :  { %2978 = vrot.lane.b32.xlu1 %v2948_v46, %s5384_s28  ;;  %3144 = vrot.lane.b32.xlu0 %v3111_v28, %s5386_s30  ;;  %v2311_v46 = vmul.f32 %v7045_v40, %v8130_v4  ;;  %v2551_v28 = vmul.f32 %v7077_v9, %v8130_v4 }
 0x8bc   :  { %2896 = vrot.lane.b32.xlu0 %v2867_v19, %s5383_s27  ;;  %3142 = vrot.lane.b32.xlu1 %v3110_v15, %s5386_s30  ;;  %v2392_v19 = vmul.f32 %v7055_v58, %v8131_v21  ;;  %v2713_v15 = vmul.f32 %v7099_v5, %v8132_v18 }
 0x8c0   :  { %3060 = vrot.lane.b32.xlu0 %v3029_v32, %s5385_s29  ;;  %2976 = vrot.lane.b32.xlu1 %v2947_v31, %s5384_s28  ;;  %v7111_v32 = vpop.permute.xlu1 %2779  ;;  %v2310_v31 = vmul.f32 %v7045_v40, %v8129_v30 }
 0x8c4   :  { %2894 = vrot.lane.b32.xlu0 %v2866_v36, %s5383_s27  ;;  %3140 = vrot.lane.b32.xlu1 %v3109_v57, %s5386_s30  ;;  %v2388_v36 = vmul.f32 %v7055_v58, %v8127_v16  ;;  %v7121_v57 = vpop.permute.xlu1 %2279 }
 0x8c8   :  { %3058 = vrot.lane.b32.xlu0 %v3028_v2, %s5385_s29  ;;  %2892 = vrot.lane.b32.xlu1 %v2865_v61, %s5383_s27  ;;  %v2391_v2 = vmul.f32 %v7055_v58, %v8130_v4  ;;  %v2550_v61 = vmul.f32 %v7077_v9, %v8129_v30 }
 0x8cc   :  { %2974 = vrot.lane.b32.xlu0 %v2946_v42, %s5384_s28  ;;  %3056 = vrot.lane.b32.xlu1 %v3027_v0, %s5385_s29  ;;  %v2472_v0 = vmul.f32 %v7067_v53, %v8131_v21 }
 0x8d0   :  { %2890 = vrot.lane.b32.xlu1 %v2864_v60, %s5383_s27  ;;  %3138 = vrot.lane.b32.xlu0 %v3108_v54, %s5386_s30  ;;  %v2712_v60 = vmul.f32 %v7099_v5, %v8131_v21 }
 0x8d4   :  { %3054 = vrot.lane.b32.xlu1 %v3026_v43, %s5385_s29  ;;  %2972 = vrot.lane.b32.xlu0 %v2945_v20, %s5384_s28  ;;  %v2553_v20 = vmul.f32 %v7077_v9, %v8132_v18 }
 0x8d8   :  { %2970 = vrot.lane.b32.xlu1 %v2944_v26, %s5384_s28  ;;  %3136 = vrot.lane.b32.xlu0 %v3107_v47, %s5386_s30  ;;  %v2306_v26 = vmul.f32 %v7045_v40, %v8125_v52 }
 0x8dc   :  { %2888 = vrot.lane.b32.xlu0 %v2863_v1, %s5383_s27  ;;  %3134 = vrot.lane.b32.xlu1 %v3106_v27, %s5386_s30  ;;  %v2309_v27 = vmul.f32 %v7045_v40, %v8128_v51 }
 0x8e0   :  { %3052 = vrot.lane.b32.xlu0 %v3025_v25, %s5385_s29  ;;  %2968 = vrot.lane.b32.xlu1 %v2943_v35, %s5384_s28  ;;  %v2468_v25 = vmul.f32 %v7067_v53, %v8127_v16 }
 0x8e4   :  { %2886 = vrot.lane.b32.xlu0 %v2862_v63, %s5383_s27  ;;  %3132 = vrot.lane.b32.xlu1 %v3105_v29, %s5386_s30  ;;  %v2390_v29 = vmul.f32 %v7055_v58, %v8129_v30 }
 0x8e8   :  { %3050 = vrot.lane.b32.xlu0 %v3024_v14, %s5385_s29  ;;  %3048 = vrot.lane.b32.xlu1 %v3023_v48, %s5385_s29  ;;  %v2630_v14 = vmul.f32 %v7089_v41, %v8129_v30 }
 0x8ec   :  { %2966 = vrot.lane.b32.xlu0 %v2942_v44, %s5384_s28  ;;  %2348 = vrot.lane.b32.xlu1 %v2313_v10, %s5370_s15  ;;  %v2471_v10 = vmul.f32 %v7067_v53, %v8130_v4  ;;  %s5395_s28 = smov 36  }
 0x8f0   :  { %2346 = vrot.lane.b32.xlu1 %v2312_v62, %s5370_s15  ;;  %2508 = vrot.lane.b32.xlu0 %v2473_v12, %s5387_s5  ;;  %v2792_v62 = vmul.f32 %v7111_v32, %v8131_v21 }
 0x8f4   :  { %2428 = vrot.lane.b32.xlu1 %v2393_v33, %s5388_s6  ;;  %2420 = vrot.lane.b32.xlu0 %v2389_v23, %s5388_s6  ;;  %v2552_v23 = vmul.f32 %v7077_v9, %v8131_v21 }
 0x8f8   :  { %2344 = vrot.lane.b32.xlu1 %v2311_v46, %s5370_s15  ;;  %2584 = vrot.lane.b32.xlu0 %v2551_v28, %s5368_s13  ;;  %v2305_v46 = vmul.f32 %v7045_v40, %v8124_v8 }
 0x8fc   :  { %2426 = vrot.lane.b32.xlu1 %v2392_v19, %s5388_s6  ;;  %2748 = vrot.lane.b32.xlu0 %v2713_v15, %s5389_s7  ;;  %v2633_v15 = vmul.f32 %v7089_v41, %v8132_v18 }
 0x900   :  { %2342 = vrot.lane.b32.xlu1 %v2310_v31, %s5370_s15  ;;  %2418 = vrot.lane.b32.xlu0 %v2388_v36, %s5388_s6  ;;  %v2467_v31 = vmul.f32 %v7067_v53, %v8126_v37 }
 0x904   :  { %2424 = vrot.lane.b32.xlu1 %v2391_v2, %s5388_s6  ;;  %2582 = vrot.lane.b32.xlu0 %v2550_v61, %s5368_s13  ;;  %v2308_v61 = vmul.f32 %v7045_v40, %v8127_v16 }
 0x906   :  { %v7129_v42 = vpop.permute.xlu1 %2908 }
 0x908   :  { %2506 = vrot.lane.b32.xlu1 %v2472_v0, %s5387_s5  ;;  %2746 = vrot.lane.b32.xlu0 %v2712_v60, %s5389_s7  ;;  %v2629_v0 = vmul.f32 %v7089_v41, %v8128_v51 }
 0x90a   :  { %v7137_v54 = vpop.permute.xlu0 %2988  ;;  %v7139_v43 = vpop.permute.xlu1 %2906 }
 0x90c   :  { %2588 = vrot.lane.b32.xlu1 %v2553_v20, %s5368_s13  ;;  %2334 = vrot.lane.b32.xlu0 %v2306_v26, %s5370_s15  ;;  %v2470_v26 = vmul.f32 %v7067_v53, %v8129_v30 }
 0x90e   :  { %v7147_v47 = vpop.permute.xlu0 %2904  ;;  %v7149_v1 = vpop.permute.xlu1 %2986 }
 0x910   :  { %2340 = vrot.lane.b32.xlu1 %v2309_v27, %s5370_s15  ;;  %2498 = vrot.lane.b32.xlu0 %v2468_v25, %s5387_s5  ;;  %v2791_v27 = vmul.f32 %v7111_v32, %v8130_v4 }
 0x912   :  { %v7157_v35 = vpop.permute.xlu0 %3068  ;;  %v7159_v63 = vpop.permute.xlu1 %2984 }
 0x914   :  { %2422 = vrot.lane.b32.xlu1 %v2390_v29, %s5388_s6  ;;  %2662 = vrot.lane.b32.xlu0 %v2630_v14, %s5390_s8  ;;  %v2632_v14 = vmul.f32 %v7089_v41, %v8131_v21 }
 0x916   :  { %v7167_v48 = vpop.permute.xlu0 %2902  ;;  %v7169_v44 = vpop.permute.xlu1 %3148 }
 0x917   :  { %8155 = vst [vmem:[#allocation5_spill] sm:$0xff] %v7167_v48 }
 0x918   :  { %2504 = vrot.lane.b32.xlu1 %v2471_v10, %s5387_s5  ;;  %2826 = vrot.lane.b32.xlu0 %v2792_v62, %s5391_s9  ;;  %v2385_v10 = vmul.f32 %v7055_v58, %v8124_v8 }
 0x91a   :  { %v7177_v12 = vpop.permute.xlu0 %3066  ;;  %v7179_v33 = vpop.permute.xlu1 %2900 }
 0x91b   :  { %8156 = vst [vmem:[#allocation4_spill] sm:$0xff] %v7179_v33 }
 0x91c   :  { %2586 = vrot.lane.b32.xlu1 %v2552_v23, %s5368_s13  ;;  %2332 = vrot.lane.b32.xlu0 %v2305_v46, %s5370_s15  ;;  %v2307_v46 = vmul.f32 %v7045_v40, %v8126_v37 }
 0x91e   :  { %v7187_v28 = vpop.permute.xlu0 %2982  ;;  %v7189_v19 = vpop.permute.xlu1 %3064 }
 0x91f   :  { %8157 = vst [vmem:[#allocation3_spill] sm:$0xff] %v7187_v28 }
 0x920   :  { %2668 = vrot.lane.b32.xlu1 %v2633_v15, %s5390_s8  ;;  %2496 = vrot.lane.b32.xlu0 %v2467_v31, %s5387_s5  ;;  %v2547_v15 = vmul.f32 %v7077_v9, %v8126_v37 }
 0x922   :  { %v7197_v36 = vpop.permute.xlu0 %3146  ;;  %v7199_v2 = vpop.permute.xlu1 %2898 }
 0x923   :  { %8158 = vst [vmem:[#allocation2_spill] sm:$0xff] %v7199_v2 }
 0x924   :  { %2338 = vrot.lane.b32.xlu1 %v2308_v61, %s5370_s15  ;;  %2660 = vrot.lane.b32.xlu0 %v2629_v0, %s5390_s8  ;;  %v2469_v0 = vmul.f32 %v7067_v53, %v8128_v51 }
 0x926   :  { %v7207_v60 = vpop.permute.xlu0 %2980  ;;  %v7209_v20 = vpop.permute.xlu1 %3062 }
 0x927   :  { %8159 = vst [vmem:[#allocation26_spill] sm:$0xff] %v7207_v60  ;;  %8160 = vst [vmem:[#allocation30_spill] sm:$0xff] %v7209_v20  ;;  %v2292_v20 = vmul.f32 %v7121_v57, %v8131_v21 }
 0x928   :  { %2502 = vrot.lane.b32.xlu1 %v2470_v26, %s5387_s5  ;;  %2824 = vrot.lane.b32.xlu0 %v2791_v27, %s5391_s9  ;;  %v2709_v26 = vmul.f32 %v7099_v5, %v8128_v51 }
 0x92a   :  { %v7217_v25 = vpop.permute.xlu0 %3144  ;;  %v7219_v29 = vpop.permute.xlu1 %2978 }
 0x92b   :  { %8161 = vst [vmem:[#allocation29_spill] sm:$0xff] %v7219_v29 }
 0x92c   :  { %2666 = vrot.lane.b32.xlu1 %v2632_v14, %s5390_s8  ;;  %2412 = vrot.lane.b32.xlu0 %v2385_v10, %s5388_s6  ;;  %v2631_v10 = vmul.f32 %v7089_v41, %v8130_v4 }
 0x92e   :  { %v7227_v62 = vpop.permute.xlu0 %2896  ;;  %v7229_v23 = vpop.permute.xlu1 %3142 }
 0x92f   :  { %8162 = vst [vmem:[#allocation23_spill] sm:$0xff] %v7227_v62  ;;  %8163 = vst [vmem:[#allocation12_spill] sm:$0xff] %v7229_v23 }
 0x930   :  { %2336 = vrot.lane.b32.xlu1 %v2307_v46, %s5370_s15  ;;  %2576 = vrot.lane.b32.xlu0 %v2547_v15, %s5368_s13  ;;  %v2384_v46 = vmul.f32 %v7055_v58, %v8123_v13 }
 0x932   :  { %v7237_v31 = vpop.permute.xlu0 %3060  ;;  %v7239_v61 = vpop.permute.xlu1 %2976 }
 0x933   :  { %8164 = vst [vmem:[#allocation13_spill] sm:$0xff] %v7237_v31  ;;  %8165 = vst [vmem:[#allocation39_spill] sm:$0xff] %v7239_v61 }
 0x934   :  { %2500 = vrot.lane.b32.xlu1 %v2469_v0, %s5387_s5  ;;  %2740 = vrot.lane.b32.xlu0 %v2709_v26, %s5389_s7  ;;  %v2793_v0 = vmul.f32 %v7111_v32, %v8132_v18  ;;  %v2546_v26 = vmul.f32 %v7077_v9, %v8125_v52 }
 0x936   :  { %v7247_v27 = vpop.permute.xlu0 %2894  ;;  %v7249_v14 = vpop.permute.xlu1 %3140 }
 0x937   :  { %8166 = vst [vmem:[#allocation40_spill] sm:$0xff] %v7247_v27  ;;  %8167 = vst [vmem:[#allocation41_spill] sm:$0xff] %v7249_v14 }
 0x938   :  { %2664 = vrot.lane.b32.xlu1 %v2631_v10, %s5390_s8  ;;  %2410 = vrot.lane.b32.xlu0 %v2384_v46, %s5388_s6  ;;  %v2387_v10 = vmul.f32 %v7055_v58, %v8126_v37  ;;  %v2708_v46 = vmul.f32 %v7099_v5, %v8127_v16 }
 0x93a   :  { %v7257_v15 = vpop.permute.xlu0 %3058  ;;  %v7259_v50 = vpop.permute.xlu1 %2892 }
 0x93b   :  { %8168 = vst [vmem:[#allocation42_spill] sm:$0xff] %v7257_v15  ;;  %8169 = vst [vmem:[#allocation43_spill] sm:$0xff] %v7259_v50 }
 0x93c   :  { %2828 = vrot.lane.b32.xlu1 %v2793_v0, %s5391_s9  ;;  %2574 = vrot.lane.b32.xlu0 %v2546_v26, %s5368_s13  ;;  %v2549_v0 = vmul.f32 %v7077_v9, %v8128_v51  ;;  %v2302_v26 = vmul.f32 %v7045_v40, %v8154_v56 }
 0x93e   :  { %v7267_v11 = vpop.permute.xlu0 %2974  ;;  %v7269_v6 = vpop.permute.xlu1 %3056 }
 0x93f   :  { %8170 = vst [vmem:[#allocation44_spill] sm:$0xff] %v7267_v11  ;;  %8171 = vst [vmem:[#allocation45_spill] sm:$0xff] %v7269_v6 }
 0x940   :  { %2416 = vrot.lane.b32.xlu1 %v2387_v10, %s5388_s6  ;;  %2738 = vrot.lane.b32.xlu0 %v2708_v46, %s5389_s7  ;;  %v2711_v10 = vmul.f32 %v7099_v5, %v8130_v4  ;;  %v2464_v46 = vmul.f32 %v7067_v53, %v8123_v13 }
 0x942   :  { %v7277_v45 = vpop.permute.xlu0 %3138  ;;  %v7279_v3 = vpop.permute.xlu1 %2890 }
 0x943   :  { %8172 = vst [vmem:[#allocation46_spill] sm:$0xff] %v7277_v45  ;;  %8173 = vst [vmem:[#allocation47_spill] sm:$0xff] %v7279_v3  ;;  %v2544_v45 = vmul.f32 %v7077_v9, %v8123_v13 }
 0x944   :  { %2580 = vrot.lane.b32.xlu1 %v2549_v0, %s5368_s13  ;;  %2326 = vrot.lane.b32.xlu0 %v2302_v26, %s5370_s15  ;;  %v2386_v0 = vmul.f32 %v7055_v58, %v8125_v52  ;;  %v2626_v26 = vmul.f32 %v7089_v41, %v8125_v52 }
 0x946   :  { %v7287_v34 = vpop.permute.xlu0 %2972  ;;  %v7289_v39 = vpop.permute.xlu1 %3054 }
 0x947   :  { %8174 = vst [vmem:[#allocation48_spill] sm:$0xff] %v7287_v34  ;;  %8175 = vst [vmem:[#allocation49_spill] sm:$0xff] %v7289_v39 }
 0x948   :  { %2744 = vrot.lane.b32.xlu1 %v2711_v10, %s5389_s7  ;;  %2490 = vrot.lane.b32.xlu0 %v2464_v46, %s5387_s5  ;;  %v2548_v10 = vmul.f32 %v7077_v9, %v8127_v16  ;;  %v2788_v46 = vmul.f32 %v7111_v32, %v8127_v16 }
 0x94a   :  { %v7297_v17 = vpop.permute.xlu0 %3136  ;;  %v7299_v49 = vpop.permute.xlu1 %2970 }
 0x94b   :  { %8176 = vst [vmem:[#allocation50_spill] sm:$0xff] %v7297_v17  ;;  %8177 = vst [vmem:[#allocation51_spill] sm:$0xff] %v7299_v49 }
 0x94c   :  { %2414 = vrot.lane.b32.xlu1 %v2386_v0, %s5388_s6  ;;  %2654 = vrot.lane.b32.xlu0 %v2626_v26, %s5390_s8  ;;  %v2463_v0 = vmul.f32 %v7067_v53, %v8153_v24  ;;  %v2710_v26 = vmul.f32 %v7099_v5, %v8129_v30 }
 0x94e   :  { %v7307_v7 = vpop.permute.xlu0 %2888  ;;  %v7309_v59 = vpop.permute.xlu1 %3134 }
 0x94f   :  { %8178 = vst [vmem:[#allocation52_spill] sm:$0xff] %v7307_v7  ;;  %8179 = vst [vmem:[#allocation53_spill] sm:$0xff] %v7309_v59 }
 0x950   :  { %2578 = vrot.lane.b32.xlu1 %v2548_v10, %s5368_s13  ;;  %2818 = vrot.lane.b32.xlu0 %v2788_v46, %s5391_s9  ;;  %v2625_v10 = vmul.f32 %v7089_v41, %v8124_v8  ;;  %v2304_v46 = vmul.f32 %v7045_v40, %v8123_v13 }
 0x952   :  { %v7317_v22 = vpop.permute.xlu0 %3052  ;;  %v7319_v34 = vpop.permute.xlu1 %2968 }
 0x953   :  { %8180 = vst [vmem:[#allocation54_spill] sm:$0xff] %v7317_v22  ;;  %8181 = vst [vmem:[#allocation55_spill] sm:$0xff] %v7319_v34 }
 0x954   :  { %2488 = vrot.lane.b32.xlu0 %v2463_v0, %s5387_s5  ;;  %2742 = vrot.lane.b32.xlu1 %v2710_v26, %s5389_s7  ;;  %v2787_v0 = vmul.f32 %v7111_v32, %v8126_v37  ;;  %v2466_v26 = vmul.f32 %v7067_v53, %v8125_v52 }
 0x956   :  { %v7327_v7 = vpop.permute.xlu0 %2886  ;;  %v7329_v50 = vpop.permute.xlu1 %3132 }
 0x957   :  { %8182 = vst [vmem:[#allocation56_spill] sm:$0xff] %v7327_v7  ;;  %8183 = vst [vmem:[#allocation57_spill] sm:$0xff] %v7329_v50 }
 0x958   :  { %2652 = vrot.lane.b32.xlu0 %v2625_v10, %s5390_s8  ;;  %2330 = vrot.lane.b32.xlu1 %v2304_v46, %s5370_s15  ;;  %v2543_v10 = vmul.f32 %v7077_v9, %v8153_v24  ;;  %v2628_v46 = vmul.f32 %v7089_v41, %v8127_v16 }
 0x95a   :  { %v7337_v34 = vpop.permute.xlu0 %3050  ;;  %v7339_v22 = vpop.permute.xlu1 %3048 }
 0x95b   :  { %8184 = vst [vmem:[#allocation58_spill] sm:$0xff] %v7337_v34  ;;  %8185 = vst [vmem:[#allocation59_spill] sm:$0xff] %v7339_v22 }
 0x95c   :  { %2816 = vrot.lane.b32.xlu0 %v2787_v0, %s5391_s9  ;;  %2494 = vrot.lane.b32.xlu1 %v2466_v26, %s5387_s5  ;;  %v2705_v0 = vmul.f32 %v7099_v5, %v8124_v8  ;;  %v2790_v26 = vmul.f32 %v7111_v32, %v8129_v30 }
 0x95e   :  { %v7347_v7 = vpop.permute.xlu0 %2966  ;;  %v7349_v50 = vpop.permute.xlu1 %2348 }
 0x95f   :  { %8186 = vst [vmem:[#allocation60_spill] sm:$0xff] %v7347_v7 }
 0x960   :  { %2568 = vrot.lane.b32.xlu0 %v2543_v10, %s5368_s13  ;;  %2658 = vrot.lane.b32.xlu1 %v2628_v46, %s5390_s8  ;;  %v2542_v10 = vmul.f32 %v7077_v9, %v8154_v56  ;;  %v2303_v46 = vmul.f32 %v7045_v40, %v8153_v24 }
 0x962   :  { %v7357_v22 = vpop.permute.xlu0 %2508  ;;  %v7359_v34 = vpop.permute.xlu1 %2346 }
 0x964   :  { %2732 = vrot.lane.b32.xlu0 %v2705_v0, %s5389_s7  ;;  %2822 = vrot.lane.b32.xlu1 %v2790_v26, %s5391_s9  ;;  %v2704_v0 = vmul.f32 %v7099_v5, %v8123_v13  ;;  %v2465_v26 = vmul.f32 %v7067_v53, %v8124_v8 }
 0x966   :  { %v7367_v7 = vpop.permute.xlu0 %2420  ;;  %v7369_v59 = vpop.permute.xlu1 %2428 }
 0x968   :  { %2566 = vrot.lane.b32.xlu0 %v2542_v10, %s5368_s13  ;;  %2328 = vrot.lane.b32.xlu1 %v2303_v46, %s5370_s15  ;;  %v2622_v10 = vmul.f32 %v7089_v41, %v8154_v56  ;;  %v2627_v46 = vmul.f32 %v7089_v41, %v8126_v37 }
 0x96a   :  { %v7377_v39 = vpop.permute.xlu0 %2584  ;;  %v7379_v11 = vpop.permute.xlu1 %2344 }
 0x96c   :  { %2730 = vrot.lane.b32.xlu0 %v2704_v0, %s5389_s7  ;;  %2492 = vrot.lane.b32.xlu1 %v2465_v26, %s5387_s5  ;;  %v2784_v0 = vmul.f32 %v7111_v32, %v8123_v13  ;;  %v2789_v26 = vmul.f32 %v7111_v32, %v8128_v51 }
 0x96e   :  { %v7387_v49 = vpop.permute.xlu0 %2748  ;;  %v2427_v40 = vpop.permute.xlu1 %2426 }
 0x970   :  { %2646 = vrot.lane.b32.xlu0 %v2622_v10, %s5390_s8  ;;  %2656 = vrot.lane.b32.xlu1 %v2627_v46, %s5390_s8  ;;  %v2783_v10 = vmul.f32 %v7111_v32, %v8153_v24  ;;  %v2383_v46 = vmul.f32 %v7055_v58, %v8153_v24 }
 0x972   :  { %v7395_v27 = vpop.permute.xlu0 %2418  ;;  %v7397_v3 = vpop.permute.xlu1 %2342 }
 0x974   :  { %2810 = vrot.lane.b32.xlu0 %v2784_v0, %s5391_s9  ;;  %2820 = vrot.lane.b32.xlu1 %v2789_v26, %s5391_s9  ;;  %v3104_v0 = vmul.f32 %v6959_v38, %v8123_v13  ;;  %v2545_v26 = vmul.f32 %v7077_v9, %v8124_v8 }
 0x976   :  { %v7405_v17 = vpop.permute.xlu0 %2582  ;;  %v7407_v6 = vpop.permute.xlu1 %2424 }
 0x978   :  { %2808 = vrot.lane.b32.xlu0 %v2783_v10, %s5391_s9  ;;  %2408 = vrot.lane.b32.xlu1 %v2383_v46, %s5388_s6  ;;  %v3103_v10 = vmul.f32 %v6959_v38, %v8153_v24  ;;  %v2707_v46 = vmul.f32 %v7099_v5, %v8126_v37  ;;  %v2706_v37 = vmul.f32 %v7099_v5, %v8125_v52 }
 0x97a   :  { %v2747_v61 = vpop.permute.xlu0 %2746  ;;  %v2507_v62 = vpop.permute.xlu1 %2506 }
 0x97c   :  { %3130 = vrot.lane.b32.xlu0 %v3104_v0, %s5386_s30  ;;  %2572 = vrot.lane.b32.xlu1 %v2545_v26, %s5368_s13  ;;  %v2382_v0 = vmul.f32 %v7055_v58, %v8154_v56 }
 0x97e   :  { %v7421_v14 = vpop.permute.xlu0 %2334  ;;  %v2589_v31 = vpop.permute.xlu1 %2588 }
 0x97f   :  { %8187 = vst [vmem:[#allocation61_spill] sm:$0xff] %v7421_v14 }
 0x980   :  { %3128 = vrot.lane.b32.xlu0 %v3103_v10, %s5386_s30  ;;  %2736 = vrot.lane.b32.xlu1 %v2707_v46, %s5389_s7 }
 0x982   :  { %v7429_v60 = vpop.permute.xlu0 %2498  ;;  %v7431_v33 = vpop.permute.xlu1 %2340 }
 0x984   :  { %2406 = vrot.lane.b32.xlu1 %v2382_v0, %s5388_s6  ;;  %v2462_v0 = vmul.f32 %v7067_v53, %v8154_v56  ;;  %v2786_v53 = vmul.f32 %v7111_v32, %v8125_v52  ;;  %v2293_v52 = vmul.f32 %v7121_v57, %v8132_v18  ;;  %v2703_v18 = vmul.f32 %v7099_v5, %v8153_v24 }
 0x986   :  { %v7436_v26 = vpop.permute.xlu0 %2662  ;;  %v7438_v14 = vpop.permute.xlu1 %2422  ;;  %v2373_v48 = vadd.f32 %v7349_v50, %v2293_v52 }
 0x988   :  { %2570 = vrot.lane.b32.xlu1 %v2544_v45, %s5368_s13  ;;  %v2624_v45 = vmul.f32 %v7089_v41, %v8123_v13 }
 0x98a   :  { %v2827_v10 = vpop.permute.xlu0 %2826  ;;  %v7443_v46 = vpop.permute.xlu1 %2504 }
 0x98c   :  { %2734 = vrot.lane.b32.xlu1 %v2706_v37, %s5389_s7 }
 0x98e   :  { %v2333_v58 = vpop.permute.xlu0 %2332  ;;  %v2587_v15 = vpop.permute.xlu1 %2586 }
 0x990   :  { %2486 = vrot.lane.b32.xlu1 %v2462_v0, %s5387_s5  ;;  %v2372_v0 = vadd.f32 %v7359_v34, %v2292_v20 }
 0x992   :  { %v7451_v23 = vpop.permute.xlu0 %2496  ;;  %v2669_v9 = vpop.permute.xlu1 %2668 }
 0x993   :  { %8188 = vst [vmem:[#allocation62_spill] sm:$0xff] %v7451_v23  ;;  %v2452_v23 = vadd.f32 %v2427_v40, %v2372_v0  ;;  %v2785_v0 = vmul.f32 %v7111_v32, %v8124_v8 }
 0x994   :  { %2650 = vrot.lane.b32.xlu1 %v2624_v45, %s5390_s8  ;;  %v2623_v45 = vmul.f32 %v7089_v41, %v8153_v24 }
 0x995   :  { %v2532_v21 = vadd.f32 %v2507_v62, %v2452_v23  ;;  %v2453_v62 = vadd.f32 %v7369_v59, %v2373_v48 }
 0x996   :  { %v7458_v28 = vpop.permute.xlu0 %2660  ;;  %v7460_v37 = vpop.permute.xlu1 %2338 }
 0x997   :  { %8189 = vst [vmem:[#allocation63_spill] sm:$0xff] %v7458_v28  ;;  %v2285_v28 = vmul.f32 %v7121_v57, %v8124_v8  ;;  %v2612_v20 = vadd.f32 %v2587_v15, %v2532_v21  ;;  %v2533_v8 = vadd.f32 %v7357_v22, %v2453_v62  ;;  %v2702_v15 = vmul.f32 %v7099_v5, %v8154_v56 }
 0x998   :  { %2814 = vrot.lane.b32.xlu1 %v2786_v53, %s5391_s9  ;;  %v2291_v22 = vmul.f32 %v7121_v57, %v8130_v4 }
 0x999   :  { %v2365_v34 = vadd.f32 %v2333_v58, %v2285_v28  ;;  %v2613_v58 = vadd.f32 %v2589_v31, %v2533_v8 }
 0x99a   :  { %v7466_v29 = vpop.permute.xlu0 %2824  ;;  %v7468_v13 = vpop.permute.xlu1 %2502 }
 0x99b   :  { %v2693_v59 = vadd.f32 %v2669_v9, %v2613_v58  ;;  %v3022_v9 = vmul.f32 %v6947_v55, %v8154_v56  ;;  %v2288_v58 = vmul.f32 %v7121_v57, %v8127_v16 }
 0x99c   :  { %2648 = vrot.lane.b32.xlu1 %v2623_v45, %s5390_s8 }
 0x99e   :  { %v2413_v53 = vpop.permute.xlu0 %2412  ;;  %v2667_v40 = vpop.permute.xlu1 %2666 }
 0x99f   :  { %v7480_v2 = vadd.f32 %v2413_v53, %v2365_v34  ;;  %v2692_v41 = vadd.f32 %v2667_v40, %v2612_v20  ;;  %v2782_v34 = vmul.f32 %v7111_v32, %v8154_v56 }
 0x9a0   :  { %2812 = vrot.lane.b32.xlu1 %v2785_v0, %s5391_s9 }
 0x9a1   :  { %v2772_v23 = vadd.f32 %v2747_v61, %v2692_v41 }
 0x9a2   :  { %v7484_v45 = vpop.permute.xlu1 %2336  ;;  %v7488_v28 = vpop.permute.xlu0 %2576 }
 0x9a3   :  { %v2852_v52 = vadd.f32 %v2827_v10, %v2772_v23  ;;  %v2773_v10 = vadd.f32 %v7387_v49, %v2693_v59  ;;  %v3102_v49 = vmul.f32 %v6959_v38, %v8154_v56 }
 0x9a4   :  { %2728 = vrot.lane.b32.xlu1 %v2703_v18, %s5389_s7 }
 0x9a5   :  { %v2932_v48 = vadd.f32 %v7139_v43, %v2852_v52  ;;  %v2371_v43 = vadd.f32 %v7379_v11, %v2291_v22 }
 0x9a6   :  { %v7492_v50 = vpop.permute.xlu1 %2500  ;;  %v7498_v61 = vpop.permute.xlu0 %2740 }
 0x9a7   :  { %v3012_v5 = vadd.f32 %v7149_v1, %v2932_v48  ;;  %v2451_v32 = vadd.f32 %v7407_v6, %v2371_v43 }
 0x9a8   :  { %2726 = vrot.lane.b32.xlu1 %v2702_v15, %s5389_s7 }
 0x9a9   :  { %v3092_v1 = vadd.f32 %v7177_v12, %v3012_v5  ;;  %v2531_v55 = vadd.f32 %v7443_v46, %v2451_v32  ;;  %v2289_v5 = vmul.f32 %v7121_v57, %v8128_v51 }
 0x9aa   :  { %v2665_v21 = vpop.permute.xlu1 %2664  ;;  %v7510_v53 = vpop.permute.xlu0 %2410 }
 0x9ab   :  { %v2611_v62 = vadd.f32 %v7377_v39, %v2531_v55 }
 0x9ac   :  { %2806 = vrot.lane.b32.xlu1 %v2782_v34, %s5391_s9 }
 0x9ad   :  { %v2691_v38 = vadd.f32 %v2665_v21, %v2611_v62 }
 0x9ae   :  { %v2829_v31 = vpop.permute.xlu1 %2828  ;;  %v7524_v41 = vpop.permute.xlu0 %2574 }
 0x9af   :  { %v2853_v20 = vadd.f32 %v2829_v31, %v2773_v10 }
 0x9b0   :  { %3046 = vrot.lane.b32.xlu1 %v3022_v9, %s5385_s29  ;;  %s5396_s29 = smov 30  }
 0x9b1   :  { %v2933_v40 = vadd.f32 %v7129_v42, %v2853_v20  ;;  %v3172_v42 = vadd.f32 %v7197_v36, %v3092_v1  ;;  %v8191_v1 = vld [vmem:[#allocation5_spill] sm:$0xff] }
 0x9b2   :  { %v7515_v4 = vpop.permute.xlu1 %2416  ;;  %v2739_v18 = vpop.permute.xlu0 %2738 }
 0x9b3   :  { %v3013_v11 = vadd.f32 %v7137_v54, %v2933_v40 }
 0x9b4   :  { %3126 = vrot.lane.b32.xlu1 %v3102_v49, %s5386_s30  ;;  %v8190_v49 = vld [vmem:[#allocation2_spill] sm:$0xff]  ;;  %s5397_s30 = smov 37  }
 0x9b5   :  { %v3093_v0 = vadd.f32 %v7157_v35, %v3013_v11 }
 0x9b6   :  { %v2581_v6 = vpop.permute.xlu1 %2580  ;;  %v7534_v15 = vpop.permute.xlu0 %2326 }
 0x9b7   :  { %v3173_v23 = vadd.f32 %v7169_v44, %v3093_v0  ;;  %v2290_v44 = vmul.f32 %v7121_v57, %v8129_v30  ;;  %v8192_v0 = vld [vmem:[#allocation29_spill] sm:$0xff] }
 0x9b8   :  { %3226 = vperm.xlu1 %5303, %v3172_v42  }
 0x9b9   :  { %3231 = vperm.xlu0 %5304, %v3173_v23   ;;  %v2370_v48 = vadd.f32 %v7397_v3, %v2290_v44 }
 0x9ba   :  { %v2745_v12 = vpop.permute.xlu1 %2744 }
 0x9bb   :  { %v2771_v46 = vadd.f32 %v2745_v12, %v2691_v38  ;;  %v2450_v21 = vadd.f32 %v7438_v14, %v2370_v48  ;;  %v8194_v38 = vld [vmem:[#allocation30_spill] sm:$0xff] }
 0x9bd   :  { %v2851_v54 = vadd.f32 %v7466_v29, %v2771_v46  ;;  %v2530_v30 = vadd.f32 %v7468_v13, %v2450_v21 }
 0x9be   :  { %v7530_v8 = vpop.permute.xlu1 %2414 }
 0x9bf   :  { %v2931_v35 = vadd.f32 %v7147_v47, %v2851_v54  ;;  %v2368_v47 = vadd.f32 %v7460_v37, %v2288_v58  ;;  %v8196_v54 = vld [vmem:[#allocation42_spill] sm:$0xff] }
 0x9c0   :  { %v8198_v58 = vld [vmem:[#allocation10_spill] sm:$0xff] }
 0x9c1   :  { %v3011_v52 = vadd.f32 %v7159_v63, %v2931_v35  ;;  %v7544_v63 = vpop.permute.xlu0 %2490 }
 0x9c2   :  { %v2579_v36 = vpop.permute.xlu1 %2578 }
 0x9c3   :  { %v3091_v39 = vadd.f32 %v7189_v19, %v3011_v52  ;;  %v2448_v19 = vadd.f32 %v7395_v27, %v2368_v47  ;;  %v2369_v27 = vadd.f32 %v7431_v33, %v2289_v5  ;;  %v8193_v33 = vld [vmem:[#allocation3_spill] sm:$0xff] }
 0x9c5   :  { %v3171_v59 = vadd.f32 %v7217_v25, %v3091_v39  ;;  %v7551_v22 = vpop.permute.xlu0 %2654  ;;  %v2610_v25 = vadd.f32 %v7405_v17, %v2530_v30  ;;  %v2528_v3 = vadd.f32 %v7429_v60, %v2448_v19  ;;  %v2449_v17 = vadd.f32 %v7367_v7, %v2369_v27  ;;  %v8203_v27 = vld [vmem:[#allocation13_spill] sm:$0xff] }
 0x9c6   :  { %v2743_v29 = vpop.permute.xlu1 %2742 }
 0x9c7   :  { %3221 = vperm.xlu1 %5303, %v3171_v59   ;;  %v2608_v37 = vadd.f32 %v2579_v36, %v2528_v3  ;;  %v2690_v14 = vadd.f32 %v7436_v26, %v2610_v25  ;;  %v2529_v26 = vadd.f32 %v7492_v50, %v2449_v17  ;;  %v8197_v36 = vld [vmem:[#allocation63_spill] sm:$0xff]  ;;  %v2287_v50 = vmul.f32 %v7121_v57, %v8198_v58  ;;  %v8199_v59 = vld [vmem:[#allocation46_spill] sm:$0xff]  ;;  %v8200_v25 = vld [vmem:[#allocation4_spill] sm:$0xff] }
 0x9c9   :  { %v2819_v9 = vpop.permute.xlu0 %2818  ;;  %v2770_v13 = vadd.f32 %v2743_v29, %v2690_v14  ;;  %v2609_v23 = vadd.f32 %v2581_v6, %v2529_v26  ;;  %v2367_v6 = vadd.f32 %v7484_v45, %v2287_v50  ;;  %v8202_v14 = vld [vmem:[#allocation26_spill] sm:$0xff] }
 0x9ca   :  { %v7547_v34 = vpop.permute.xlu1 %2330 }
 0x9cb   :  { %v2689_v39 = vadd.f32 %v8197_v36, %v2609_v23  ;;  %v2447_v19 = vadd.f32 %v7515_v4, %v2367_v6  ;;  %v8208_v23 = vld [vmem:[#allocation39_spill] sm:$0xff] }
 0x9cd   :  { %v7564_v11 = vpop.permute.xlu0 %2488  ;;  %v2769_v48 = vadd.f32 %v7498_v61, %v2689_v39  ;;  %v8211_v39 = vld [vmem:[#allocation50_spill] sm:$0xff] }
 0x9ce   :  { %v7553_v16 = vpop.permute.xlu1 %2494 }
 0x9d1   :  { %v7574_v52 = vpop.permute.xlu0 %2652 }
 0x9d2   :  { %v2659_v10 = vpop.permute.xlu1 %2658 }
 0x9d3   :  { %v2688_v31 = vadd.f32 %v2659_v10, %v2608_v37  ;;  %v8201_v10 = vld [vmem:[#allocation62_spill] sm:$0xff] }
 0x9d4   :  { %v2527_v5 = vadd.f32 %v8201_v10, %v2447_v19  ;;  %v2283_v19 = vmul.f32 %v7121_v57, %v8153_v24 }
 0x9d5   :  { %v2768_v43 = vadd.f32 %v2739_v18, %v2688_v31  ;;  %v8195_v18 = vld [vmem:[#allocation12_spill] sm:$0xff]  ;;  %v2817_v47 = vpop.permute.xlu0 %2816 }
 0x9d6   :  { %v2823_v20 = vpop.permute.xlu1 %2822  ;;  %v2607_v45 = vadd.f32 %v7488_v28, %v2527_v5 }
 0x9d7   :  { %v2848_v32 = vadd.f32 %v2819_v9, %v2768_v43  ;;  %v2850_v40 = vadd.f32 %v2823_v20, %v2770_v13  ;;  %v8204_v20 = vld [vmem:[#allocation41_spill] sm:$0xff] }
 0x9d9   :  { %v2928_v60 = vadd.f32 %v8190_v49, %v2848_v32  ;;  %v2930_v55 = vadd.f32 %v8191_v1, %v2850_v40  ;;  %v2569_v9 = vpop.permute.xlu0 %2568  ;;  %v8205_v1 = vld [vmem:[#allocation23_spill] sm:$0xff] }
 0x9da   :  { %v7566_v51 = vpop.permute.xlu1 %2328 }
 0x9db   :  { %v3008_v42 = vadd.f32 %v8192_v0, %v2928_v60  ;;  %v3010_v62 = vadd.f32 %v8193_v33, %v2930_v55  ;;  %v8206_v0 = vld [vmem:[#allocation11_spill] sm:$0xff]  ;;  %v8207_v33 = vld [vmem:[#allocation9_spill] sm:$0xff] }
 0x9dd   :  { %v3090_v12 = vadd.f32 %v8194_v38, %v3010_v62  ;;  %v3088_v35 = vadd.f32 %v8196_v54, %v3008_v42  ;;  %v2733_v40 = vpop.permute.xlu0 %2732  ;;  %v2286_v42 = vmul.f32 %v7121_v57, %v8206_v0  ;;  %v2284_v62 = vmul.f32 %v7121_v57, %v8207_v33  ;;  %v8210_v54 = vld [vmem:[#allocation45_spill] sm:$0xff] }
 0x9de   :  { %v2493_v46 = vpop.permute.xlu1 %2492  ;;  %v8217_v33 = vld [vmem:[#allocation53_spill] sm:$0xff] }
 0x9df   :  { %v3170_v7 = vadd.f32 %v8195_v18, %v3090_v12  ;;  %v3168_v29 = vadd.f32 %v8199_v59, %v3088_v35  ;;  %v8209_v12 = vld [vmem:[#allocation61_spill] sm:$0xff] }
 0x9e0   :  { %v2366_v18 = vadd.f32 %v8209_v12, %v2286_v42 }
 0x9e1   :  { %3216 = vperm.xlu0 %5304, %v3170_v7   ;;  %v2567_v26 = vpop.permute.xlu0 %2566  ;;  %v2364_v7 = vadd.f32 %v7547_v34, %v2284_v62 }
 0x9e2   :  { %v2657_v44 = vpop.permute.xlu1 %2656  ;;  %v2446_v36 = vadd.f32 %v7530_v8, %v2366_v18 }
 0x9e3   :  { %v2687_v32 = vadd.f32 %v2657_v44, %v2607_v45  ;;  %v2444_v59 = vadd.f32 %v7510_v53, %v2364_v7  ;;  %v2363_v53 = vadd.f32 %v7566_v51, %v2283_v19  ;;  %v8212_v45 = vld [vmem:[#allocation47_spill] sm:$0xff] }
 0x9e5   :  { %3206 = vperm.xlu0 %5304, %v3168_v29   ;;  %v2731_v58 = vpop.permute.xlu0 %2730  ;;  %v2526_v29 = vadd.f32 %v7553_v16, %v2446_v36 }
 0x9e6   :  { %v2821_v21 = vpop.permute.xlu1 %2820 }
 0x9e7   :  { %v2849_v30 = vadd.f32 %v2821_v21, %v2769_v48  ;;  %v2606_v48 = vadd.f32 %v7524_v41, %v2526_v29  ;;  %v8223_v29 = vld [vmem:[#allocation57_spill] sm:$0xff] }
 0x9e9   :  { %v2929_v3 = vadd.f32 %v8200_v25, %v2849_v30  ;;  %v2647_v21 = vpop.permute.xlu0 %2646  ;;  %v2525_v30 = vadd.f32 %v2493_v46, %v7480_v2  ;;  %v2686_v25 = vadd.f32 %v7551_v22, %v2606_v48  ;;  %v8213_v46 = vld [vmem:[#allocation40_spill] sm:$0xff]  ;;  %v8224_v48 = vld [vmem:[#allocation55_spill] sm:$0xff] }
 0x9ea   :  { %v2409_v37 = vpop.permute.xlu1 %2408 }
 0x9eb   :  { %v3009_v31 = vadd.f32 %v8202_v14, %v2929_v3  ;;  %v2443_v41 = vadd.f32 %v2409_v37, %v2363_v53  ;;  %v8215_v37 = vld [vmem:[#allocation44_spill] sm:$0xff] }
 0x9ed   :  { %v3089_v13 = vadd.f32 %v8203_v27, %v3009_v31  ;;  %v2811_v14 = vpop.permute.xlu0 %2810 }
 0x9ee   :  { %v2573_v43 = vpop.permute.xlu1 %2572 }
 0x9ef   :  { %v3169_v61 = vadd.f32 %v8204_v20, %v3089_v13  ;;  %v2605_v16 = vadd.f32 %v2573_v43, %v2525_v30  ;;  %v2282_v13 = vmul.f32 %v7121_v57, %v8154_v56  ;;  %v2523_v20 = vadd.f32 %v7564_v11, %v2443_v41 }
 0x9f1   :  { %3211 = vperm.xlu1 %5303, %v3169_v61   ;;  %v2685_v24 = vadd.f32 %v7574_v52, %v2605_v16  ;;  %v2362_v43 = vadd.f32 %v7534_v15, %v2282_v13  ;;  %v8214_v61 = vld [vmem:[#allocation51_spill] sm:$0xff]  ;;  %v2603_v57 = vadd.f32 %v2569_v9, %v2523_v20  ;;  %v5392_v13 = vmov 33  }
 0x9f2   :  { %v2737_v4 = vpop.permute.xlu1 %2736 }
 0x9f3   :  { %v2767_v17 = vadd.f32 %v2737_v4, %v2687_v32  ;;  %v2765_v56 = vadd.f32 %v2733_v40, %v2685_v24  ;;  %v8221_v40 = vld [vmem:[#allocation54_spill] sm:$0xff]  ;;  %v8228_v24 = vld [vmem:[#allocation32_spill] sm:$0xff] }
 0x9f5   :  { %v2847_v49 = vadd.f32 %v2817_v47, %v2767_v17  ;;  %v2524_v47 = vadd.f32 %v7544_v63, %v2444_v59  ;;  %v2809_v17 = vpop.permute.xlu0 %2808 }
 0x9f6   :  { %v2407_v60 = vpop.permute.xlu1 %2406 }
 0x9f7   :  { %v2927_v55 = vadd.f32 %v8205_v1, %v2847_v49  ;;  %v2442_v49 = vadd.f32 %v2407_v60, %v2362_v43  ;;  %v8216_v1 = vld [vmem:[#allocation49_spill] sm:$0xff]  ;;  %v8230_v43 = vld [vmem:[#allocation36_spill] sm:$0xff] }
 0x9f9   :  { %v3007_v28 = vadd.f32 %v8208_v23, %v2927_v55  ;;  %v8218_v23 = vld [vmem:[#allocation58_spill] sm:$0xff]  ;;  %v3131_v12 = vpop.permute.xlu0 %3130 }
 0x9fa   :  { %v2571_v38 = vpop.permute.xlu1 %2570 }
 0x9fb   :  { %v3087_v35 = vadd.f32 %v8210_v54, %v3007_v28  ;;  %v2604_v34 = vadd.f32 %v2571_v38, %v2524_v47  ;;  %v8219_v38 = vld [vmem:[#allocation43_spill] sm:$0xff]  ;;  %v8220_v54 = vld [vmem:[#allocation48_spill] sm:$0xff] }
 0x9fd   :  { %v3167_v44 = vadd.f32 %v8211_v39, %v3087_v35 }
 0x9fe   :  { %v2735_v50 = vpop.permute.xlu1 %2734 }
 0x9ff   :  { %3201 = vperm.xlu1 %5303, %v3167_v44   ;;  %v2766_v10 = vadd.f32 %v2735_v50, %v2686_v25  ;;  %v3129_v25 = vpop.permute.xlu0 %3128 }
 0xa02   :  { %v2487_v6 = vpop.permute.xlu1 %2486 }
 0xa03   :  { %v2522_v0 = vadd.f32 %v2487_v6, %v2442_v49 }
 0xa05   :  { %v2602_v7 = vadd.f32 %v2567_v26, %v2522_v0  ;;  %v8225_v26 = vld [vmem:[#allocation59_spill] sm:$0xff] }
 0xa06   :  { %v2651_v8 = vpop.permute.xlu1 %2650 }
 0xa07   :  { %v2684_v3 = vadd.f32 %v2651_v8, %v2604_v34  ;;  %v2682_v59 = vadd.f32 %v2647_v21, %v2602_v7 }
 0xa09   :  { %v2764_v5 = vadd.f32 %v2731_v58, %v2684_v3  ;;  %v8222_v58 = vld [vmem:[#allocation52_spill] sm:$0xff] }
 0xa0a   :  { %v2815_v31 = vpop.permute.xlu1 %2814  ;;  %v8226_v3 = vld [vmem:[#allocation56_spill] sm:$0xff] }
 0xa0b   :  { %v2844_v63 = vadd.f32 %v2811_v14, %v2764_v5  ;;  %v2846_v27 = vadd.f32 %v2815_v31, %v2766_v10  ;;  %v8227_v5 = vld [vmem:[#allocation60_spill] sm:$0xff] }
 0xa0d   :  { %v2924_v2 = vadd.f32 %v8212_v45, %v2844_v63  ;;  %v2926_v22 = vadd.f32 %v8213_v46, %v2846_v27 }
 0xa0e   :  { %v2649_v51 = vpop.permute.xlu1 %2648 }
 0xa0f   :  { %v3004_v32 = vadd.f32 %v8214_v61, %v2924_v2  ;;  %v3006_v4 = vadd.f32 %v8215_v37, %v2926_v22  ;;  %v2683_v28 = vadd.f32 %v2649_v51, %v2603_v57  ;;  %v8229_v2 = vld [vmem:[#allocation34_spill] sm:$0xff] }
 0xa11   :  { %v3086_v55 = vadd.f32 %v8216_v1, %v3006_v4  ;;  %v3084_v11 = vadd.f32 %v8218_v23, %v3004_v32  ;;  %v8231_v1 = vld [vmem:[#allocation37_spill] sm:$0xff] }
 0xa12   :  { %v2813_v52 = vpop.permute.xlu1 %2812 }
 0xa13   :  { %v2845_v42 = vadd.f32 %v2813_v52, %v2765_v56  ;;  %v3166_v62 = vadd.f32 %v8217_v33, %v3086_v55  ;;  %v3164_v36 = vadd.f32 %v3131_v12, %v3084_v11  ;;  %v8232_v52 = vld [vmem:[#allocation15_spill] sm:$0xff]  ;;  %v8233_v11 = vld [vmem:[#allocation38_spill] sm:$0xff] }
 0xa15   :  { %v2925_v15 = vadd.f32 %v8219_v38, %v2845_v42  ;;  %3196 = vperm.xlu0 %5304, %v3166_v62  }
 0xa16   :  { %v2729_v18 = vpop.permute.xlu1 %2728 }
 0xa17   :  { %v3005_v60 = vadd.f32 %v8220_v54, %v2925_v15  ;;  %v2763_v35 = vadd.f32 %v2729_v18, %v2683_v28  ;;  %v8234_v18 = vld [vmem:[#allocation19_spill] sm:$0xff] }
 0xa19   :  { %v3085_v9 = vadd.f32 %v8221_v40, %v3005_v60  ;;  %v2843_v39 = vadd.f32 %v2809_v17, %v2763_v35  ;;  %3186 = vperm.xlu0 %5304, %v3164_v36   ;;  %v8235_v36 = vld [vmem:[#allocation14_spill] sm:$0xff] }
 0xa1a   :  { %v2727_v44 = vpop.permute.xlu1 %2726 }
 0xa1b   :  { %v2923_v50 = vadd.f32 %v8222_v58, %v2843_v39  ;;  %v3165_v6 = vadd.f32 %v8223_v29, %v3085_v9  ;;  %v2762_v34 = vadd.f32 %v2727_v44, %v2682_v59  ;;  %v8236_v44 = vld [vmem:[#allocation16_spill] sm:$0xff] }
 0xa1d   :  { %v3003_v47 = vadd.f32 %v8224_v48, %v2923_v50  ;;  %3191 = vperm.xlu1 %5303, %v3165_v6   ;;  %v8237_v6 = vld [vmem:[#allocation27_spill] sm:$0xff] }
 0xa1e   :  { %v2807_v19 = vpop.permute.xlu1 %2806 }
 0xa1f   :  { %v3083_v8 = vadd.f32 %v8225_v26, %v3003_v47  ;;  %v2842_v30 = vadd.f32 %v2807_v19, %v2762_v34 }
 0xa21   :  { %v2922_v53 = vadd.f32 %v8226_v3, %v2842_v30  ;;  %v3163_v16 = vadd.f32 %v3129_v25, %v3083_v8  ;;  %v8238_v8 = vld [vmem:[#allocation21_spill] sm:$0xff] }
 0xa22   :  { %v3047_v10 = vpop.permute.xlu1 %3046 }
 0xa23   :  { %v3002_v14 = vadd.f32 %v8227_v5, %v2922_v53  ;;  %3181 = vperm.xlu1 %5303, %v3163_v16   ;;  %v8239_v16 = vld [vmem:[#allocation17_spill] sm:$0xff] }
 0xa25   :  { %v3082_v41 = vadd.f32 %v3047_v10, %v3002_v14 }
 0xa26   :  { %v3127_v21 = vpop.permute.xlu1 %3126 }
 0xa27   :  { %v3162_v31 = vadd.f32 %v3127_v21, %v3082_v41  ;;  %5305 = vset.pattern.permute.xlu1 %v5392_v13  ;;  %v8240_v41 = vld [vmem:[#allocation6_spill] sm:$0xff] }
 0xa28   :  { %v4269_v21 = vadd.f32 -1.0, %v8240_v41 }
 0xa29   :  { %3176 = vperm.xlu0 %5304, %v3162_v31   ;;  %v8241_v31 = vld [vmem:[#allocation7_spill] sm:$0xff] }
 0xa2d   :  { %5306 = vset.pattern.permute.xlu0 %v5392_v13  ;;  %v8243_v13 = vld [vmem:[#allocation8_spill] sm:$0xff] }
 0xa33   :  { %v3227_v27 = vpop.permute.xlu1 %3226 }
 0xa34   :  { %v3232_v63 = vpop.permute.xlu0 %3231  ;;  %v3244_v46 = vsub.f32 %v8229_v2, %v3227_v27  ;;  %v8242_v27 = vld [vmem:[#allocation28_spill] sm:$0xff] }
 0xa35   :  { %v3245_v45 = vsub.f32 %v8228_v24, %v3232_v63  ;;  %v4270_v63 = vadd.f32 -1.0, %v8241_v31  ;;  %v8244_v24 = vmov 0  }
 0xa36   :  { %v3256_v51 = vmul.f32 %v3244_v46, %v3244_v46 }
 0xa37   :  { %v3257_v22 = vmul.f32 %v3245_v45, %v3245_v45 }
 0xa38   :  { %v3288_v4 = vsel %vm1512_vm12, %v3256_v51, 0.0 }
 0xa39   :  { %v3291_v32 = vsel %vm1512_vm12, %v3257_v22, 0.0 }
 0xa42   :  { %v3222_v20 = vpop.permute.xlu1 %3221 }
 0xa43   :  { %v3243_v61 = vsub.f32 %v8230_v43, %v3222_v20 }
 0xa45   :  { %v3255_v37 = vmul.f32 %v3243_v61, %v3243_v61 }
 0xa47   :  { %3292 = vadd.xlane.f32.xlu1 %v3291_v32  ;;  %v3285_v17 = vsel %vm1512_vm12, %v3255_v37, 0.0 }
 0xa48   :  { %3289 = vadd.xlane.f32.xlu0 %v3288_v4 }
 0xa4c   :  { %3286 = vadd.xlane.f32.xlu0 %v3285_v17 }
 0xa5c   :  { %v3217_v49 = vpop.permute.xlu0 %3216 }
 0xa5d   :  { %v3242_v55 = vsub.f32 %v8231_v1, %v3217_v49 }
 0xa5f   :  { %v3254_v56 = vmul.f32 %v3242_v55, %v3242_v55 }
 0xa60   :  { %v3207_v57 = vpop.permute.xlu0 %3206 }
 0xa61   :  { %v3240_v0 = vsub.f32 %v8232_v52, %v3207_v57  ;;  %v3282_v42 = vsel %vm1512_vm12, %v3254_v56, 0.0 }
 0xa62   :  { %3283 = vadd.xlane.f32.xlu1 %v3282_v42 }
 0xa63   :  { %v3252_v33 = vmul.f32 %v3240_v0, %v3240_v0 }
 0xa65   :  { %v3276_v62 = vsel %vm1512_vm12, %v3252_v33, 0.0 }
 0xa66   :  { %3277 = vadd.xlane.f32.xlu1 %v3276_v62 }
 0xa6c   :  { %v3212_v23 = vpop.permute.xlu1 %3211 }
 0xa6d   :  { %v3241_v28 = vsub.f32 %v8233_v11, %v3212_v23 }
 0xa6f   :  { %v3253_v38 = vmul.f32 %v3241_v28, %v3241_v28 }
 0xa71   :  { %v3279_v15 = vsel %vm1512_vm12, %v3253_v38, 0.0 }
 0xa72   :  { %3280 = vadd.xlane.f32.xlu0 %v3279_v15 }
 0xa7a   :  { %v3202_v12 = vpop.permute.xlu1 %3201 }
 0xa7b   :  { %v3239_v7 = vsub.f32 %v8234_v18, %v3202_v12 }
 0xa7d   :  { %v3251_v54 = vmul.f32 %v3239_v7, %v3239_v7 }
 0xa7f   :  { %v3273_v60 = vsel %vm1512_vm12, %v3251_v54, 0.0 }
 0xa80   :  { %3274 = vadd.xlane.f32.xlu0 %v3273_v60 }
 0xa90   :  { %v3197_v35 = vpop.permute.xlu0 %3196 }
 0xa91   :  { %v3238_v40 = vsub.f32 %v8235_v36, %v3197_v35 }
 0xa93   :  { %v3250_v9 = vmul.f32 %v3238_v40, %v3238_v40 }
 0xa94   :  { %v3187_v39 = vpop.permute.xlu0 %3186 }
 0xa95   :  { %v3236_v58 = vsub.f32 %v8236_v44, %v3187_v39  ;;  %v3270_v50 = vsel %vm1512_vm12, %v3250_v9, 0.0 }
 0xa96   :  { %3271 = vadd.xlane.f32.xlu1 %v3270_v50 }
 0xa97   :  { %v3248_v59 = vmul.f32 %v3236_v58, %v3236_v58 }
 0xa98   :  { %v3192_v29 = vpop.permute.xlu1 %3191 }
 0xa99   :  { %v3237_v48 = vsub.f32 %v8237_v6, %v3192_v29  ;;  %v3264_v47 = vsel %vm1512_vm12, %v3248_v59, 0.0 }
 0xa9a   :  { %3265 = vadd.xlane.f32.xlu1 %v3264_v47 }
 0xa9b   :  { %v3249_v34 = vmul.f32 %v3237_v48, %v3237_v48 }
 0xa9d   :  { %v3267_v19 = vsel %vm1512_vm12, %v3249_v34, 0.0 }
 0xa9e   :  { %3268 = vadd.xlane.f32.xlu0 %v3267_v19  ;;  %v3182_v26 = vpop.permute.xlu1 %3181 }
 0xa9f   :  { %v3235_v30 = vsub.f32 %v8238_v8, %v3182_v26 }
 0xaa1   :  { %v3247_v25 = vmul.f32 %v3235_v30, %v3235_v30 }
 0xaa3   :  { %v3261_v3 = vsel %vm1512_vm12, %v3247_v25, 0.0 }
 0xaa4   :  { %v3177_v53 = vpop.permute.xlu0 %3176  ;;  %3262 = vadd.xlane.f32.xlu0 %v3261_v3 }
 0xaa5   :  { %v3234_v10 = vsub.f32 %v8239_v16, %v3177_v53 }
 0xaa7   :  { %v3246_v5 = vmul.f32 %v3234_v10, %v3234_v10 }
 0xaa9   :  { %v3258_v14 = vsel %vm1512_vm12, %v3246_v5, 0.0 }
 0xaaa   :  { %3259 = vadd.xlane.f32.xlu1 %v3258_v14 }
 0xaba   :  { %3930 = vrot.lane.b32.xlu0 %v4269_v21, %s5393_s10 }
 0xabb   :  { %3932 = vrot.lane.b32.xlu1 %v4270_v63, %s5393_s10 }
 0xabe   :  { %2253 = vperm.xlu0 %5306, %v8242_v27  }
 0xabf   :  { %2248 = vperm.xlu1 %5305, %v8243_v13  }
 0xac2   :  { %5308 = vset.pattern.permute.xlu0 %v8244_v24 }
 0xac3   :  { %5307 = vset.pattern.permute.xlu1 %v8244_v24 }
 0xad0   :  { %v3293_v45 = vpop.xlane.xlu1 %3292 }
 0xad1   :  { %v7660_v2 = vand.u32 4294901760, %v3293_v45  ;;  %v3290_v46 = vpop.xlane.xlu0 %3289 }
 0xad2   :  { %v7662_v22 = vand.u32 4294901760, %v3290_v46 }
 0xad3   :  { %v7665_v20 = vsub.f32 %v3293_v45, %v7660_v2  ;;  %4617 = vmatprep.subr.mxu0 %v7660_v2 }
 0xad4   :  { %v7669_v51 = vsub.f32 %v3290_v46, %v7662_v22  ;;  %4618 = vmatpush3.msra.mxu0 %v7660_v2 }
 0xad5   :  { %v3287_v43 = vpop.xlane.xlu0 %3286  ;;  %4619 = vmatprep.subr.mxu0 %v7662_v22  ;;  %v7674_v61 = vand.u32 4294901760, %v7665_v20 }
 0xad6   :  { %v7676_v32 = vand.u32 4294901760, %v3287_v43  ;;  %4620 = vmatpush3.msra.mxu0 %v7662_v22  ;;  %v7680_v37 = vand.u32 4294901760, %v7669_v51 }
 0xad7   :  { %v3403_v4 = vsub.f32 %v7665_v20, %v7674_v61 }
 0xad8   :  { %v7685_v17 = vsub.f32 %v3287_v43, %v7676_v32  ;;  %4621 = vmatprep.subr.mxu0 %v7676_v32  ;;  %v3410_v49 = vsub.f32 %v7669_v51, %v7680_v37 }
 0xad9   :  { %4622 = vmatpush3.msra.mxu0 %v7676_v32  ;;  %v3404_v1 = vand.u32 4294901760, %v3403_v4 }
 0xada   :  { %v3411_v55 = vand.u32 4294901760, %v3410_v49  ;;  %v7692_v56 = vand.u32 4294901760, %v7685_v17 }
 0xadb   :  { %4644 = vmatprep.subr.mxu1 %v3404_v1 }
 0xadc   :  { %4645 = vmatpush3.msra.mxu1 %v3404_v1  ;;  %v3417_v57 = vsub.f32 %v7685_v17, %v7692_v56 }
 0xadd   :  { %4646 = vmatprep.subr.mxu1 %v3411_v55 }
 0xade   :  { %4647 = vmatpush3.msra.mxu1 %v3411_v55  ;;  %v3418_v52 = vand.u32 4294901760, %v3417_v57  ;;  %v8245_v57 = vld [vmem:[#allocation22_spill] sm:$0xff] }
 0xae0   :  { %4648 = vmatprep.subr.mxu1 %v3418_v52 }
 0xae1   :  { %4649 = vmatpush3.msra.mxu1 %v3418_v52 }
 0xaeb   :  { %v3284_v0 = vpop.xlane.xlu1 %3283 }
 0xaec   :  { %v7696_v42 = vand.u32 4294901760, %v3284_v0 }
 0xaee   :  { %v7699_v33 = vsub.f32 %v3284_v0, %v7696_v42  ;;  %4623 = vmatprep.subr.mxu0 %v7696_v42  ;;  %v8246_v0 = vld [vmem:[#allocation24_spill] sm:$0xff] }
 0xaef   :  { %4624 = vmatpush3.msra.mxu0 %v7696_v42  ;;  %v3278_v11 = vpop.xlane.xlu1 %3277 }
 0xaf0   :  { %v7704_v62 = vand.u32 4294901760, %v7699_v33  ;;  %v7708_v38 = vand.u32 4294901760, %v3278_v11 }
 0xaf2   :  { %v3424_v23 = vsub.f32 %v7699_v33, %v7704_v62  ;;  %v7711_v15 = vsub.f32 %v3278_v11, %v7708_v38 }
 0xaf4   :  { %v3425_v28 = vand.u32 4294901760, %v3424_v23  ;;  %v7720_v54 = vand.u32 4294901760, %v7711_v15 }
 0xaf6   :  { %4650 = vmatprep.subr.mxu1 %v3425_v28  ;;  %v3438_v36 = vsub.f32 %v7711_v15, %v7720_v54 }
 0xaf7   :  { %4651 = vmatpush3.msra.mxu1 %v3425_v28 }
 0xaf8   :  { %v3439_v9 = vand.u32 4294901760, %v3438_v36 }
 0xafb   :  { %v3281_v12 = vpop.xlane.xlu0 %3280 }
 0xafc   :  { %v7713_v18 = vand.u32 4294901760, %v3281_v12 }
 0xafe   :  { %v7716_v7 = vsub.f32 %v3281_v12, %v7713_v18  ;;  %4625 = vmatprep.subr.mxu0 %v7713_v18 }
 0xaff   :  { %4626 = vmatpush3.msra.mxu0 %v7713_v18 }
 0xb00   :  { %4627 = vmatprep.subr.mxu0 %v7708_v38  ;;  %v7725_v60 = vand.u32 4294901760, %v7716_v7 }
 0xb01   :  { %4628 = vmatpush3.msra.mxu0 %v7708_v38 }
 0xb02   :  { %v3431_v35 = vsub.f32 %v7716_v7, %v7725_v60 }
 0xb04   :  { %v3432_v40 = vand.u32 4294901760, %v3431_v35 }
 0xb06   :  { %4652 = vmatprep.subr.mxu1 %v3432_v40 }
 0xb07   :  { %4653 = vmatpush3.msra.mxu1 %v3432_v40 }
 0xb08   :  { %4654 = vmatprep.subr.mxu1 %v3439_v9 }
 0xb09   :  { %v3275_v39 = vpop.xlane.xlu0 %3274  ;;  %4655 = vmatpush3.msra.mxu1 %v3439_v9 }
 0xb0a   :  { %v7732_v44 = vand.u32 4294901760, %v3275_v39 }
 0xb0c   :  { %v7735_v58 = vsub.f32 %v3275_v39, %v7732_v44  ;;  %4629 = vmatprep.subr.mxu0 %v7732_v44 }
 0xb0d   :  { %4630 = vmatpush3.msra.mxu0 %v7732_v44 }
 0xb0e   :  { %v7740_v50 = vand.u32 4294901760, %v7735_v58 }
 0xb10   :  { %v3445_v59 = vsub.f32 %v7735_v58, %v7740_v50 }
 0xb12   :  { %v3446_v29 = vand.u32 4294901760, %v3445_v59 }
 0xb14   :  { %4656 = vmatprep.subr.mxu1 %v3446_v29 }
 0xb15   :  { %4657 = vmatpush3.msra.mxu1 %v3446_v29 }
 0xb1f   :  { %v3272_v6 = vpop.xlane.xlu1 %3271 }
 0xb20   :  { %v7744_v48 = vand.u32 4294901760, %v3272_v6 }
 0xb22   :  { %v7747_v47 = vsub.f32 %v3272_v6, %v7744_v48  ;;  %4631 = vmatprep.subr.mxu0 %v7744_v48 }
 0xb23   :  { %4632 = vmatpush3.msra.mxu0 %v7744_v48  ;;  %v3266_v34 = vpop.xlane.xlu1 %3265 }
 0xb24   :  { %v7751_v19 = vand.u32 4294901760, %v3266_v34  ;;  %v7754_v26 = vand.u32 4294901760, %v7747_v47 }
 0xb26   :  { %v7757_v8 = vsub.f32 %v3266_v34, %v7751_v19  ;;  %v3452_v30 = vsub.f32 %v7747_v47, %v7754_v26  ;;  %v3956_v34 = vld [vmem:[%s7958_s3 + $0x10] sm:$0xff] }
 0xb27   :  { %v3269_v25 = vpop.xlane.xlu0 %3268 }
 0xb28   :  { %v7761_v3 = vand.u32 4294901760, %v3269_v25  ;;  %v3453_v53 = vand.u32 4294901760, %v3452_v30  ;;  %v7768_v10 = vand.u32 4294901760, %v7757_v8 }
 0xb2a   :  { %v7764_v16 = vsub.f32 %v3269_v25, %v7761_v3  ;;  %4633 = vmatprep.subr.mxu0 %v7761_v3  ;;  %4658 = vmatprep.subr.mxu1 %v3453_v53  ;;  %v3466_v31 = vsub.f32 %v7757_v8, %v7768_v10 }
 0xb2b   :  { %4634 = vmatpush3.msra.mxu0 %v7761_v3  ;;  %4659 = vmatpush3.msra.mxu1 %v3453_v53 }
 0xb2c   :  { %4635 = vmatprep.subr.mxu0 %v7751_v19  ;;  %v7773_v5 = vand.u32 4294901760, %v7764_v16  ;;  %v3467_v45 = vand.u32 4294901760, %v3466_v31 }
 0xb2d   :  { %v3263_v14 = vpop.xlane.xlu0 %3262  ;;  %4636 = vmatpush3.msra.mxu0 %v7751_v19 }
 0xb2e   :  { %v7776_v41 = vand.u32 4294901760, %v3263_v14  ;;  %v3459_v21 = vsub.f32 %v7764_v16, %v7773_v5 }
 0xb30   :  { %v3471_v63 = vsub.f32 %v3263_v14, %v7776_v41  ;;  %4637 = vmatprep.subr.mxu0 %v7776_v41  ;;  %v3460_v24 = vand.u32 4294901760, %v3459_v21 }
 0xb31   :  { %4638 = vmatpush3.msra.mxu0 %v7776_v41 }
 0xb32   :  { %4660 = vmatprep.subr.mxu1 %v3460_v24  ;;  %v7785_v46 = vand.u32 4294901760, %v3471_v63 }
 0xb33   :  { %4661 = vmatpush3.msra.mxu1 %v3460_v24  ;;  %v3260_v43 = vpop.xlane.xlu1 %3259  ;;  %v3962_v24 = vld [vmem:[%s7958_s3 + $0x40] sm:$0xff] }
 0xb34   :  { %v7787_v4 = vand.u32 4294901760, %v3260_v43  ;;  %4662 = vmatprep.subr.mxu1 %v3467_v45  ;;  %v3473_v49 = vsub.f32 %v3471_v63, %v7785_v46 }
 0xb35   :  { %4663 = vmatpush3.msra.mxu1 %v3467_v45  ;;  %v3959_v45 = vld [vmem:[%s7958_s3 + $0x28] sm:$0xff] }
 0xb36   :  { %v3478_v1 = vsub.f32 %v3260_v43, %v7787_v4  ;;  %4639 = vmatprep.subr.mxu0 %v7787_v4  ;;  %v3474_v55 = vand.u32 4294901760, %v3473_v49  ;;  %v8252_v43 = vld [vmem:[#allocation25_spill] sm:$0xff] }
 0xb37   :  { %4640 = vmatpush3.msra.mxu0 %v7787_v4 }
 0xb38   :  { %4642 = vmatmul.mubr.f32.vlgmr.msra.gmra.mxu0 %v8245_v57  ;;  %4664 = vmatprep.subr.mxu1 %v3474_v55  ;;  %v7794_v52 = vand.u32 4294901760, %v3478_v1 }
 0xb39   :  { %4671 = vmatprep.subr.mxu0 %v7665_v20  ;;  %4665 = vmatpush3.msra.mxu1 %v3474_v55 }
 0xb3a   :  { %4672 = vmatpush3.msra.mxu0 %v7665_v20  ;;  %4695 = vmatprep.mubr.f32.mxu0 %v8246_v0  ;;  %v3480_v23 = vsub.f32 %v3478_v1, %v7794_v52  ;;  %v8247_v20 = vld [vmem:[#allocation31_spill] sm:$0xff] }
 0xb3b   :  { %4673 = vmatprep.subr.mxu0 %v7669_v51 }
 0xb3c   :  { %4674 = vmatpush3.msra.mxu0 %v7669_v51  ;;  %v3481_v11 = vand.u32 4294901760, %v3480_v23  ;;  %v8248_v51 = vld [vmem:[#allocation18_spill] sm:$0xff]  ;;  %v3963_v23 = vld [vmem:[%s7958_s3 + $0x48] sm:$0xff] }
 0xb3d   :  { %4675 = vmatprep.subr.mxu0 %v7685_v17 }
 0xb3e   :  { %4676 = vmatpush3.msra.mxu0 %v7685_v17  ;;  %4666 = vmatprep.subr.mxu1 %v3481_v11  ;;  %v8249_v17 = vld [vmem:[#allocation33_spill] sm:$0xff] }
 0xb3f   :  { %4677 = vmatprep.subr.mxu0 %v7699_v33  ;;  %4667 = vmatpush3.msra.mxu1 %v3481_v11  ;;  %v4054_v11 = vrot.slane %v3963_v23, %v8252_v43 }
 0xb40   :  { %4678 = vmatpush3.msra.mxu0 %v7699_v33  ;;  %4669 = vmatmul.mubr.f32.vlgmr.msra.gmra.mxu1 %v8247_v20  ;;  %v8250_v33 = vld [vmem:[#allocation20_spill] sm:$0xff] }
 0xb41   :  { %4679 = vmatprep.subr.mxu0 %v7716_v7  ;;  %4698 = vmatprep.subr.mxu1 %v7660_v2 }
 0xb42   :  { %4680 = vmatpush3.msra.mxu0 %v7716_v7  ;;  %4699 = vmatpush3.msra.mxu1 %v7660_v2 }
 0xb43   :  { %4722 = vmatprep.mubr.f32.mxu1 %v8248_v51  ;;  %4681 = vmatprep.subr.mxu0 %v7711_v15 }
 0xb44   :  { %4700 = vmatprep.subr.mxu1 %v7662_v22  ;;  %4682 = vmatpush3.msra.mxu0 %v7711_v15 }
 0xb45   :  { %4701 = vmatpush3.msra.mxu1 %v7662_v22  ;;  %4683 = vmatprep.subr.mxu0 %v7735_v58 }
 0xb46   :  { %4702 = vmatprep.subr.mxu1 %v7676_v32  ;;  %4684 = vmatpush3.msra.mxu0 %v7735_v58 }
 0xb47   :  { %4703 = vmatpush3.msra.mxu1 %v7676_v32  ;;  %4685 = vmatprep.subr.mxu0 %v7747_v47 }
 0xb48   :  { %4704 = vmatprep.subr.mxu1 %v7696_v42  ;;  %4686 = vmatpush3.msra.mxu0 %v7747_v47  ;;  %v3957_v47 = vld [vmem:[%s7958_s3 + $0x18] sm:$0xff] }
 0xb49   :  { %4705 = vmatpush3.msra.mxu1 %v7696_v42  ;;  %4687 = vmatprep.subr.mxu0 %v7764_v16 }
 0xb4a   :  { %4706 = vmatprep.subr.mxu1 %v7713_v18  ;;  %4688 = vmatpush3.msra.mxu0 %v7764_v16 }
 0xb4b   :  { %4707 = vmatpush3.msra.mxu1 %v7713_v18  ;;  %4689 = vmatprep.subr.mxu0 %v7757_v8 }
 0xb4c   :  { %4708 = vmatprep.subr.mxu1 %v7708_v38  ;;  %4690 = vmatpush3.msra.mxu0 %v7757_v8  ;;  %v3954_v8 = vld [vmem:[%s7958_s3] sm:$0xff] }
 0xb4d   :  { %4709 = vmatpush3.msra.mxu1 %v7708_v38  ;;  %4691 = vmatprep.subr.mxu0 %v3471_v63 }
 0xb4e   :  { %4710 = vmatprep.subr.mxu1 %v7732_v44  ;;  %4692 = vmatpush3.msra.mxu0 %v3471_v63 }
 0xb4f   :  { %4711 = vmatpush3.msra.mxu1 %v7732_v44  ;;  %4693 = vmatprep.subr.mxu0 %v3478_v1 }
 0xb50   :  { %4712 = vmatprep.subr.mxu1 %v7744_v48  ;;  %4694 = vmatpush3.msra.mxu0 %v3478_v1 }
 0xb51   :  { %4713 = vmatpush3.msra.mxu1 %v7744_v48  ;;  %4696 = vmatmul.mubr.f32.vlgmr.msra.gmra.mxu0 %v8249_v17 }
 0xb52   :  { %4714 = vmatprep.subr.mxu1 %v7761_v3  ;;  %4725 = vmatprep.subr.mxu0 %v7674_v61 }
 0xb53   :  { %4715 = vmatpush3.msra.mxu1 %v7761_v3  ;;  %4726 = vmatpush3.msra.mxu0 %v7674_v61  ;;  %v8251_v61 = vld [vmem:[#allocation35_spill] sm:$0xff] }
 0xb54   :  { %4749 = vmatprep.mubr.f32.mxu0 %v8250_v33  ;;  %4716 = vmatprep.subr.mxu1 %v7751_v19 }
 0xb55   :  { %4727 = vmatprep.subr.mxu0 %v7680_v37  ;;  %4717 = vmatpush3.msra.mxu1 %v7751_v19 }
 0xb56   :  { %4728 = vmatpush3.msra.mxu0 %v7680_v37  ;;  %4718 = vmatprep.subr.mxu1 %v7776_v41  ;;  %v3931_v37 = vpop.permute.xlu0 %3930 }
 0xb57   :  { %4729 = vmatprep.subr.mxu0 %v7692_v56  ;;  %4719 = vmatpush3.msra.mxu1 %v7776_v41  ;;  %5313 = vrcp.f32 %v3931_v37 }
 0xb58   :  { %4730 = vmatpush3.msra.mxu0 %v7692_v56  ;;  %4720 = vmatprep.subr.mxu1 %v7787_v4 }
 0xb59   :  { %4731 = vmatprep.subr.mxu0 %v7704_v62  ;;  %4721 = vmatpush3.msra.mxu1 %v7787_v4 }
 0xb5a   :  { %4732 = vmatpush3.msra.mxu0 %v7704_v62  ;;  %4723 = vmatmul.mubr.f32.vlgmr.msra.gmra.mxu1 %v8251_v61  ;;  %v3933_v62 = vpop.permute.xlu1 %3932  ;;  %v2254_v25 = vpop.permute.xlu0 %2253 }
 0xb5b   :  { %4733 = vmatprep.subr.mxu0 %v7725_v60  ;;  %4752 = vmatprep.subr.mxu1 %v7660_v2  ;;  %5315 = vrcp.f32 %v3933_v62 }
 0xb5c   :  { %4734 = vmatpush3.msra.mxu0 %v7725_v60  ;;  %4753 = vmatpush3.msra.mxu1 %v7660_v2 }
 0xb5d   :  { %4776 = vmatprep.mubr.f32.mxu1 %v8250_v33  ;;  %4735 = vmatprep.subr.mxu0 %v7720_v54 }
 0xb5e   :  { %4754 = vmatprep.subr.mxu1 %v7662_v22  ;;  %4736 = vmatpush3.msra.mxu0 %v7720_v54  ;;  %v2249_v30 = vpop.permute.xlu1 %2248 }
 0xb5f   :  { %4755 = vmatpush3.msra.mxu1 %v7662_v22  ;;  %4737 = vmatprep.subr.mxu0 %v7740_v50  ;;  %5317 = vrcp.f32 %v2249_v30 }
 0xb60   :  { %4756 = vmatprep.subr.mxu1 %v7676_v32  ;;  %4738 = vmatpush3.msra.mxu0 %v7740_v50  ;;  %5319 = vrcp.f32 %v2254_v25 }
 0xb61   :  { %4757 = vmatpush3.msra.mxu1 %v7676_v32  ;;  %4739 = vmatprep.subr.mxu0 %v7754_v26 }
 0xb62   :  { %4758 = vmatprep.subr.mxu1 %v7696_v42  ;;  %4740 = vmatpush3.msra.mxu0 %v7754_v26  ;;  %v3955_v26 = vld [vmem:[%s7958_s3 + $0x8] sm:$0xff] }
 0xb63   :  { %4759 = vmatpush3.msra.mxu1 %v7696_v42  ;;  %4741 = vmatprep.subr.mxu0 %v7773_v5 }
 0xb64   :  { %4760 = vmatprep.subr.mxu1 %v7713_v18  ;;  %4742 = vmatpush3.msra.mxu0 %v7773_v5  ;;  %v5314_v59 = vpop.eup %5313 }
 0xb65   :  { %4761 = vmatpush3.msra.mxu1 %v7713_v18  ;;  %4743 = vmatprep.subr.mxu0 %v7768_v10 }
 0xb66   :  { %4762 = vmatprep.subr.mxu1 %v7708_v38  ;;  %4744 = vmatpush3.msra.mxu0 %v7768_v10 }
 0xb67   :  { %4763 = vmatpush3.msra.mxu1 %v7708_v38  ;;  %4745 = vmatprep.subr.mxu0 %v7785_v46 }
 0xb68   :  { %4764 = vmatprep.subr.mxu1 %v7732_v44  ;;  %4746 = vmatpush3.msra.mxu0 %v7785_v46  ;;  %v3958_v46 = vld [vmem:[%s7958_s3 + $0x20] sm:$0xff] }
 0xb69   :  { %4765 = vmatpush3.msra.mxu1 %v7732_v44  ;;  %4747 = vmatprep.subr.mxu0 %v7794_v52 }
 0xb6a   :  { %4766 = vmatprep.subr.mxu1 %v7744_v48  ;;  %4748 = vmatpush3.msra.mxu0 %v7794_v52 }
 0xb6b   :  { %4767 = vmatpush3.msra.mxu1 %v7744_v48  ;;  %4750 = vmatmul.mubr.f32.vlgmr.msra.gmra.mxu0 %v8247_v20  ;;  %v5316_v48 = vpop.eup %5315 }
 0xb6c   :  { %4768 = vmatprep.subr.mxu1 %v7761_v3  ;;  %4779 = vmatprep.subr.mxu0 %v3957_v47  ;;  %v5318_v16 = vpop.eup %5317 }
 0xb6d   :  { %4769 = vmatpush3.msra.mxu1 %v7761_v3  ;;  %4780 = vmatpush3.msra.mxu0 %v3957_v47  ;;  %v5320_v10 = vpop.eup %5319  ;;  %v2257_v5 = vmul.f32 %v5318_v16, %v8243_v13  ;;  %v3961_v13 = vld [vmem:[%s7958_s3 + $0x38] sm:$0xff] }
 0xb6e   :  { %4770 = vmatprep.subr.mxu1 %v7751_v19  ;;  %4781 = vmatprep.subr.mxu0 %v3956_v34  ;;  %v2259_v21 = vmul.f32 %v5320_v10, %v8242_v27  ;;  %v3960_v27 = vld [vmem:[%s7958_s3 + $0x30] sm:$0xff]  ;;  %s5394_s3 = smov 1  }
 0xb6f   :  { %4771 = vmatpush3.msra.mxu1 %v7751_v19  ;;  %4782 = vmatpush3.msra.mxu0 %v3956_v34 }
 0xb70   :  { %4772 = vmatprep.subr.mxu1 %v7776_v41  ;;  %4783 = vmatprep.subr.mxu0 %v3955_v26 }
 0xb71   :  { %4773 = vmatpush3.msra.mxu1 %v7776_v41  ;;  %4784 = vmatpush3.msra.mxu0 %v3955_v26 }
 0xb72   :  { %4774 = vmatprep.subr.mxu1 %v7787_v4  ;;  %4785 = vmatprep.subr.mxu0 %v3954_v8 }
 0xb73   :  { %4775 = vmatpush3.msra.mxu1 %v7787_v4  ;;  %4786 = vmatpush3.msra.mxu0 %v3954_v8  ;;  %v3967_v4 = vrot.slane %v3958_v46, %v8252_v43 }
 0xb74   :  { %4777 = vmatmul.mubr.f32.vlgmr.msra.gmra.mxu1 %v8247_v20  ;;  %4790 = vmatprep.subr.mxu1 %v3962_v24 }
 0xb75   :  { %4791 = vmatpush3.msra.mxu1 %v3962_v24 }
 0xb76   :  { %4792 = vmatprep.subr.mxu1 %v3961_v13 }
 0xb77   :  { %4793 = vmatpush3.msra.mxu1 %v3961_v13 }
 0xb78   :  { %4794 = vmatprep.subr.mxu1 %v3960_v27 }
 0xb79   :  { %4795 = vmatpush3.msra.mxu1 %v3960_v27 }
 0xb7a   :  { %4796 = vmatprep.subr.mxu1 %v3959_v45 }
 0xb7b   :  { %4797 = vmatpush3.msra.mxu1 %v3959_v45 }
 0xbf8   :  { %v4643_v2 = vpop.f32.mrf.mxu0 }
 0xbfa   :  { %v3377_v22 = vpop.f32.mrf.mxu0 }
 0xc00   :  { %v4670_v32 = vpop.f32.mrf.mxu1 }
 0xc01   :  { %v3525_v7 = vadd.f32 %v4670_v32, %v4643_v2 }
 0xc02   :  { %v3518_v42 = vpop.f32.mrf.mxu1 }
 0xc03   :  { %v3519_v12 = vadd.f32 %v3518_v42, %v3377_v22 }
 0xc11   :  { %v4697_v56 = vpop.f32.mrf.mxu0 }
 0xc12   :  { %v3628_v35 = vadd.f32 %v4697_v56, %v3525_v7 }
 0xc13   :  { %v3620_v28 = vpop.f32.mrf.mxu0 }
 0xc14   :  { %v3621_v54 = vadd.f32 %v3620_v28, %v3519_v12 }
 0xc1a   :  { %v4724_v38 = vpop.f32.mrf.mxu1 }
 0xc1b   :  { %v3721_v9 = vadd.f32 %v4724_v38, %v3628_v35 }
 0xc1c   :  { %v3712_v18 = vpop.f32.mrf.mxu1 }
 0xc1d   :  { %v3713_v36 = vadd.f32 %v3712_v18, %v3621_v54 }
 0xc2b   :  { %v4751_v15 = vpop.f32.mrf.mxu0 }
 0xc2c   :  { %v3834_v58 = vadd.f32 %v4751_v15, %v3721_v9 }
 0xc2d   :  { %v3827_v60 = vpop.f32.mrf.mxu0 }
 0xc2e   :  { %v3828_v39 = vadd.f32 %v3827_v60, %v3713_v36 }
 0xc34   :  { %v4778_v40 = vpop.f32.mrf.mxu1 }
 0xc35   :  { %v3923_v29 = vadd.f32 %v4778_v40, %v3834_v58 }
 0xc36   :  { %v3916_v44 = vpop.f32.mrf.mxu1 }
 0xc37   :  { %v3917_v50 = vadd.f32 %v3916_v44, %v3828_v39  ;;  %v3939_v19 = vmul.f32 %v5316_v48, %v3923_v29 }
 0xc39   :  { %v3937_v6 = vmul.f32 %v5314_v59, %v3917_v50 }
 0xc3b   :  { %3942 = vperm.xlu1 %5307, %v3937_v6  }
 0xc3f   :  { %3947 = vperm.xlu1 %5307, %v3939_v19  }
 0xcb6   :  { %v3943_v3 = vpop.permute.xlu1 %3942 }
 0xcb7   :  { %5321 = vrcp.f32 %v3943_v3 }
 0xcba   :  { %v3948_v53 = vpop.permute.xlu1 %3947 }
 0xcbb   :  { %5323 = vrcp.f32 %v3948_v53 }
 0xcc4   :  { %v5322_v14 = vpop.eup %5321 }
 0xcc5   :  { %v7911_v41 = vmul.f32 %v5322_v14, %v2257_v5 }
 0xcc7   :  { %4787 = vmatprep.mubr.msk.f32.mxu0 %vm1549_vm0, %v7911_v41 }
 0xcc8   :  { %v5324_v31 = vpop.eup %5323 }
 0xcc9   :  { %v7916_v63 = vmul.f32 %v5324_v31, %v2259_v21 }
 0xccb   :  { %4788 = vmatmul.mubr.msk.f32.vlgmr.msra.gmra.mxu0 %vm1549_vm0, %v7916_v63 }
 0xd8b   :  { %v4789_v49 = vpop.f32.mrf.mxu0 }
 0xd8c   :  { %v4046_v1 = vadd.f32 %v4789_v49, %v3967_v4 }
 0xd8d   :  { %v4040_v55 = vpop.f32.mrf.mxu0 }
 0xd8e   :  { %v4041_v57 = vadd.f32 %v4040_v55, %v3967_v4 }
 0xd90   :  { %5325 = vtanh.f32 %v4041_v57 }
 0xd91   :  { %5327 = vtanh.f32 %v4046_v1 }
 0xd9d   :  { %v5326_v52 = vpop.eup %5325 }
 0xd9e   :  { %v5328_v0 = vpop.eup %5327  ;;  %4798 = vmatprep.mubr.msk.f32.mxu1 %vm1549_vm0, %v5326_v52 }
 0xd9f   :  { %4799 = vmatmul.mubr.msk.f32.vlgmr.msra.gmra.mxu1 %vm1549_vm0, %v5328_v0 }
 0xe5f   :  { %v4800_v20 = vpop.f32.mrf.mxu1 }
 0xe60   :  { %v4133_v51 = vadd.f32 %v4800_v20, %v4054_v11 }
 0xe61   :  { %v4127_v17 = vpop.f32.mrf.mxu1 }
 0xe62   :  { %v4128_v33 = vadd.f32 %v4127_v17, %v4054_v11  ;;  %v4173_v61 = vsel %vm4172_vm3, %v4133_v51, -inf  ;;  %v4139_v22 = vmin.f32 %v4133_v51, 20.0  ;;  %vm4137_vm7 = vcmp.gt.f32.partialorder %v4133_v51, 20.0 }
 0xe63   :  { %4174 = vmax.xlane.f32.xlu1 %v4173_v61 }
 0xe64   :  { %v4169_v2 = vsel %vm4168_vm4, %v4128_v33, -inf  ;;  %v4138_v32 = vmin.f32 %v4128_v33, 20.0  ;;  %v4142_v37 = vmul.f32 1.442695, %v4139_v22  ;;  %vm4136_vm8 = vcmp.gt.f32.partialorder %v4128_v33, 20.0 }
 0xe65   :  { %4170 = vmax.xlane.f32.xlu0 %v4169_v2 }
 0xe66   :  { %v4140_v56 = vmul.f32 1.442695, %v4138_v32  ;;  %5329 = vpow2.f32 %v4142_v37 }
 0xe68   :  { %5331 = vpow2.f32 %v4140_v56 }
 0xe73   :  { %v5330_v42 = vpop.eup %5329 }
 0xe74   :  { %v4153_v28 = vadd.f32 1.0, %v5330_v42  ;;  %v4156_v18 = vmul.f32 -0.5, %v5330_v42  ;;  %v4159_v44 = vand.u32 2147483647, %v5330_v42 }
 0xe75   :  { %v5332_v62 = vpop.eup %5331 }
 0xe76   :  { %v4144_v38 = vadd.f32 1.0, %v5332_v62  ;;  %5333 = vlog2.f32 %v4153_v28  ;;  %v4147_v35 = vmul.f32 -0.5, %v5332_v62  ;;  %v4157_v9 = vadd.f32 1.0, %v4156_v18 }
 0xe77   :  { %v4150_v59 = vand.u32 2147483647, %v5332_v62  ;;  %vm4160_vm5 = vcmp.lt.f32.partialorder %v4159_v44, 0.0004427343 }
 0xe78   :  { %5335 = vlog2.f32 %v4144_v38  ;;  %v4148_v50 = vadd.f32 1.0, %v4147_v35  ;;  %v4158_v29 = vmul.f32 %v5330_v42, %v4157_v9 }
 0xe79   :  { %vm4151_vm6 = vcmp.lt.f32.partialorder %v4150_v59, 0.0004427343 }
 0xe7a   :  { %v4149_v47 = vmul.f32 %v5332_v62, %v4148_v50 }
 0xe83   :  { %v5334_v36 = vpop.eup %5333 }
 0xe84   :  { %v4155_v58 = vmul.f32 0.6931472, %v5334_v36 }
 0xe85   :  { %v5336_v39 = vpop.eup %5335 }
 0xe86   :  { %v4146_v6 = vmul.f32 0.6931472, %v5336_v39  ;;  %v4161_v48 = vsel %vm4160_vm5, %v4158_v29, %v4155_v58 }
 0xe87   :  { %v4163_v19 = vsel %vm4137_vm7, %v4133_v51, %v4161_v48 }
 0xe88   :  { %v4152_v34 = vsel %vm4151_vm6, %v4149_v47, %v4146_v6  ;;  %v4165_v8 = vmul.f32 0.99, %v4163_v19 }
 0xe89   :  { %v4162_v26 = vsel %vm4136_vm8, %v4128_v33, %v4152_v34 }
 0xe8a   :  { %v4164_v25 = vmul.f32 0.99, %v4162_v26  ;;  %v4167_v53 = vadd.f32 0.01, %v4165_v8 }
 0xe8c   :  { %v4166_v16 = vadd.f32 0.01, %v4164_v25 }
 0xeec   :  { %v4175_v15 = vpop.xlane.xlu1 %4174 }
 0xeed   :  { %v4177_v12 = vsub.f32 %v4133_v51, %v4175_v15 }
 0xeee   :  { %v4171_v7 = vpop.xlane.xlu0 %4170 }
 0xeef   :  { %v4180_v54 = vmul.f32 1.442695, %v4177_v12  ;;  %v4176_v60 = vsub.f32 %v4128_v33, %v4171_v7 }
 0xef1   :  { %5337 = vpow2.f32 %v4180_v54  ;;  %v4178_v40 = vmul.f32 1.442695, %v4176_v60 }
 0xef3   :  { %5339 = vpow2.f32 %v4178_v40 }
 0xefe   :  { %v5338_v30 = vpop.eup %5337 }
 0xeff   :  { %4186 = vrot.lane.b32.xlu1 %v5338_v30, %s5388_s6 }
 0xf00   :  { %v5340_v3 = vpop.eup %5339 }
 0xf01   :  { %4184 = vrot.lane.b32.xlu0 %v5340_v3, %s5388_s6 }
 0xf03   :  { %4205 = vrot.lane.b32.xlu1 %v4167_v53, %s5394_s3 }
 0xf05   :  { %4203 = vrot.lane.b32.xlu0 %v4166_v16, %s5394_s3 }
 0xf71   :  { %v4187_v10 = vpop.permute.xlu1 %4186 }
 0xf72   :  { %v4194_v5 = vsel %vm4193_vm9, %v4187_v10, 0.0 }
 0xf73   :  { %4195 = vadd.xlane.f32.xlu1 %v4194_v5  ;;  %v4185_v14 = vpop.permute.xlu0 %4184 }
 0xf74   :  { %v4190_v21 = vsel %vm1512_vm12, %v4185_v14, 0.0 }
 0xf75   :  { %4191 = vadd.xlane.f32.xlu0 %v4190_v21  ;;  %v4206_v31 = vpop.permute.xlu1 %4205 }
 0xf76   :  { %5341 = vrcp.f32 %v4206_v31 }
 0xf77   :  { %v4204_v24 = vpop.permute.xlu0 %4203 }
 0xf78   :  { %5343 = vrcp.f32 %v4204_v24 }
 0xf83   :  { %v5342_v13 = vpop.eup %5341 }
 0xf84   :  { %4237 = vrot.lane.b32.xlu1 %v4167_v53, %s5395_s28  ;;  %v4212_v45 = vmul.f32 %v5342_v13, %v4167_v53 }
 0xf85   :  { %v5344_v27 = vpop.eup %5343 }
 0xf86   :  { %v4210_v46 = vmul.f32 %v5344_v27, %v4166_v16  ;;  %5345 = vrsqrt.f32 %v4212_v45  ;;  %vm4222_vm10 = vcmp.eq.f32.partialorder %v4212_v45, inf  ;;  %v4225_v51 = vand.u32 2147483648, %v4212_v45 }
 0xf87   :  { %vm4224_vm12 = vcmp.eq.f32.partialorder %v4212_v45, 0.0 }
 0xf88   :  { %5347 = vrsqrt.f32 %v4210_v46  ;;  %vm4215_vm11 = vcmp.eq.f32.partialorder %v4210_v46, inf  ;;  %v4218_v61 = vand.u32 2147483648, %v4210_v46  ;;  %vm4217_vm13 = vcmp.eq.f32.partialorder %v4210_v46, 0.0 }
 0xf8b   :  { %4235 = vrot.lane.b32.xlu0 %v4166_v16, %s5395_s28 }
 0xf93   :  { %v5346_v49 = vpop.eup %5345 }
 0xf94   :  { %v4221_v55 = vmul.f32 %v5346_v49, %v4212_v45 }
 0xf95   :  { %v5348_v1 = vpop.eup %5347 }
 0xf96   :  { %v4214_v0 = vmul.f32 %v5348_v1, %v4210_v46  ;;  %v4223_v20 = vsel %vm4222_vm10, %v4212_v45, %v4221_v55 }
 0xf97   :  { %v4226_v33 = vsel %vm4224_vm12, %v4225_v51, %v4223_v20 }
 0xf98   :  { %v4216_v17 = vsel %vm4215_vm11, %v4210_v46, %v4214_v0 }
 0xf99   :  { %v4219_v2 = vsel %vm4217_vm13, %v4218_v61, %v4216_v17 }
 0xffc   :  { %v4196_v43 = vpop.xlane.xlu1 %4195 }
 0xffd   :  { %5349 = vrcp.f32 %v4196_v43 }
 0xffe   :  { %v4192_v4 = vpop.xlane.xlu0 %4191 }
 0xfff   :  { %5351 = vrcp.f32 %v4192_v4 }
0x1000   :  { %v4238_v22 = vpop.permute.xlu1 %4237 }
0x1002   :  { %v4236_v32 = vpop.permute.xlu0 %4235 }
0x100a   :  { %v5350_v57 = vpop.eup %5349 }
0x100b   :  { %v4200_v52 = vmul.f32 %v5350_v57, %v5338_v30 }
0x100c   :  { %v5352_v23 = vpop.eup %5351 }
0x100d   :  { %4231 = vrot.lane.b32.xlu1 %v4200_v52, %s5396_s29  ;;  %v4198_v11 = vmul.f32 %v5352_v23, %v5340_v3 }
0x100f   :  { %4229 = vrot.lane.b32.xlu0 %v4198_v11, %s5396_s29 }
0x1011   :  { %4245 = vrot.lane.b32.xlu1 %v4226_v33, %s5397_s30 }
0x1013   :  { %4243 = vrot.lane.b32.xlu0 %v4219_v2, %s5397_s30 }
0x107f   :  { %v4232_v37 = vpop.permute.xlu1 %4231 }
0x1080   :  { %v4250_v56 = vsel %vm1549_vm0, %v7916_v63, %v4232_v37 }
0x1081   :  { %v4253_v42 = vsel %vm4251_vm14, %v4250_v56, %v4238_v22  ;;  %v4230_v62 = vpop.permute.xlu0 %4229 }
0x1082   :  { %v4249_v28 = vsel %vm1549_vm0, %v7911_v41, %v4230_v62  ;;  %v4256_v38 = vsel %vm4254_vm15, %v4253_v42, %v4238_v22 }
0x1083   :  { %v4252_v15 = vsel %vm4251_vm14, %v4249_v28, %v4236_v32  ;;  %v4246_v12 = vpop.permute.xlu1 %4245 }
0x1084   :  { %v4259_v18 = vsel %vm4257_vm1, %v4256_v38, %v4246_v12  ;;  %v4255_v7 = vsel %vm4254_vm15, %v4252_v15, %v4236_v32 }
0x1085   :  { %v4262_v54 = vsel %vm4260_vm2, %v4259_v18, 0.0  ;;  %v4244_v60 = vpop.permute.xlu0 %4243 }
0x1086   :  { %4264 = vst [vmem:[%s7959_s4 + $0x8] sm:$0xf] %v4262_v54  ;;  %v4258_v35 = vsel %vm4257_vm1, %v4255_v7, %v4244_v60 }
0x1087   :  { %v4261_v63 = vsel %vm4260_vm2, %v4258_v35, 0.0 }
0x1088   :  { %4263 = vst [vmem:[%s7959_s4] sm:$0xff] %v4261_v63 }

</bundles_post_ra>
